<compile_context>
chip_gen: v7x
topology: tpu7x:2x2x1
jax: 0.10.0
libtpu: 0.0.40
codegen_flags: <defaults>
</compile_context>

<pallas_src>
import functools
import math

import numpy as np
import jax
import jax.numpy as jnp
from jax.experimental import pallas as pl
from jax.experimental.pallas import tpu as pltpu


_LAYER_WEIGHT_KEYS = (
    "wq1", "bq1", "wk1", "bk1", "wv1", "bv1", "wo1", "bo1", "g1", "be1",
    "wq2", "bq2", "wk2", "bk2", "wv2", "bv2", "wo2", "bo2", "g2", "be2",
    "wf1", "bf1", "wf2", "bf2", "g3", "be3",
)


def _layernorm(a, g, b, eps=1e-5):
    mu = jnp.mean(a, axis=-1, keepdims=True)
    var = jnp.mean((a - mu) ** 2, axis=-1, keepdims=True)   # biased var (PyTorch LN)
    return (a - mu) * jax.lax.rsqrt(var + eps) * g + b


# ----------------------------------------------------------------------------
# Fused decoder kernel (grid axis 0 = layer index, sequential)
# ----------------------------------------------------------------------------

def _decoder_kernel(
    # inputs (constant-index blocks stay resident; weights are indexed by layer)
    emb_ref, pe_ref, enc_ref,
    wq1_ref, bq1_ref, wk1_ref, bk1_ref, wv1_ref, bv1_ref, wo1_ref, bo1_ref,
    g1_ref, be1_ref,
    wq2_ref, bq2_ref, wk2_ref, bk2_ref, wv2_ref, bv2_ref, wo2_ref, bo2_ref,
    g2_ref, be2_ref,
    wf1_ref, bf1_ref, wf2_ref, bf2_ref,
    g3_ref, be3_ref,
    # outputs
    out_ref, attn1_ref, attn2_ref,
    # scratch
    x_vmem,
    *, num_heads, depth, scale):
    """One DecoderLayer per grid step, whole batch at once; x carried in VMEM."""
    layer = pl.program_id(0)

    # First grid step: fused "embedding * sqrt(d_model) + positional encoding".
    @pl.when(layer == 0)
    def _():
        x_vmem[...] = emb_ref[...] * scale + pe_ref[...]

    x = x_vmem[...]            # (B, S, F) activation, resident across layers
    enc = enc_ref[...]         # (B, Se, F)
    B, S, F = x.shape
    inv_sqrt_dk = 1.0 / math.sqrt(depth)

    def linear(a, w_ref, b_ref):
        # a: (B, S_, fin); w_ref block: (1, fin, fout); b_ref block: (1, 1, fout)
        sh = a.shape
        y = jnp.dot(a.reshape(-1, sh[-1]), w_ref[0],
                    preferred_element_type=jnp.float32) + b_ref[0]
        return y.reshape(sh[0], sh[1], y.shape[-1])

    def to_heads(t):
        # (B, S_, F = H*depth) -> (B*H, S_, depth); merged batch is b-major.
        parts = [t[:, None, :, h * depth:(h + 1) * depth]
                 for h in range(num_heads)]
        t4 = jnp.concatenate(parts, axis=1)            # (B, H, S_, depth)
        return t4.reshape(t.shape[0] * num_heads, t.shape[1], depth)

    def mha(q_in, kv_in, wq, bq, wk, bk, wv, bv, wo, bo):
        Sq = q_in.shape[1]
        qh = to_heads(linear(q_in, wq, bq))            # (B*H, Sq, depth)
        kh = to_heads(linear(kv_in, wk, bk))           # (B*H, Sk, depth)
        vh = to_heads(linear(kv_in, wv, bv))           # (B*H, Sk, depth)
        # One batched contraction over all (batch, head) pairs instead of a
        # per-head Python loop of tiny matmuls.
        scores = jnp.einsum('nqd,nkd->nqk', qh, kh,
                            preferred_element_type=jnp.float32) * inv_sqrt_dk
        m = jnp.max(scores, axis=-1, keepdims=True)
        e = jnp.exp(scores - m)
        attn = e * pl.reciprocal(jnp.sum(e, axis=-1, keepdims=True), approx=True)
        ctx = jnp.einsum('nqk,nkd->nqd', attn, vh,
                         preferred_element_type=jnp.float32)   # (B*H, Sq, depth)
        ctx4 = ctx.reshape(B, num_heads, Sq, depth)
        # merge heads back along features == permute(0,2,1,3)+reshape in PyTorch
        ctx_cat = jnp.concatenate([ctx4[:, h] for h in range(num_heads)], axis=-1)
        return linear(ctx_cat, wo, bo), attn           # attn: (B*H, Sq, Sk)

    # --- block 1: masked self attention (mask is None -> plain attention) ---
    a1, attn1 = mha(x, x, wq1_ref, bq1_ref, wk1_ref, bk1_ref,
                    wv1_ref, bv1_ref, wo1_ref, bo1_ref)
    out1 = _layernorm(a1 + x, g1_ref[0], be1_ref[0])

    # --- block 2: cross attention over encoder output ---
    a2, attn2 = mha(out1, enc, wq2_ref, bq2_ref, wk2_ref, bk2_ref,
                    wv2_ref, bv2_ref, wo2_ref, bo2_ref)
    out2 = _layernorm(a2 + out1, g2_ref[0], be2_ref[0])

    # --- feed-forward network ---
    hdn = jnp.maximum(linear(out2, wf1_ref, bf1_ref), 0.0)     # ReLU
    ffn = linear(hdn, wf2_ref, bf2_ref)
    x_new = _layernorm(ffn + out2, g3_ref[0], be3_ref[0])

    # Carry x to the next layer; single store per MHA for the attention weights.
    # (At S=Sk=8 flattening attn to a >=128-lane slab would just trade a masked
    #  store for an in-kernel minor-dim relayout; with realistic Sk>=128 the
    #  layout below is already lane-dense.)
    x_vmem[...] = x_new
    out_ref[...] = x_new                 # resident output block; last layer wins
    attn1_ref[0] = attn1                 # (B*H, S, S)
    attn2_ref[0] = attn2                 # (B*H, S, Se)


# ----------------------------------------------------------------------------
# Wrapper around pallas_call
# ----------------------------------------------------------------------------

def decoder_forward(tokens, enc_output, params, num_heads,
                    look_ahead_mask=None, padding_mask=None):
    # Only the mask=None path is a valid forward in the reference code.
    assert look_ahead_mask is None and padding_mask is None
    B, S = tokens.shape
    F = params["embedding"].shape[1]
    Se = enc_output.shape[1]
    L = len(params["layers"])
    depth = F // num_heads
    assert num_heads * depth == F

    # Embedding lookup is a data-dependent row gather -> plain JAX glue.
    emb = jnp.take(params["embedding"], tokens, axis=0)          # (B, S, F)
    pe = params["pos_encoding"][:S, :][None]                     # (1, S, F)

    # Stack per-layer parameters along a leading `layer` axis so one pallas_call
    # with grid=(L,) streams them while x stays resident in a VMEM scratch.
    stacked = [jnp.stack([lp[k] for lp in params["layers"]], axis=0)
               for k in _LAYER_WEIGHT_KEYS]

    kernel = functools.partial(_decoder_kernel, num_heads=num_heads,
                               depth=depth, scale=float(math.sqrt(F)))

    out_shape = (
        jax.ShapeDtypeStruct((B, S, F), jnp.float32),
        jax.ShapeDtypeStruct((L, B * num_heads, S, S), jnp.float32),
        jax.ShapeDtypeStruct((L, B * num_heads, S, Se), jnp.float32),
    )
    in_specs = (
        [pl.BlockSpec((B, S, F), lambda l: (0, 0, 0)),           # emb (resident)
         pl.BlockSpec((1, S, F), lambda l: (0, 0, 0)),           # pos enc
         pl.BlockSpec((B, Se, F), lambda l: (0, 0, 0))]          # encoder output
        + [pl.BlockSpec((1,) + tuple(w.shape[1:]), lambda l: (l, 0, 0))
           for w in stacked])                                    # per-layer weights
    out_specs = (
        pl.BlockSpec((B, S, F), lambda l: (0, 0, 0)),            # x (accumulator)
        pl.BlockSpec((1, B * num_heads, S, S), lambda l: (l, 0, 0, 0)),
        pl.BlockSpec((1, B * num_heads, S, Se), lambda l: (l, 0, 0, 0)),
    )

    out, attn1, attn2 = pl.pallas_call(
        kernel,
        out_shape=out_shape,
        grid=(L,),
        in_specs=in_specs,
        out_specs=out_specs,
        scratch_shapes=[pltpu.VMEM((B, S, F), jnp.float32)],
        # Layers are sequentially dependent (x carried in VMEM) -> "arbitrary".
        # TODO(synk): on v7x (2 TensorCores) a leading "parallel" batch grid axis
        # would let each core take half the batch; at B=2 toy size we keep the
        # whole batch in one block to avoid serial grid-step overhead on v5e/v6e.
        compiler_params=pltpu.CompilerParams(dimension_semantics=("arbitrary",)),
    )(emb, pe, enc_output, *stacked)

    attn1 = attn1.reshape(L, B, num_heads, S, S)
    attn2 = attn2.reshape(L, B, num_heads, S, Se)
    attention_weights = {}
    for i in range(L):
        attention_weights["decoder_layer{}_block1".format(i + 1)] = attn1[i]
        attention_weights["decoder_layer{}_block2".format(i + 1)] = attn2[i]
    return out, attention_weights


# ----------------------------------------------------------------------------
# Pure-JAX reference (for correctness check)
# ----------------------------------------------------------------------------

def _decoder_ref(tokens, enc_output, params, num_heads):
    F = params["embedding"].shape[1]
    depth = F // num_heads
    x = jnp.take(params["embedding"], tokens, axis=0) * math.sqrt(F)
    x = x + params["pos_encoding"][None, :x.shape[1], :]

    def layernorm(a, g, b, eps=1e-5):
        mu = a.mean(-1, keepdims=True)
        var = ((a - mu) ** 2).mean(-1, keepdims=True)
        return (a - mu) / jnp.sqrt(var + eps) * g + b

    def mha(q_in, kv_in, lp, p):
        B, Sq, _ = q_in.shape
        Sk = kv_in.shape[1]
        q = q_in @ lp["wq" + p] + lp["bq" + p]
        k = kv_in @ lp["wk" + p] + lp["bk" + p]
        v = kv_in @ lp["wv" + p] + lp["bv" + p]
        split = lambda t, S_: t.reshape(B, S_, num_heads, depth).transpose(0, 2, 1, 3)
        qh, kh, vh = split(q, Sq), split(k, Sk), split(v, Sk)
        scores = jnp.einsum('bhqd,bhkd->bhqk', qh, kh) / math.sqrt(depth)
        attn = jax.nn.softmax(scores, axis=-1)
        ctx = jnp.einsum('bhqk,bhkd->bhqd', attn, vh)
        ctx = ctx.transpose(0, 2, 1, 3).reshape(B, Sq, F)
        return ctx @ lp["wo" + p] + lp["bo" + p], attn

    attn_all = {}
    for i, lp in enumerate(params["layers"]):
        a1, w1 = mha(x, x, lp, "1")
        out1 = layernorm(a1 + x, lp["g1"], lp["be1"])
        a2, w2 = mha(out1, enc_output, lp, "2")
        out2 = layernorm(a2 + out1, lp["g2"], lp["be2"])
        h = jax.nn.relu(out2 @ lp["wf1"] + lp["bf1"])
        ffn = h @ lp["wf2"] + lp["bf2"]
        x = layernorm(ffn + out2, lp["g3"], lp["be3"])
        attn_all["decoder_layer{}_block1".format(i + 1)] = w1
        attn_all["decoder_layer{}_block2".format(i + 1)] = w2
    return x, attn_all


# ----------------------------------------------------------------------------
# Deterministic parameter init (synthetic, PyTorch-like shapes)
# ----------------------------------------------------------------------------

def init_decoder_params(key, num_layers, features, num_heads, fffeatures,
                        target_vocab_size, maximum_position_encoding):
    keys = jax.random.split(key, 1 + num_layers)
    params = {}
    params["embedding"] = (
        jax.random.normal(keys[0], (target_vocab_size, features), jnp.float32) * 0.02)

    # sinusoidal positional encoding (maximum_position_encoding, features)
    pos = np.arange(maximum_position_encoding)[:, None].astype(np.float32)
    i = np.arange(features)[None, :].astype(np.float32)
    angle = pos / np.power(10000.0, (2.0 * np.floor(i / 2.0)) / features)
    angle[:, 0::2] = np.sin(angle[:, 0::2])
    angle[:, 1::2] = np.cos(angle[:, 1::2])
    params["pos_encoding"] = jnp.asarray(angle, dtype=jnp.float32)

    def linear_init(k, fin, fout):
        bound = 1.0 / math.sqrt(fin)
        w = jax.random.uniform(k, (fin, fout), jnp.float32, -bound, bound)
        b = jax.random.uniform(jax.random.fold_in(k, 1), (1, fout),
                               jnp.float32, -bound, bound)
        return w, b

    params["layers"] = []
    for l in range(num_layers):
        lk = jax.random.split(keys[1 + l], 12)
        lp = {}
        lp["wq1"], lp["bq1"] = linear_init(lk[0], features, features)
        lp["wk1"], lp["bk1"] = linear_init(lk[1], features, features)
        lp["wv1"], lp["bv1"] = linear_init(lk[2], features, features)
        lp["wo1"], lp["bo1"] = linear_init(lk[3], features, features)
        lp["wq2"], lp["bq2"] = linear_init(lk[4], features, features)
        lp["wk2"], lp["bk2"] = linear_init(lk[5], features, features)
        lp["wv2"], lp["bv2"] = linear_init(lk[6], features, features)
        lp["wo2"], lp["bo2"] = linear_init(lk[7], features, features)
        lp["wf1"], lp["bf1"] = linear_init(lk[8], features, fffeatures)
        lp["wf2"], lp["bf2"] = linear_init(lk[9], fffeatures, features)
        for name in ("g1", "g2", "g3"):
            lp[name] = jnp.ones((1, features), jnp.float32)
        for name in ("be1", "be2", "be3"):
            lp[name] = jnp.zeros((1, features), jnp.float32)
        params["layers"].append(lp)
    return params


# ----------------------------------------------------------------------------
# Main
# ----------------------------------------------------------------------------

if __name__ == "__main__":
    num_layers = 2
    features = 32
    num_heads = 4
    fffeatures = 64
    target_vocab_size = 50
    maximum_position_encoding = 16

    B, S, Se = 2, 8, 8

    key = jax.random.PRNGKey(0)
    kp, kx, ke = jax.random.split(key, 3)

    params = init_decoder_params(kp, num_layers, features, num_heads,
                                 fffeatures, target_vocab_size,
                                 maximum_position_encoding)

    tokens = jax.random.randint(kx, (B, S), 0, target_vocab_size, dtype=jnp.int32)
    enc_output = jax.random.normal(ke, (B, Se, features), jnp.float32)

    out, attn_weights = decoder_forward(tokens, enc_output, params, num_heads,
                                        look_ahead_mask=None, padding_mask=None)
    out = jax.block_until_ready(out)
    for v in attn_weights.values():
        jax.block_until_ready(v)

    assert out.shape == (B, S, features)
    assert attn_weights["decoder_layer1_block1"].shape == (B, num_heads, S, S)
    assert attn_weights["decoder_layer2_block2"].shape == (B, num_heads, S, Se)

    # Pure-JAX reference check (loose tolerance: softmax uses approx reciprocal).
    ref_out, ref_attn = _decoder_ref(tokens, enc_output, params, num_heads)
    np.testing.assert_allclose(np.asarray(out), np.asarray(ref_out),
                               rtol=2e-2, atol=2e-2)
    for k in ref_attn:
        np.testing.assert_allclose(np.asarray(attn_weights[k]),
                                   np.asarray(ref_attn[k]), rtol=2e-2, atol=2e-2)

    print("KERNEL_OK")
</pallas_src>

<mosaic_0001>
module attributes {stable_mosaic.version = 11 : i64} {
  func.func @_decoder_kernel(%arg0: i32, %arg1: memref<2x8x32xf32, #tpu.memory_space<vmem>>, %arg2: memref<1x8x32xf32, #tpu.memory_space<vmem>>, %arg3: memref<2x8x32xf32, #tpu.memory_space<vmem>>, %arg4: memref<1x32x32xf32, #tpu.memory_space<vmem>>, %arg5: memref<1x1x32xf32, #tpu.memory_space<vmem>>, %arg6: memref<1x32x32xf32, #tpu.memory_space<vmem>>, %arg7: memref<1x1x32xf32, #tpu.memory_space<vmem>>, %arg8: memref<1x32x32xf32, #tpu.memory_space<vmem>>, %arg9: memref<1x1x32xf32, #tpu.memory_space<vmem>>, %arg10: memref<1x32x32xf32, #tpu.memory_space<vmem>>, %arg11: memref<1x1x32xf32, #tpu.memory_space<vmem>>, %arg12: memref<1x1x32xf32, #tpu.memory_space<vmem>>, %arg13: memref<1x1x32xf32, #tpu.memory_space<vmem>>, %arg14: memref<1x32x32xf32, #tpu.memory_space<vmem>>, %arg15: memref<1x1x32xf32, #tpu.memory_space<vmem>>, %arg16: memref<1x32x32xf32, #tpu.memory_space<vmem>>, %arg17: memref<1x1x32xf32, #tpu.memory_space<vmem>>, %arg18: memref<1x32x32xf32, #tpu.memory_space<vmem>>, %arg19: memref<1x1x32xf32, #tpu.memory_space<vmem>>, %arg20: memref<1x32x32xf32, #tpu.memory_space<vmem>>, %arg21: memref<1x1x32xf32, #tpu.memory_space<vmem>>, %arg22: memref<1x1x32xf32, #tpu.memory_space<vmem>>, %arg23: memref<1x1x32xf32, #tpu.memory_space<vmem>>, %arg24: memref<1x32x64xf32, #tpu.memory_space<vmem>>, %arg25: memref<1x1x64xf32, #tpu.memory_space<vmem>>, %arg26: memref<1x64x32xf32, #tpu.memory_space<vmem>>, %arg27: memref<1x1x32xf32, #tpu.memory_space<vmem>>, %arg28: memref<1x1x32xf32, #tpu.memory_space<vmem>>, %arg29: memref<1x1x32xf32, #tpu.memory_space<vmem>>, %arg30: memref<2x8x32xf32, #tpu.memory_space<vmem>>, %arg31: memref<1x8x8x8xf32, #tpu.memory_space<vmem>>, %arg32: memref<1x8x8x8xf32, #tpu.memory_space<vmem>>, %arg33: memref<2x8x32xf32, #tpu.memory_space<vmem>>) attributes {dimension_semantics = [#tpu.dimension_semantics<arbitrary>], iteration_bounds = array<i64: 2>, scalar_prefetch = 0 : i64, scratch_operands = 1 : i64, tpu.core_type = #tpu.core_type<tc>, window_params = [{pipeline_mode = #tpu.pipeline_mode<synchronous>, transform_indices = @transform_0, window_bounds = array<i64: 2, 8, 32>}, {pipeline_mode = #tpu.pipeline_mode<synchronous>, transform_indices = @transform_1, window_bounds = array<i64: 1, 8, 32>}, {pipeline_mode = #tpu.pipeline_mode<synchronous>, transform_indices = @transform_2, window_bounds = array<i64: 2, 8, 32>}, {transform_indices = @transform_3, window_bounds = array<i64: 1, 32, 32>}, {transform_indices = @transform_4, window_bounds = array<i64: 1, 1, 32>}, {transform_indices = @transform_5, window_bounds = array<i64: 1, 32, 32>}, {transform_indices = @transform_6, window_bounds = array<i64: 1, 1, 32>}, {transform_indices = @transform_7, window_bounds = array<i64: 1, 32, 32>}, {transform_indices = @transform_8, window_bounds = array<i64: 1, 1, 32>}, {transform_indices = @transform_9, window_bounds = array<i64: 1, 32, 32>}, {transform_indices = @transform_10, window_bounds = array<i64: 1, 1, 32>}, {transform_indices = @transform_11, window_bounds = array<i64: 1, 1, 32>}, {transform_indices = @transform_12, window_bounds = array<i64: 1, 1, 32>}, {transform_indices = @transform_13, window_bounds = array<i64: 1, 32, 32>}, {transform_indices = @transform_14, window_bounds = array<i64: 1, 1, 32>}, {transform_indices = @transform_15, window_bounds = array<i64: 1, 32, 32>}, {transform_indices = @transform_16, window_bounds = array<i64: 1, 1, 32>}, {transform_indices = @transform_17, window_bounds = array<i64: 1, 32, 32>}, {transform_indices = @transform_18, window_bounds = array<i64: 1, 1, 32>}, {transform_indices = @transform_19, window_bounds = array<i64: 1, 32, 32>}, {transform_indices = @transform_20, window_bounds = array<i64: 1, 1, 32>}, {transform_indices = @transform_21, window_bounds = array<i64: 1, 1, 32>}, {transform_indices = @transform_22, window_bounds = array<i64: 1, 1, 32>}, {transform_indices = @transform_23, window_bounds = array<i64: 1, 32, 64>}, {transform_indices = @transform_24, window_bounds = array<i64: 1, 1, 64>}, {transform_indices = @transform_25, window_bounds = array<i64: 1, 64, 32>}, {transform_indices = @transform_26, window_bounds = array<i64: 1, 1, 32>}, {transform_indices = @transform_27, window_bounds = array<i64: 1, 1, 32>}, {transform_indices = @transform_28, window_bounds = array<i64: 1, 1, 32>}, {pipeline_mode = #tpu.pipeline_mode<synchronous>, transform_indices = @transform_29, window_bounds = array<i64: 2, 8, 32>}, {transform_indices = @transform_30, window_bounds = array<i64: 1, 8, 8, 8>}, {transform_indices = @transform_31, window_bounds = array<i64: 1, 8, 8, 8>}]} {
    %c0_i32 = arith.constant 0 : i32
    %0 = arith.cmpi eq, %arg0, %c0_i32 : i32
    %1 = arith.extui %0 : i1 to i32
    %c0_i32_0 = arith.constant 0 : i32
    %2 = arith.cmpi ne, %1, %c0_i32_0 : i32
    scf.if %2 {
      %c0_133 = arith.constant 0 : index
      %c0_134 = arith.constant 0 : index
      %c0_135 = arith.constant 0 : index
      %300 = vector.load %arg1[%c0_133, %c0_134, %c0_135] : memref<2x8x32xf32, #tpu.memory_space<vmem>>, vector<2x8x32xf32>
      %cst_136 = arith.constant 5.65685415 : f32
      %301 = vector.broadcast %cst_136 : f32 to vector<2x8x32xf32>
      %302 = arith.mulf %300, %301 : vector<2x8x32xf32>
      %c0_137 = arith.constant 0 : index
      %c0_138 = arith.constant 0 : index
      %c0_139 = arith.constant 0 : index
      %303 = vector.load %arg2[%c0_137, %c0_138, %c0_139] : memref<1x8x32xf32, #tpu.memory_space<vmem>>, vector<1x8x32xf32>
      %304 = vector.broadcast %303 : vector<1x8x32xf32> to vector<2x8x32xf32>
      %305 = arith.addf %302, %304 : vector<2x8x32xf32>
      %c0_140 = arith.constant 0 : index
      %c0_141 = arith.constant 0 : index
      %c0_142 = arith.constant 0 : index
      %306 = vector.load %arg33[%c0_140, %c0_141, %c0_142] : memref<2x8x32xf32, #tpu.memory_space<vmem>>, vector<2x8x32xf32>
      tpu.vector_store %arg33[%c0_140, %c0_141, %c0_142], %305 {strides = array<i32>} : memref<2x8x32xf32, #tpu.memory_space<vmem>>, vector<2x8x32xf32>,
    } else {
    }
    %c0 = arith.constant 0 : index
    %c0_1 = arith.constant 0 : index
    %c0_2 = arith.constant 0 : index
    %3 = vector.load %arg33[%c0, %c0_1, %c0_2] : memref<2x8x32xf32, #tpu.memory_space<vmem>>, vector<2x8x32xf32>
    %c0_3 = arith.constant 0 : index
    %c0_4 = arith.constant 0 : index
    %c0_5 = arith.constant 0 : index
    %4 = vector.load %arg3[%c0_3, %c0_4, %c0_5] : memref<2x8x32xf32, #tpu.memory_space<vmem>>, vector<2x8x32xf32>
    %5 = vector.shape_cast %3 : vector<2x8x32xf32> to vector<16x32xf32>
    %c0_6 = arith.constant 0 : index
    %c0_7 = arith.constant 0 : index
    %c0_8 = arith.constant 0 : index
    %6 = vector.load %arg4[%c0_6, %c0_7, %c0_8] : memref<1x32x32xf32, #tpu.memory_space<vmem>>, vector<1x32x32xf32>
    %7 = vector.shape_cast %6 : vector<1x32x32xf32> to vector<32x32xf32>
    %cst = arith.constant dense<0.000000e+00> : vector<16x32xf32>
    %8 = tpu.matmul %5, %7, %cst {dimension_numbers = #tpu.dot_dimension_numbers<[1], [0], [0], [1], [0, 0, 1, 1], [], []>} : vector<16x32xf32>, vector<32x32xf32>, vector<16x32xf32> -> vector<16x32xf32>
    %c0_9 = arith.constant 0 : index
    %c0_10 = arith.constant 0 : index
    %c0_11 = arith.constant 0 : index
    %9 = vector.load %arg5[%c0_9, %c0_10, %c0_11] : memref<1x1x32xf32, #tpu.memory_space<vmem>>, vector<1x1x32xf32>
    %10 = vector.shape_cast %9 : vector<1x1x32xf32> to vector<1x32xf32>
    %11 = vector.broadcast %10 : vector<1x32xf32> to vector<16x32xf32>
    %12 = arith.addf %8, %11 : vector<16x32xf32>
    %13 = vector.shape_cast %12 : vector<16x32xf32> to vector<2x8x32xf32>
    %14 = vector.extract_strided_slice %13 {offsets = [0, 0, 0], sizes = [2, 8, 8], strides = [1, 1, 1]} : vector<2x8x32xf32> to vector<2x8x8xf32>
    %15 = vector.shape_cast %14 : vector<2x8x8xf32> to vector<2x1x8x8xf32>
    %16 = vector.extract_strided_slice %13 {offsets = [0, 0, 8], sizes = [2, 8, 8], strides = [1, 1, 1]} : vector<2x8x32xf32> to vector<2x8x8xf32>
    %17 = vector.shape_cast %16 : vector<2x8x8xf32> to vector<2x1x8x8xf32>
    %18 = vector.extract_strided_slice %13 {offsets = [0, 0, 16], sizes = [2, 8, 8], strides = [1, 1, 1]} : vector<2x8x32xf32> to vector<2x8x8xf32>
    %19 = vector.shape_cast %18 : vector<2x8x8xf32> to vector<2x1x8x8xf32>
    %20 = vector.extract_strided_slice %13 {offsets = [0, 0, 24], sizes = [2, 8, 8], strides = [1, 1, 1]} : vector<2x8x32xf32> to vector<2x8x8xf32>
    %21 = vector.shape_cast %20 : vector<2x8x8xf32> to vector<2x1x8x8xf32>
    %22 = tpu.concatenate %15, %17, %19, %21 in 1 : vector<2x1x8x8xf32>, vector<2x1x8x8xf32>, vector<2x1x8x8xf32>, vector<2x1x8x8xf32> -> vector<2x4x8x8xf32>
    %23 = vector.shape_cast %22 : vector<2x4x8x8xf32> to vector<8x8x8xf32>
    %24 = vector.shape_cast %3 : vector<2x8x32xf32> to vector<16x32xf32>
    %c0_12 = arith.constant 0 : index
    %c0_13 = arith.constant 0 : index
    %c0_14 = arith.constant 0 : index
    %25 = vector.load %arg6[%c0_12, %c0_13, %c0_14] : memref<1x32x32xf32, #tpu.memory_space<vmem>>, vector<1x32x32xf32>
    %26 = vector.shape_cast %25 : vector<1x32x32xf32> to vector<32x32xf32>
    %cst_15 = arith.constant dense<0.000000e+00> : vector<16x32xf32>
    %27 = tpu.matmul %24, %26, %cst_15 {dimension_numbers = #tpu.dot_dimension_numbers<[1], [0], [0], [1], [0, 0, 1, 1], [], []>} : vector<16x32xf32>, vector<32x32xf32>, vector<16x32xf32> -> vector<16x32xf32>
    %c0_16 = arith.constant 0 : index
    %c0_17 = arith.constant 0 : index
    %c0_18 = arith.constant 0 : index
    %28 = vector.load %arg7[%c0_16, %c0_17, %c0_18] : memref<1x1x32xf32, #tpu.memory_space<vmem>>, vector<1x1x32xf32>
    %29 = vector.shape_cast %28 : vector<1x1x32xf32> to vector<1x32xf32>
    %30 = vector.broadcast %29 : vector<1x32xf32> to vector<16x32xf32>
    %31 = arith.addf %27, %30 : vector<16x32xf32>
    %32 = vector.shape_cast %31 : vector<16x32xf32> to vector<2x8x32xf32>
    %33 = vector.extract_strided_slice %32 {offsets = [0, 0, 0], sizes = [2, 8, 8], strides = [1, 1, 1]} : vector<2x8x32xf32> to vector<2x8x8xf32>
    %34 = vector.shape_cast %33 : vector<2x8x8xf32> to vector<2x1x8x8xf32>
    %35 = vector.extract_strided_slice %32 {offsets = [0, 0, 8], sizes = [2, 8, 8], strides = [1, 1, 1]} : vector<2x8x32xf32> to vector<2x8x8xf32>
    %36 = vector.shape_cast %35 : vector<2x8x8xf32> to vector<2x1x8x8xf32>
    %37 = vector.extract_strided_slice %32 {offsets = [0, 0, 16], sizes = [2, 8, 8], strides = [1, 1, 1]} : vector<2x8x32xf32> to vector<2x8x8xf32>
    %38 = vector.shape_cast %37 : vector<2x8x8xf32> to vector<2x1x8x8xf32>
    %39 = vector.extract_strided_slice %32 {offsets = [0, 0, 24], sizes = [2, 8, 8], strides = [1, 1, 1]} : vector<2x8x32xf32> to vector<2x8x8xf32>
    %40 = vector.shape_cast %39 : vector<2x8x8xf32> to vector<2x1x8x8xf32>
    %41 = tpu.concatenate %34, %36, %38, %40 in 1 : vector<2x1x8x8xf32>, vector<2x1x8x8xf32>, vector<2x1x8x8xf32>, vector<2x1x8x8xf32> -> vector<2x4x8x8xf32>
    %42 = vector.shape_cast %41 : vector<2x4x8x8xf32> to vector<8x8x8xf32>
    %43 = vector.shape_cast %3 : vector<2x8x32xf32> to vector<16x32xf32>
    %c0_19 = arith.constant 0 : index
    %c0_20 = arith.constant 0 : index
    %c0_21 = arith.constant 0 : index
    %44 = vector.load %arg8[%c0_19, %c0_20, %c0_21] : memref<1x32x32xf32, #tpu.memory_space<vmem>>, vector<1x32x32xf32>
    %45 = vector.shape_cast %44 : vector<1x32x32xf32> to vector<32x32xf32>
    %cst_22 = arith.constant dense<0.000000e+00> : vector<16x32xf32>
    %46 = tpu.matmul %43, %45, %cst_22 {dimension_numbers = #tpu.dot_dimension_numbers<[1], [0], [0], [1], [0, 0, 1, 1], [], []>} : vector<16x32xf32>, vector<32x32xf32>, vector<16x32xf32> -> vector<16x32xf32>
    %c0_23 = arith.constant 0 : index
    %c0_24 = arith.constant 0 : index
    %c0_25 = arith.constant 0 : index
    %47 = vector.load %arg9[%c0_23, %c0_24, %c0_25] : memref<1x1x32xf32, #tpu.memory_space<vmem>>, vector<1x1x32xf32>
    %48 = vector.shape_cast %47 : vector<1x1x32xf32> to vector<1x32xf32>
    %49 = vector.broadcast %48 : vector<1x32xf32> to vector<16x32xf32>
    %50 = arith.addf %46, %49 : vector<16x32xf32>
    %51 = vector.shape_cast %50 : vector<16x32xf32> to vector<2x8x32xf32>
    %52 = vector.extract_strided_slice %51 {offsets = [0, 0, 0], sizes = [2, 8, 8], strides = [1, 1, 1]} : vector<2x8x32xf32> to vector<2x8x8xf32>
    %53 = vector.shape_cast %52 : vector<2x8x8xf32> to vector<2x1x8x8xf32>
    %54 = vector.extract_strided_slice %51 {offsets = [0, 0, 8], sizes = [2, 8, 8], strides = [1, 1, 1]} : vector<2x8x32xf32> to vector<2x8x8xf32>
    %55 = vector.shape_cast %54 : vector<2x8x8xf32> to vector<2x1x8x8xf32>
    %56 = vector.extract_strided_slice %51 {offsets = [0, 0, 16], sizes = [2, 8, 8], strides = [1, 1, 1]} : vector<2x8x32xf32> to vector<2x8x8xf32>
    %57 = vector.shape_cast %56 : vector<2x8x8xf32> to vector<2x1x8x8xf32>
    %58 = vector.extract_strided_slice %51 {offsets = [0, 0, 24], sizes = [2, 8, 8], strides = [1, 1, 1]} : vector<2x8x32xf32> to vector<2x8x8xf32>
    %59 = vector.shape_cast %58 : vector<2x8x8xf32> to vector<2x1x8x8xf32>
    %60 = tpu.concatenate %53, %55, %57, %59 in 1 : vector<2x1x8x8xf32>, vector<2x1x8x8xf32>, vector<2x1x8x8xf32>, vector<2x1x8x8xf32> -> vector<2x4x8x8xf32>
    %61 = vector.shape_cast %60 : vector<2x4x8x8xf32> to vector<8x8x8xf32>
    "tpu.trace_start"() <{level = 10 : i32, message = "nqd,nkd->nqk"}> : () -> ()
    %cst_26 = arith.constant dense<0.000000e+00> : vector<8x8x8xf32>
    %62 = tpu.matmul %23, %42, %cst_26 {dimension_numbers = #tpu.dot_dimension_numbers<[2], [2], [1], [1], [0, 0, 0, 1, 1, 1], [0], [0]>} : vector<8x8x8xf32>, vector<8x8x8xf32>, vector<8x8x8xf32> -> vector<8x8x8xf32>
    "tpu.trace_stop"() : () -> ()
    %cst_27 = arith.constant 0.353553385 : f32
    %63 = vector.broadcast %cst_27 : f32 to vector<8x8x8xf32>
    %64 = arith.mulf %62, %63 : vector<8x8x8xf32>
    %cst_28 = arith.constant dense<0xFF800000> : vector<8x8xf32>
    %65 = vector.multi_reduction <maximumf>, %64, %cst_28 [2] : vector<8x8x8xf32> to vector<8x8xf32>
    %66 = vector.shape_cast %65 : vector<8x8xf32> to vector<8x8x1xf32>
    %67 = vector.broadcast %66 : vector<8x8x1xf32> to vector<8x8x8xf32>
    %68 = arith.subf %64, %67 : vector<8x8x8xf32>
    %69 = math.exp %68 : vector<8x8x8xf32>
    %cst_29 = arith.constant dense<0.000000e+00> : vector<8x8xf32>
    %70 = vector.multi_reduction <add>, %69, %cst_29 [2] : vector<8x8x8xf32> to vector<8x8xf32>
    %71 = vector.shape_cast %70 : vector<8x8xf32> to vector<8x8x1xf32>
    %72 = tpu.reciprocal %71 {approx = true} : vector<8x8x1xf32> -> vector<8x8x1xf32>
    %73 = vector.broadcast %72 : vector<8x8x1xf32> to vector<8x8x8xf32>
    %74 = arith.mulf %69, %73 : vector<8x8x8xf32>
    "tpu.trace_start"() <{level = 10 : i32, message = "nqk,nkd->nqd"}> : () -> ()
    %cst_30 = arith.constant dense<0.000000e+00> : vector<8x8x8xf32>
    %75 = tpu.matmul %74, %61, %cst_30 {dimension_numbers = #tpu.dot_dimension_numbers<[2], [1], [1], [2], [0, 0, 0, 1, 1, 2], [0], [0]>} : vector<8x8x8xf32>, vector<8x8x8xf32>, vector<8x8x8xf32> -> vector<8x8x8xf32>
    "tpu.trace_stop"() : () -> ()
    %76 = vector.shape_cast %75 : vector<8x8x8xf32> to vector<2x4x8x8xf32>
    %77 = vector.extract_strided_slice %76 {offsets = [0, 0, 0, 0], sizes = [2, 1, 8, 8], strides = [1, 1, 1, 1]} : vector<2x4x8x8xf32> to vector<2x1x8x8xf32>
    %78 = vector.shape_cast %77 : vector<2x1x8x8xf32> to vector<2x8x8xf32>
    %79 = vector.extract_strided_slice %76 {offsets = [0, 1, 0, 0], sizes = [2, 1, 8, 8], strides = [1, 1, 1, 1]} : vector<2x4x8x8xf32> to vector<2x1x8x8xf32>
    %80 = vector.shape_cast %79 : vector<2x1x8x8xf32> to vector<2x8x8xf32>
    %81 = vector.extract_strided_slice %76 {offsets = [0, 2, 0, 0], sizes = [2, 1, 8, 8], strides = [1, 1, 1, 1]} : vector<2x4x8x8xf32> to vector<2x1x8x8xf32>
    %82 = vector.shape_cast %81 : vector<2x1x8x8xf32> to vector<2x8x8xf32>
    %83 = vector.extract_strided_slice %76 {offsets = [0, 3, 0, 0], sizes = [2, 1, 8, 8], strides = [1, 1, 1, 1]} : vector<2x4x8x8xf32> to vector<2x1x8x8xf32>
    %84 = vector.shape_cast %83 : vector<2x1x8x8xf32> to vector<2x8x8xf32>
    %85 = tpu.concatenate %78, %80, %82, %84 in 2 : vector<2x8x8xf32>, vector<2x8x8xf32>, vector<2x8x8xf32>, vector<2x8x8xf32> -> vector<2x8x32xf32>
    %86 = vector.shape_cast %85 : vector<2x8x32xf32> to vector<16x32xf32>
    %c0_31 = arith.constant 0 : index
    %c0_32 = arith.constant 0 : index
    %c0_33 = arith.constant 0 : index
    %87 = vector.load %arg10[%c0_31, %c0_32, %c0_33] : memref<1x32x32xf32, #tpu.memory_space<vmem>>, vector<1x32x32xf32>
    %88 = vector.shape_cast %87 : vector<1x32x32xf32> to vector<32x32xf32>
    %cst_34 = arith.constant dense<0.000000e+00> : vector<16x32xf32>
    %89 = tpu.matmul %86, %88, %cst_34 {dimension_numbers = #tpu.dot_dimension_numbers<[1], [0], [0], [1], [0, 0, 1, 1], [], []>} : vector<16x32xf32>, vector<32x32xf32>, vector<16x32xf32> -> vector<16x32xf32>
    %c0_35 = arith.constant 0 : index
    %c0_36 = arith.constant 0 : index
    %c0_37 = arith.constant 0 : index
    %90 = vector.load %arg11[%c0_35, %c0_36, %c0_37] : memref<1x1x32xf32, #tpu.memory_space<vmem>>, vector<1x1x32xf32>
    %91 = vector.shape_cast %90 : vector<1x1x32xf32> to vector<1x32xf32>
    %92 = vector.broadcast %91 : vector<1x32xf32> to vector<16x32xf32>
    %93 = arith.addf %89, %92 : vector<16x32xf32>
    %94 = vector.shape_cast %93 : vector<16x32xf32> to vector<2x8x32xf32>
    %95 = arith.addf %94, %3 : vector<2x8x32xf32>
    %c0_38 = arith.constant 0 : index
    %c0_39 = arith.constant 0 : index
    %c0_40 = arith.constant 0 : index
    %96 = vector.load %arg12[%c0_38, %c0_39, %c0_40] : memref<1x1x32xf32, #tpu.memory_space<vmem>>, vector<1x1x32xf32>
    %97 = vector.shape_cast %96 : vector<1x1x32xf32> to vector<1x32xf32>
    %c0_41 = arith.constant 0 : index
    %c0_42 = arith.constant 0 : index
    %c0_43 = arith.constant 0 : index
    %98 = vector.load %arg13[%c0_41, %c0_42, %c0_43] : memref<1x1x32xf32, #tpu.memory_space<vmem>>, vector<1x1x32xf32>
    %99 = vector.shape_cast %98 : vector<1x1x32xf32> to vector<1x32xf32>
    %cst_44 = arith.constant dense<0.000000e+00> : vector<2x8xf32>
    %100 = vector.multi_reduction <add>, %95, %cst_44 [2] : vector<2x8x32xf32> to vector<2x8xf32>
    %101 = vector.shape_cast %100 : vector<2x8xf32> to vector<2x8x1xf32>
    %cst_45 = arith.constant 3.200000e+01 : f32
    %102 = vector.broadcast %cst_45 : f32 to vector<2x8x1xf32>
    %103 = arith.divf %101, %102 : vector<2x8x1xf32>
    %104 = vector.broadcast %103 : vector<2x8x1xf32> to vector<2x8x32xf32>
    %105 = arith.subf %95, %104 : vector<2x8x32xf32>
    %106 = arith.mulf %105, %105 : vector<2x8x32xf32>
    %cst_46 = arith.constant dense<0.000000e+00> : vector<2x8xf32>
    %107 = vector.multi_reduction <add>, %106, %cst_46 [2] : vector<2x8x32xf32> to vector<2x8xf32>
    %108 = vector.shape_cast %107 : vector<2x8xf32> to vector<2x8x1xf32>
    %cst_47 = arith.constant 3.200000e+01 : f32
    %109 = vector.broadcast %cst_47 : f32 to vector<2x8x1xf32>
    %110 = arith.divf %108, %109 : vector<2x8x1xf32>
    %111 = vector.broadcast %103 : vector<2x8x1xf32> to vector<2x8x32xf32>
    %112 = arith.subf %95, %111 : vector<2x8x32xf32>
    %cst_48 = arith.constant 9.99999974E-6 : f32
    %113 = vector.broadcast %cst_48 : f32 to vector<2x8x1xf32>
    %114 = arith.addf %110, %113 : vector<2x8x1xf32>
    %115 = math.rsqrt %114 : vector<2x8x1xf32>
    %116 = vector.broadcast %115 : vector<2x8x1xf32> to vector<2x8x32xf32>
    %117 = arith.mulf %112, %116 : vector<2x8x32xf32>
    %118 = vector.shape_cast %97 : vector<1x32xf32> to vector<1x1x32xf32>
    %119 = vector.broadcast %118 : vector<1x1x32xf32> to vector<2x8x32xf32>
    %120 = arith.mulf %117, %119 : vector<2x8x32xf32>
    %121 = vector.shape_cast %99 : vector<1x32xf32> to vector<1x1x32xf32>
    %122 = vector.broadcast %121 : vector<1x1x32xf32> to vector<2x8x32xf32>
    %123 = arith.addf %120, %122 : vector<2x8x32xf32>
    %124 = vector.shape_cast %123 : vector<2x8x32xf32> to vector<16x32xf32>
    %c0_49 = arith.constant 0 : index
    %c0_50 = arith.constant 0 : index
    %c0_51 = arith.constant 0 : index
    %125 = vector.load %arg14[%c0_49, %c0_50, %c0_51] : memref<1x32x32xf32, #tpu.memory_space<vmem>>, vector<1x32x32xf32>
    %126 = vector.shape_cast %125 : vector<1x32x32xf32> to vector<32x32xf32>
    %cst_52 = arith.constant dense<0.000000e+00> : vector<16x32xf32>
    %127 = tpu.matmul %124, %126, %cst_52 {dimension_numbers = #tpu.dot_dimension_numbers<[1], [0], [0], [1], [0, 0, 1, 1], [], []>} : vector<16x32xf32>, vector<32x32xf32>, vector<16x32xf32> -> vector<16x32xf32>
    %c0_53 = arith.constant 0 : index
    %c0_54 = arith.constant 0 : index
    %c0_55 = arith.constant 0 : index
    %128 = vector.load %arg15[%c0_53, %c0_54, %c0_55] : memref<1x1x32xf32, #tpu.memory_space<vmem>>, vector<1x1x32xf32>
    %129 = vector.shape_cast %128 : vector<1x1x32xf32> to vector<1x32xf32>
    %130 = vector.broadcast %129 : vector<1x32xf32> to vector<16x32xf32>
    %131 = arith.addf %127, %130 : vector<16x32xf32>
    %132 = vector.shape_cast %131 : vector<16x32xf32> to vector<2x8x32xf32>
    %133 = vector.extract_strided_slice %132 {offsets = [0, 0, 0], sizes = [2, 8, 8], strides = [1, 1, 1]} : vector<2x8x32xf32> to vector<2x8x8xf32>
    %134 = vector.shape_cast %133 : vector<2x8x8xf32> to vector<2x1x8x8xf32>
    %135 = vector.extract_strided_slice %132 {offsets = [0, 0, 8], sizes = [2, 8, 8], strides = [1, 1, 1]} : vector<2x8x32xf32> to vector<2x8x8xf32>
    %136 = vector.shape_cast %135 : vector<2x8x8xf32> to vector<2x1x8x8xf32>
    %137 = vector.extract_strided_slice %132 {offsets = [0, 0, 16], sizes = [2, 8, 8], strides = [1, 1, 1]} : vector<2x8x32xf32> to vector<2x8x8xf32>
    %138 = vector.shape_cast %137 : vector<2x8x8xf32> to vector<2x1x8x8xf32>
    %139 = vector.extract_strided_slice %132 {offsets = [0, 0, 24], sizes = [2, 8, 8], strides = [1, 1, 1]} : vector<2x8x32xf32> to vector<2x8x8xf32>
    %140 = vector.shape_cast %139 : vector<2x8x8xf32> to vector<2x1x8x8xf32>
    %141 = tpu.concatenate %134, %136, %138, %140 in 1 : vector<2x1x8x8xf32>, vector<2x1x8x8xf32>, vector<2x1x8x8xf32>, vector<2x1x8x8xf32> -> vector<2x4x8x8xf32>
    %142 = vector.shape_cast %141 : vector<2x4x8x8xf32> to vector<8x8x8xf32>
    %143 = vector.shape_cast %4 : vector<2x8x32xf32> to vector<16x32xf32>
    %c0_56 = arith.constant 0 : index
    %c0_57 = arith.constant 0 : index
    %c0_58 = arith.constant 0 : index
    %144 = vector.load %arg16[%c0_56, %c0_57, %c0_58] : memref<1x32x32xf32, #tpu.memory_space<vmem>>, vector<1x32x32xf32>
    %145 = vector.shape_cast %144 : vector<1x32x32xf32> to vector<32x32xf32>
    %cst_59 = arith.constant dense<0.000000e+00> : vector<16x32xf32>
    %146 = tpu.matmul %143, %145, %cst_59 {dimension_numbers = #tpu.dot_dimension_numbers<[1], [0], [0], [1], [0, 0, 1, 1], [], []>} : vector<16x32xf32>, vector<32x32xf32>, vector<16x32xf32> -> vector<16x32xf32>
    %c0_60 = arith.constant 0 : index
    %c0_61 = arith.constant 0 : index
    %c0_62 = arith.constant 0 : index
    %147 = vector.load %arg17[%c0_60, %c0_61, %c0_62] : memref<1x1x32xf32, #tpu.memory_space<vmem>>, vector<1x1x32xf32>
    %148 = vector.shape_cast %147 : vector<1x1x32xf32> to vector<1x32xf32>
    %149 = vector.broadcast %148 : vector<1x32xf32> to vector<16x32xf32>
    %150 = arith.addf %146, %149 : vector<16x32xf32>
    %151 = vector.shape_cast %150 : vector<16x32xf32> to vector<2x8x32xf32>
    %152 = vector.extract_strided_slice %151 {offsets = [0, 0, 0], sizes = [2, 8, 8], strides = [1, 1, 1]} : vector<2x8x32xf32> to vector<2x8x8xf32>
    %153 = vector.shape_cast %152 : vector<2x8x8xf32> to vector<2x1x8x8xf32>
    %154 = vector.extract_strided_slice %151 {offsets = [0, 0, 8], sizes = [2, 8, 8], strides = [1, 1, 1]} : vector<2x8x32xf32> to vector<2x8x8xf32>
    %155 = vector.shape_cast %154 : vector<2x8x8xf32> to vector<2x1x8x8xf32>
    %156 = vector.extract_strided_slice %151 {offsets = [0, 0, 16], sizes = [2, 8, 8], strides = [1, 1, 1]} : vector<2x8x32xf32> to vector<2x8x8xf32>
    %157 = vector.shape_cast %156 : vector<2x8x8xf32> to vector<2x1x8x8xf32>
    %158 = vector.extract_strided_slice %151 {offsets = [0, 0, 24], sizes = [2, 8, 8], strides = [1, 1, 1]} : vector<2x8x32xf32> to vector<2x8x8xf32>
    %159 = vector.shape_cast %158 : vector<2x8x8xf32> to vector<2x1x8x8xf32>
    %160 = tpu.concatenate %153, %155, %157, %159 in 1 : vector<2x1x8x8xf32>, vector<2x1x8x8xf32>, vector<2x1x8x8xf32>, vector<2x1x8x8xf32> -> vector<2x4x8x8xf32>
    %161 = vector.shape_cast %160 : vector<2x4x8x8xf32> to vector<8x8x8xf32>
    %162 = vector.shape_cast %4 : vector<2x8x32xf32> to vector<16x32xf32>
    %c0_63 = arith.constant 0 : index
    %c0_64 = arith.constant 0 : index
    %c0_65 = arith.constant 0 : index
    %163 = vector.load %arg18[%c0_63, %c0_64, %c0_65] : memref<1x32x32xf32, #tpu.memory_space<vmem>>, vector<1x32x32xf32>
    %164 = vector.shape_cast %163 : vector<1x32x32xf32> to vector<32x32xf32>
    %cst_66 = arith.constant dense<0.000000e+00> : vector<16x32xf32>
    %165 = tpu.matmul %162, %164, %cst_66 {dimension_numbers = #tpu.dot_dimension_numbers<[1], [0], [0], [1], [0, 0, 1, 1], [], []>} : vector<16x32xf32>, vector<32x32xf32>, vector<16x32xf32> -> vector<16x32xf32>
    %c0_67 = arith.constant 0 : index
    %c0_68 = arith.constant 0 : index
    %c0_69 = arith.constant 0 : index
    %166 = vector.load %arg19[%c0_67, %c0_68, %c0_69] : memref<1x1x32xf32, #tpu.memory_space<vmem>>, vector<1x1x32xf32>
    %167 = vector.shape_cast %166 : vector<1x1x32xf32> to vector<1x32xf32>
    %168 = vector.broadcast %167 : vector<1x32xf32> to vector<16x32xf32>
    %169 = arith.addf %165, %168 : vector<16x32xf32>
    %170 = vector.shape_cast %169 : vector<16x32xf32> to vector<2x8x32xf32>
    %171 = vector.extract_strided_slice %170 {offsets = [0, 0, 0], sizes = [2, 8, 8], strides = [1, 1, 1]} : vector<2x8x32xf32> to vector<2x8x8xf32>
    %172 = vector.shape_cast %171 : vector<2x8x8xf32> to vector<2x1x8x8xf32>
    %173 = vector.extract_strided_slice %170 {offsets = [0, 0, 8], sizes = [2, 8, 8], strides = [1, 1, 1]} : vector<2x8x32xf32> to vector<2x8x8xf32>
    %174 = vector.shape_cast %173 : vector<2x8x8xf32> to vector<2x1x8x8xf32>
    %175 = vector.extract_strided_slice %170 {offsets = [0, 0, 16], sizes = [2, 8, 8], strides = [1, 1, 1]} : vector<2x8x32xf32> to vector<2x8x8xf32>
    %176 = vector.shape_cast %175 : vector<2x8x8xf32> to vector<2x1x8x8xf32>
    %177 = vector.extract_strided_slice %170 {offsets = [0, 0, 24], sizes = [2, 8, 8], strides = [1, 1, 1]} : vector<2x8x32xf32> to vector<2x8x8xf32>
    %178 = vector.shape_cast %177 : vector<2x8x8xf32> to vector<2x1x8x8xf32>
    %179 = tpu.concatenate %172, %174, %176, %178 in 1 : vector<2x1x8x8xf32>, vector<2x1x8x8xf32>, vector<2x1x8x8xf32>, vector<2x1x8x8xf32> -> vector<2x4x8x8xf32>
    %180 = vector.shape_cast %179 : vector<2x4x8x8xf32> to vector<8x8x8xf32>
    "tpu.trace_start"() <{level = 10 : i32, message = "nqd,nkd->nqk"}> : () -> ()
    %cst_70 = arith.constant dense<0.000000e+00> : vector<8x8x8xf32>
    %181 = tpu.matmul %142, %161, %cst_70 {dimension_numbers = #tpu.dot_dimension_numbers<[2], [2], [1], [1], [0, 0, 0, 1, 1, 1], [0], [0]>} : vector<8x8x8xf32>, vector<8x8x8xf32>, vector<8x8x8xf32> -> vector<8x8x8xf32>
    "tpu.trace_stop"() : () -> ()
    %cst_71 = arith.constant 0.353553385 : f32
    %182 = vector.broadcast %cst_71 : f32 to vector<8x8x8xf32>
    %183 = arith.mulf %181, %182 : vector<8x8x8xf32>
    %cst_72 = arith.constant dense<0xFF800000> : vector<8x8xf32>
    %184 = vector.multi_reduction <maximumf>, %183, %cst_72 [2] : vector<8x8x8xf32> to vector<8x8xf32>
    %185 = vector.shape_cast %184 : vector<8x8xf32> to vector<8x8x1xf32>
    %186 = vector.broadcast %185 : vector<8x8x1xf32> to vector<8x8x8xf32>
    %187 = arith.subf %183, %186 : vector<8x8x8xf32>
    %188 = math.exp %187 : vector<8x8x8xf32>
    %cst_73 = arith.constant dense<0.000000e+00> : vector<8x8xf32>
    %189 = vector.multi_reduction <add>, %188, %cst_73 [2] : vector<8x8x8xf32> to vector<8x8xf32>
    %190 = vector.shape_cast %189 : vector<8x8xf32> to vector<8x8x1xf32>
    %191 = tpu.reciprocal %190 {approx = true} : vector<8x8x1xf32> -> vector<8x8x1xf32>
    %192 = vector.broadcast %191 : vector<8x8x1xf32> to vector<8x8x8xf32>
    %193 = arith.mulf %188, %192 : vector<8x8x8xf32>
    "tpu.trace_start"() <{level = 10 : i32, message = "nqk,nkd->nqd"}> : () -> ()
    %cst_74 = arith.constant dense<0.000000e+00> : vector<8x8x8xf32>
    %194 = tpu.matmul %193, %180, %cst_74 {dimension_numbers = #tpu.dot_dimension_numbers<[2], [1], [1], [2], [0, 0, 0, 1, 1, 2], [0], [0]>} : vector<8x8x8xf32>, vector<8x8x8xf32>, vector<8x8x8xf32> -> vector<8x8x8xf32>
    "tpu.trace_stop"() : () -> ()
    %195 = vector.shape_cast %194 : vector<8x8x8xf32> to vector<2x4x8x8xf32>
    %196 = vector.extract_strided_slice %195 {offsets = [0, 0, 0, 0], sizes = [2, 1, 8, 8], strides = [1, 1, 1, 1]} : vector<2x4x8x8xf32> to vector<2x1x8x8xf32>
    %197 = vector.shape_cast %196 : vector<2x1x8x8xf32> to vector<2x8x8xf32>
    %198 = vector.extract_strided_slice %195 {offsets = [0, 1, 0, 0], sizes = [2, 1, 8, 8], strides = [1, 1, 1, 1]} : vector<2x4x8x8xf32> to vector<2x1x8x8xf32>
    %199 = vector.shape_cast %198 : vector<2x1x8x8xf32> to vector<2x8x8xf32>
    %200 = vector.extract_strided_slice %195 {offsets = [0, 2, 0, 0], sizes = [2, 1, 8, 8], strides = [1, 1, 1, 1]} : vector<2x4x8x8xf32> to vector<2x1x8x8xf32>
    %201 = vector.shape_cast %200 : vector<2x1x8x8xf32> to vector<2x8x8xf32>
    %202 = vector.extract_strided_slice %195 {offsets = [0, 3, 0, 0], sizes = [2, 1, 8, 8], strides = [1, 1, 1, 1]} : vector<2x4x8x8xf32> to vector<2x1x8x8xf32>
    %203 = vector.shape_cast %202 : vector<2x1x8x8xf32> to vector<2x8x8xf32>
    %204 = tpu.concatenate %197, %199, %201, %203 in 2 : vector<2x8x8xf32>, vector<2x8x8xf32>, vector<2x8x8xf32>, vector<2x8x8xf32> -> vector<2x8x32xf32>
    %205 = vector.shape_cast %204 : vector<2x8x32xf32> to vector<16x32xf32>
    %c0_75 = arith.constant 0 : index
    %c0_76 = arith.constant 0 : index
    %c0_77 = arith.constant 0 : index
    %206 = vector.load %arg20[%c0_75, %c0_76, %c0_77] : memref<1x32x32xf32, #tpu.memory_space<vmem>>, vector<1x32x32xf32>
    %207 = vector.shape_cast %206 : vector<1x32x32xf32> to vector<32x32xf32>
    %cst_78 = arith.constant dense<0.000000e+00> : vector<16x32xf32>
    %208 = tpu.matmul %205, %207, %cst_78 {dimension_numbers = #tpu.dot_dimension_numbers<[1], [0], [0], [1], [0, 0, 1, 1], [], []>} : vector<16x32xf32>, vector<32x32xf32>, vector<16x32xf32> -> vector<16x32xf32>
    %c0_79 = arith.constant 0 : index
    %c0_80 = arith.constant 0 : index
    %c0_81 = arith.constant 0 : index
    %209 = vector.load %arg21[%c0_79, %c0_80, %c0_81] : memref<1x1x32xf32, #tpu.memory_space<vmem>>, vector<1x1x32xf32>
    %210 = vector.shape_cast %209 : vector<1x1x32xf32> to vector<1x32xf32>
    %211 = vector.broadcast %210 : vector<1x32xf32> to vector<16x32xf32>
    %212 = arith.addf %208, %211 : vector<16x32xf32>
    %213 = vector.shape_cast %212 : vector<16x32xf32> to vector<2x8x32xf32>
    %214 = arith.addf %213, %123 : vector<2x8x32xf32>
    %c0_82 = arith.constant 0 : index
    %c0_83 = arith.constant 0 : index
    %c0_84 = arith.constant 0 : index
    %215 = vector.load %arg22[%c0_82, %c0_83, %c0_84] : memref<1x1x32xf32, #tpu.memory_space<vmem>>, vector<1x1x32xf32>
    %216 = vector.shape_cast %215 : vector<1x1x32xf32> to vector<1x32xf32>
    %c0_85 = arith.constant 0 : index
    %c0_86 = arith.constant 0 : index
    %c0_87 = arith.constant 0 : index
    %217 = vector.load %arg23[%c0_85, %c0_86, %c0_87] : memref<1x1x32xf32, #tpu.memory_space<vmem>>, vector<1x1x32xf32>
    %218 = vector.shape_cast %217 : vector<1x1x32xf32> to vector<1x32xf32>
    %cst_88 = arith.constant dense<0.000000e+00> : vector<2x8xf32>
    %219 = vector.multi_reduction <add>, %214, %cst_88 [2] : vector<2x8x32xf32> to vector<2x8xf32>
    %220 = vector.shape_cast %219 : vector<2x8xf32> to vector<2x8x1xf32>
    %cst_89 = arith.constant 3.200000e+01 : f32
    %221 = vector.broadcast %cst_89 : f32 to vector<2x8x1xf32>
    %222 = arith.divf %220, %221 : vector<2x8x1xf32>
    %223 = vector.broadcast %222 : vector<2x8x1xf32> to vector<2x8x32xf32>
    %224 = arith.subf %214, %223 : vector<2x8x32xf32>
    %225 = arith.mulf %224, %224 : vector<2x8x32xf32>
    %cst_90 = arith.constant dense<0.000000e+00> : vector<2x8xf32>
    %226 = vector.multi_reduction <add>, %225, %cst_90 [2] : vector<2x8x32xf32> to vector<2x8xf32>
    %227 = vector.shape_cast %226 : vector<2x8xf32> to vector<2x8x1xf32>
    %cst_91 = arith.constant 3.200000e+01 : f32
    %228 = vector.broadcast %cst_91 : f32 to vector<2x8x1xf32>
    %229 = arith.divf %227, %228 : vector<2x8x1xf32>
    %230 = vector.broadcast %222 : vector<2x8x1xf32> to vector<2x8x32xf32>
    %231 = arith.subf %214, %230 : vector<2x8x32xf32>
    %cst_92 = arith.constant 9.99999974E-6 : f32
    %232 = vector.broadcast %cst_92 : f32 to vector<2x8x1xf32>
    %233 = arith.addf %229, %232 : vector<2x8x1xf32>
    %234 = math.rsqrt %233 : vector<2x8x1xf32>
    %235 = vector.broadcast %234 : vector<2x8x1xf32> to vector<2x8x32xf32>
    %236 = arith.mulf %231, %235 : vector<2x8x32xf32>
    %237 = vector.shape_cast %216 : vector<1x32xf32> to vector<1x1x32xf32>
    %238 = vector.broadcast %237 : vector<1x1x32xf32> to vector<2x8x32xf32>
    %239 = arith.mulf %236, %238 : vector<2x8x32xf32>
    %240 = vector.shape_cast %218 : vector<1x32xf32> to vector<1x1x32xf32>
    %241 = vector.broadcast %240 : vector<1x1x32xf32> to vector<2x8x32xf32>
    %242 = arith.addf %239, %241 : vector<2x8x32xf32>
    %243 = vector.shape_cast %242 : vector<2x8x32xf32> to vector<16x32xf32>
    %c0_93 = arith.constant 0 : index
    %c0_94 = arith.constant 0 : index
    %c0_95 = arith.constant 0 : index
    %244 = vector.load %arg24[%c0_93, %c0_94, %c0_95] : memref<1x32x64xf32, #tpu.memory_space<vmem>>, vector<1x32x64xf32>
    %245 = vector.shape_cast %244 : vector<1x32x64xf32> to vector<32x64xf32>
    %cst_96 = arith.constant dense<0.000000e+00> : vector<16x64xf32>
    %246 = tpu.matmul %243, %245, %cst_96 {dimension_numbers = #tpu.dot_dimension_numbers<[1], [0], [0], [1], [0, 0, 1, 1], [], []>} : vector<16x32xf32>, vector<32x64xf32>, vector<16x64xf32> -> vector<16x64xf32>
    %c0_97 = arith.constant 0 : index
    %c0_98 = arith.constant 0 : index
    %c0_99 = arith.constant 0 : index
    %247 = vector.load %arg25[%c0_97, %c0_98, %c0_99] : memref<1x1x64xf32, #tpu.memory_space<vmem>>, vector<1x1x64xf32>
    %248 = vector.shape_cast %247 : vector<1x1x64xf32> to vector<1x64xf32>
    %249 = vector.broadcast %248 : vector<1x64xf32> to vector<16x64xf32>
    %250 = arith.addf %246, %249 : vector<16x64xf32>
    %251 = vector.shape_cast %250 : vector<16x64xf32> to vector<2x8x64xf32>
    %cst_100 = arith.constant 0.000000e+00 : f32
    %252 = vector.broadcast %cst_100 : f32 to vector<2x8x64xf32>
    %253 = arith.maximumf %251, %252 : vector<2x8x64xf32>
    %254 = vector.shape_cast %253 : vector<2x8x64xf32> to vector<16x64xf32>
    %c0_101 = arith.constant 0 : index
    %c0_102 = arith.constant 0 : index
    %c0_103 = arith.constant 0 : index
    %255 = vector.load %arg26[%c0_101, %c0_102, %c0_103] : memref<1x64x32xf32, #tpu.memory_space<vmem>>, vector<1x64x32xf32>
    %256 = vector.shape_cast %255 : vector<1x64x32xf32> to vector<64x32xf32>
    %cst_104 = arith.constant dense<0.000000e+00> : vector<16x32xf32>
    %257 = tpu.matmul %254, %256, %cst_104 {dimension_numbers = #tpu.dot_dimension_numbers<[1], [0], [0], [1], [0, 0, 1, 1], [], []>} : vector<16x64xf32>, vector<64x32xf32>, vector<16x32xf32> -> vector<16x32xf32>
    %c0_105 = arith.constant 0 : index
    %c0_106 = arith.constant 0 : index
    %c0_107 = arith.constant 0 : index
    %258 = vector.load %arg27[%c0_105, %c0_106, %c0_107] : memref<1x1x32xf32, #tpu.memory_space<vmem>>, vector<1x1x32xf32>
    %259 = vector.shape_cast %258 : vector<1x1x32xf32> to vector<1x32xf32>
    %260 = vector.broadcast %259 : vector<1x32xf32> to vector<16x32xf32>
    %261 = arith.addf %257, %260 : vector<16x32xf32>
    %262 = vector.shape_cast %261 : vector<16x32xf32> to vector<2x8x32xf32>
    %263 = arith.addf %262, %242 : vector<2x8x32xf32>
    %c0_108 = arith.constant 0 : index
    %c0_109 = arith.constant 0 : index
    %c0_110 = arith.constant 0 : index
    %264 = vector.load %arg28[%c0_108, %c0_109, %c0_110] : memref<1x1x32xf32, #tpu.memory_space<vmem>>, vector<1x1x32xf32>
    %265 = vector.shape_cast %264 : vector<1x1x32xf32> to vector<1x32xf32>
    %c0_111 = arith.constant 0 : index
    %c0_112 = arith.constant 0 : index
    %c0_113 = arith.constant 0 : index
    %266 = vector.load %arg29[%c0_111, %c0_112, %c0_113] : memref<1x1x32xf32, #tpu.memory_space<vmem>>, vector<1x1x32xf32>
    %267 = vector.shape_cast %266 : vector<1x1x32xf32> to vector<1x32xf32>
    %cst_114 = arith.constant dense<0.000000e+00> : vector<2x8xf32>
    %268 = vector.multi_reduction <add>, %263, %cst_114 [2] : vector<2x8x32xf32> to vector<2x8xf32>
    %269 = vector.shape_cast %268 : vector<2x8xf32> to vector<2x8x1xf32>
    %cst_115 = arith.constant 3.200000e+01 : f32
    %270 = vector.broadcast %cst_115 : f32 to vector<2x8x1xf32>
    %271 = arith.divf %269, %270 : vector<2x8x1xf32>
    %272 = vector.broadcast %271 : vector<2x8x1xf32> to vector<2x8x32xf32>
    %273 = arith.subf %263, %272 : vector<2x8x32xf32>
    %274 = arith.mulf %273, %273 : vector<2x8x32xf32>
    %cst_116 = arith.constant dense<0.000000e+00> : vector<2x8xf32>
    %275 = vector.multi_reduction <add>, %274, %cst_116 [2] : vector<2x8x32xf32> to vector<2x8xf32>
    %276 = vector.shape_cast %275 : vector<2x8xf32> to vector<2x8x1xf32>
    %cst_117 = arith.constant 3.200000e+01 : f32
    %277 = vector.broadcast %cst_117 : f32 to vector<2x8x1xf32>
    %278 = arith.divf %276, %277 : vector<2x8x1xf32>
    %279 = vector.broadcast %271 : vector<2x8x1xf32> to vector<2x8x32xf32>
    %280 = arith.subf %263, %279 : vector<2x8x32xf32>
    %cst_118 = arith.constant 9.99999974E-6 : f32
    %281 = vector.broadcast %cst_118 : f32 to vector<2x8x1xf32>
    %282 = arith.addf %278, %281 : vector<2x8x1xf32>
    %283 = math.rsqrt %282 : vector<2x8x1xf32>
    %284 = vector.broadcast %283 : vector<2x8x1xf32> to vector<2x8x32xf32>
    %285 = arith.mulf %280, %284 : vector<2x8x32xf32>
    %286 = vector.shape_cast %265 : vector<1x32xf32> to vector<1x1x32xf32>
    %287 = vector.broadcast %286 : vector<1x1x32xf32> to vector<2x8x32xf32>
    %288 = arith.mulf %285, %287 : vector<2x8x32xf32>
    %289 = vector.shape_cast %267 : vector<1x32xf32> to vector<1x1x32xf32>
    %290 = vector.broadcast %289 : vector<1x1x32xf32> to vector<2x8x32xf32>
    %291 = arith.addf %288, %290 : vector<2x8x32xf32>
    %c0_119 = arith.constant 0 : index
    %c0_120 = arith.constant 0 : index
    %c0_121 = arith.constant 0 : index
    %292 = vector.load %arg33[%c0_119, %c0_120, %c0_121] : memref<2x8x32xf32, #tpu.memory_space<vmem>>, vector<2x8x32xf32>
    tpu.vector_store %arg33[%c0_119, %c0_120, %c0_121], %291 {strides = array<i32>} : memref<2x8x32xf32, #tpu.memory_space<vmem>>, vector<2x8x32xf32>,
    %c0_122 = arith.constant 0 : index
    %c0_123 = arith.constant 0 : index
    %c0_124 = arith.constant 0 : index
    %293 = vector.load %arg30[%c0_122, %c0_123, %c0_124] : memref<2x8x32xf32, #tpu.memory_space<vmem>>, vector<2x8x32xf32>
    tpu.vector_store %arg30[%c0_122, %c0_123, %c0_124], %291 {strides = array<i32>} : memref<2x8x32xf32, #tpu.memory_space<vmem>>, vector<2x8x32xf32>,
    %c0_125 = arith.constant 0 : index
    %c0_126 = arith.constant 0 : index
    %c0_127 = arith.constant 0 : index
    %c0_128 = arith.constant 0 : index
    %294 = vector.load %arg31[%c0_125, %c0_126, %c0_127, %c0_128] : memref<1x8x8x8xf32, #tpu.memory_space<vmem>>, vector<1x8x8x8xf32>
    %295 = vector.shape_cast %294 : vector<1x8x8x8xf32> to vector<8x8x8xf32>
    %296 = vector.shape_cast %74 : vector<8x8x8xf32> to vector<1x8x8x8xf32>
    tpu.vector_store %arg31[%c0_125, %c0_126, %c0_127, %c0_128], %296 {strides = array<i32>} : memref<1x8x8x8xf32, #tpu.memory_space<vmem>>, vector<1x8x8x8xf32>,
    %c0_129 = arith.constant 0 : index
    %c0_130 = arith.constant 0 : index
    %c0_131 = arith.constant 0 : index
    %c0_132 = arith.constant 0 : index
    %297 = vector.load %arg32[%c0_129, %c0_130, %c0_131, %c0_132] : memref<1x8x8x8xf32, #tpu.memory_space<vmem>>, vector<1x8x8x8xf32>
    %298 = vector.shape_cast %297 : vector<1x8x8x8xf32> to vector<8x8x8xf32>
    %299 = vector.shape_cast %193 : vector<8x8x8xf32> to vector<1x8x8x8xf32>
    tpu.vector_store %arg32[%c0_129, %c0_130, %c0_131, %c0_132], %299 {strides = array<i32>} : memref<1x8x8x8xf32, #tpu.memory_space<vmem>>, vector<1x8x8x8xf32>,
    return
  }
  func.func @transform_0(%arg0: i32) -> (i32, i32, i32) {
    %c0_i32 = arith.constant 0 : i32
    %c0_i32_0 = arith.constant 0 : i32
    %c0_i32_1 = arith.constant 0 : i32
    %c0_i32_2 = arith.constant 0 : i32
    return %c0_i32, %c0_i32_0, %c0_i32_1 : i32, i32, i32
  }
  func.func @transform_1(%arg0: i32) -> (i32, i32, i32) {
    %c0_i32 = arith.constant 0 : i32
    %c0_i32_0 = arith.constant 0 : i32
    %c0_i32_1 = arith.constant 0 : i32
    %c0_i32_2 = arith.constant 0 : i32
    return %c0_i32, %c0_i32_0, %c0_i32_1 : i32, i32, i32
  }
  func.func @transform_2(%arg0: i32) -> (i32, i32, i32) {
    %c0_i32 = arith.constant 0 : i32
    %c0_i32_0 = arith.constant 0 : i32
    %c0_i32_1 = arith.constant 0 : i32
    %c0_i32_2 = arith.constant 0 : i32
    return %c0_i32, %c0_i32_0, %c0_i32_1 : i32, i32, i32
  }
  func.func @transform_3(%arg0: i32) -> (i32, i32, i32) {
    %c0_i32 = arith.constant 0 : i32
    %c0_i32_0 = arith.constant 0 : i32
    %c0_i32_1 = arith.constant 0 : i32
    return %arg0, %c0_i32, %c0_i32_0 : i32, i32, i32
  }
  func.func @transform_4(%arg0: i32) -> (i32, i32, i32) {
    %c0_i32 = arith.constant 0 : i32
    %c0_i32_0 = arith.constant 0 : i32
    %c0_i32_1 = arith.constant 0 : i32
    return %arg0, %c0_i32, %c0_i32_0 : i32, i32, i32
  }
  func.func @transform_5(%arg0: i32) -> (i32, i32, i32) {
    %c0_i32 = arith.constant 0 : i32
    %c0_i32_0 = arith.constant 0 : i32
    %c0_i32_1 = arith.constant 0 : i32
    return %arg0, %c0_i32, %c0_i32_0 : i32, i32, i32
  }
  func.func @transform_6(%arg0: i32) -> (i32, i32, i32) {
    %c0_i32 = arith.constant 0 : i32
    %c0_i32_0 = arith.constant 0 : i32
    %c0_i32_1 = arith.constant 0 : i32
    return %arg0, %c0_i32, %c0_i32_0 : i32, i32, i32
  }
  func.func @transform_7(%arg0: i32) -> (i32, i32, i32) {
    %c0_i32 = arith.constant 0 : i32
    %c0_i32_0 = arith.constant 0 : i32
    %c0_i32_1 = arith.constant 0 : i32
    return %arg0, %c0_i32, %c0_i32_0 : i32, i32, i32
  }
  func.func @transform_8(%arg0: i32) -> (i32, i32, i32) {
    %c0_i32 = arith.constant 0 : i32
    %c0_i32_0 = arith.constant 0 : i32
    %c0_i32_1 = arith.constant 0 : i32
    return %arg0, %c0_i32, %c0_i32_0 : i32, i32, i32
  }
  func.func @transform_9(%arg0: i32) -> (i32, i32, i32) {
    %c0_i32 = arith.constant 0 : i32
    %c0_i32_0 = arith.constant 0 : i32
    %c0_i32_1 = arith.constant 0 : i32
    return %arg0, %c0_i32, %c0_i32_0 : i32, i32, i32
  }
  func.func @transform_10(%arg0: i32) -> (i32, i32, i32) {
    %c0_i32 = arith.constant 0 : i32
    %c0_i32_0 = arith.constant 0 : i32
    %c0_i32_1 = arith.constant 0 : i32
    return %arg0, %c0_i32, %c0_i32_0 : i32, i32, i32
  }
  func.func @transform_11(%arg0: i32) -> (i32, i32, i32) {
    %c0_i32 = arith.constant 0 : i32
    %c0_i32_0 = arith.constant 0 : i32
    %c0_i32_1 = arith.constant 0 : i32
    return %arg0, %c0_i32, %c0_i32_0 : i32, i32, i32
  }
  func.func @transform_12(%arg0: i32) -> (i32, i32, i32) {
    %c0_i32 = arith.constant 0 : i32
    %c0_i32_0 = arith.constant 0 : i32
    %c0_i32_1 = arith.constant 0 : i32
    return %arg0, %c0_i32, %c0_i32_0 : i32, i32, i32
  }
  func.func @transform_13(%arg0: i32) -> (i32, i32, i32) {
    %c0_i32 = arith.constant 0 : i32
    %c0_i32_0 = arith.constant 0 : i32
    %c0_i32_1 = arith.constant 0 : i32
    return %arg0, %c0_i32, %c0_i32_0 : i32, i32, i32
  }
  func.func @transform_14(%arg0: i32) -> (i32, i32, i32) {
    %c0_i32 = arith.constant 0 : i32
    %c0_i32_0 = arith.constant 0 : i32
    %c0_i32_1 = arith.constant 0 : i32
    return %arg0, %c0_i32, %c0_i32_0 : i32, i32, i32
  }
  func.func @transform_15(%arg0: i32) -> (i32, i32, i32) {
    %c0_i32 = arith.constant 0 : i32
    %c0_i32_0 = arith.constant 0 : i32
    %c0_i32_1 = arith.constant 0 : i32
    return %arg0, %c0_i32, %c0_i32_0 : i32, i32, i32
  }
  func.func @transform_16(%arg0: i32) -> (i32, i32, i32) {
    %c0_i32 = arith.constant 0 : i32
    %c0_i32_0 = arith.constant 0 : i32
    %c0_i32_1 = arith.constant 0 : i32
    return %arg0, %c0_i32, %c0_i32_0 : i32, i32, i32
  }
  func.func @transform_17(%arg0: i32) -> (i32, i32, i32) {
    %c0_i32 = arith.constant 0 : i32
    %c0_i32_0 = arith.constant 0 : i32
    %c0_i32_1 = arith.constant 0 : i32
    return %arg0, %c0_i32, %c0_i32_0 : i32, i32, i32
  }
  func.func @transform_18(%arg0: i32) -> (i32, i32, i32) {
    %c0_i32 = arith.constant 0 : i32
    %c0_i32_0 = arith.constant 0 : i32
    %c0_i32_1 = arith.constant 0 : i32
    return %arg0, %c0_i32, %c0_i32_0 : i32, i32, i32
  }
  func.func @transform_19(%arg0: i32) -> (i32, i32, i32) {
    %c0_i32 = arith.constant 0 : i32
    %c0_i32_0 = arith.constant 0 : i32
    %c0_i32_1 = arith.constant 0 : i32
    return %arg0, %c0_i32, %c0_i32_0 : i32, i32, i32
  }
  func.func @transform_20(%arg0: i32) -> (i32, i32, i32) {
    %c0_i32 = arith.constant 0 : i32
    %c0_i32_0 = arith.constant 0 : i32
    %c0_i32_1 = arith.constant 0 : i32
    return %arg0, %c0_i32, %c0_i32_0 : i32, i32, i32
  }
  func.func @transform_21(%arg0: i32) -> (i32, i32, i32) {
    %c0_i32 = arith.constant 0 : i32
    %c0_i32_0 = arith.constant 0 : i32
    %c0_i32_1 = arith.constant 0 : i32
    return %arg0, %c0_i32, %c0_i32_0 : i32, i32, i32
  }
  func.func @transform_22(%arg0: i32) -> (i32, i32, i32) {
    %c0_i32 = arith.constant 0 : i32
    %c0_i32_0 = arith.constant 0 : i32
    %c0_i32_1 = arith.constant 0 : i32
    return %arg0, %c0_i32, %c0_i32_0 : i32, i32, i32
  }
  func.func @transform_23(%arg0: i32) -> (i32, i32, i32) {
    %c0_i32 = arith.constant 0 : i32
    %c0_i32_0 = arith.constant 0 : i32
    %c0_i32_1 = arith.constant 0 : i32
    return %arg0, %c0_i32, %c0_i32_0 : i32, i32, i32
  }
  func.func @transform_24(%arg0: i32) -> (i32, i32, i32) {
    %c0_i32 = arith.constant 0 : i32
    %c0_i32_0 = arith.constant 0 : i32
    %c0_i32_1 = arith.constant 0 : i32
    return %arg0, %c0_i32, %c0_i32_0 : i32, i32, i32
  }
  func.func @transform_25(%arg0: i32) -> (i32, i32, i32) {
    %c0_i32 = arith.constant 0 : i32
    %c0_i32_0 = arith.constant 0 : i32
    %c0_i32_1 = arith.constant 0 : i32
    return %arg0, %c0_i32, %c0_i32_0 : i32, i32, i32
  }
  func.func @transform_26(%arg0: i32) -> (i32, i32, i32) {
    %c0_i32 = arith.constant 0 : i32
    %c0_i32_0 = arith.constant 0 : i32
    %c0_i32_1 = arith.constant 0 : i32
    return %arg0, %c0_i32, %c0_i32_0 : i32, i32, i32
  }
  func.func @transform_27(%arg0: i32) -> (i32, i32, i32) {
    %c0_i32 = arith.constant 0 : i32
    %c0_i32_0 = arith.constant 0 : i32
    %c0_i32_1 = arith.constant 0 : i32
    return %arg0, %c0_i32, %c0_i32_0 : i32, i32, i32
  }
  func.func @transform_28(%arg0: i32) -> (i32, i32, i32) {
    %c0_i32 = arith.constant 0 : i32
    %c0_i32_0 = arith.constant 0 : i32
    %c0_i32_1 = arith.constant 0 : i32
    return %arg0, %c0_i32, %c0_i32_0 : i32, i32, i32
  }
  func.func @transform_29(%arg0: i32) -> (i32, i32, i32) {
    %c0_i32 = arith.constant 0 : i32
    %c0_i32_0 = arith.constant 0 : i32
    %c0_i32_1 = arith.constant 0 : i32
    %c0_i32_2 = arith.constant 0 : i32
    return %c0_i32, %c0_i32_0, %c0_i32_1 : i32, i32, i32
  }
  func.func @transform_30(%arg0: i32) -> (i32, i32, i32, i32) {
    %c0_i32 = arith.constant 0 : i32
    %c0_i32_0 = arith.constant 0 : i32
    %c0_i32_1 = arith.constant 0 : i32
    %c0_i32_2 = arith.constant 0 : i32
    return %arg0, %c0_i32, %c0_i32_0, %c0_i32_1 : i32, i32, i32, i32
  }
  func.func @transform_31(%arg0: i32) -> (i32, i32, i32, i32) {
    %c0_i32 = arith.constant 0 : i32
    %c0_i32_0 = arith.constant 0 : i32
    %c0_i32_1 = arith.constant 0 : i32
    %c0_i32_2 = arith.constant 0 : i32
    return %arg0, %c0_i32, %c0_i32_0, %c0_i32_1 : i32, i32, i32, i32
  }
}

</mosaic_0001>

<bundles_post_ra>
// kernel: tpu_custom_call.1
= control target key start
LH: loop header
LB: loop body
LE: loop exit
PB: predicated region body
PF: predicated region fallthrough
CT: control target
= control target key end

     0   :  { %s7116_s6 = smov 1   ;;  %s7117_s10 = smov 2   ;;  %s8314_s0 = inlined_call_operand.smem [shape: u32[32], index: -1, kind: input, shape index: {}] }
   0x1   :  { %s7178_s5 = sld [smem:[%s8314_s0]]   ;;  %s7118_s14 = smov 3  }
   0x2   :  { %s7183_s9 = sld [smem:[%s8314_s0 + %s7116_s6]]   ;;  %s7119_s18 = smov 4  }
   0x3   :  { %s7188_s13 = sld [smem:[%s8314_s0 + %s7117_s10]]   ;;  %s7120_s22 = smov 5  }
   0x4   :  { %s7193_s17 = sld [smem:[%s8314_s0 + %s7118_s14]]   ;;  %s7121_s26 = smov 6  }
   0x5   :  { %s7198_s21 = sld [smem:[%s8314_s0 + %s7119_s18]]   ;;  %s7122_s30 = smov 7  }
   0x6   :  { %s7203_s25 = sld [smem:[%s8314_s0 + %s7120_s22]]   ;;  %s7123_s4 = smov 8  }
   0x7   :  { %8363 = sst [smem:[#allocation29_spill]] %s7178_s5  ;;  %s7124_s10 = smov 9  }
   0x8   :  { %8364 = sst [smem:[#allocation30_spill]] %s7183_s9  ;;  %s7125_s15 = smov 10  }
   0x9   :  { %8365 = sst [smem:[#allocation31_spill]] %s7188_s13  ;;  %s7126_s20 = smov 11  }
   0xa   :  { %8366 = sst [smem:[#allocation32_spill]] %s7193_s17  ;;  %s7128_s1 = smov 13  }
   0xb   :  { %8367 = sst [smem:[#allocation33_spill]] %s7198_s21  ;;  %s7129_s7 = smov 14  }
   0xc   :  { %8368 = sst [smem:[#allocation34_spill]] %s7203_s25  ;;  %s7131_s22 = smov 16  }
   0xd   :  { %s7208_s29 = sld [smem:[%s8314_s0 + %s7121_s26]]   ;;  %s7127_s26 = smov 12  }
   0xe   :  { %s7213_s3 = sld [smem:[%s8314_s0 + %s7122_s30]]   ;;  %s7132_s28 = smov 17  }
   0xf   :  { %s7218_s8 = sld [smem:[%s8314_s0 + %s7123_s4]]  }
  0x10   :  { %s7223_s14 = sld [smem:[%s8314_s0 + %s7124_s10]]  }
  0x11   :  { %s7228_s19 = sld [smem:[%s8314_s0 + %s7125_s15]]   ;;  %s7130_s15 = smov 15  }
  0x12   :  { %s7233_s24 = sld [smem:[%s8314_s0 + %s7126_s20]]  }
  0x13   :  { %8369 = sst [smem:[#allocation35_spill]] %s7208_s29 }
  0x14   :  { %8370 = sst [smem:[#allocation36_spill]] %s7213_s3 }
  0x15   :  { %8371 = sst [smem:[#allocation37_spill]] %s7218_s8 }
  0x16   :  { %8372 = sst [smem:[#allocation38_spill]] %s7223_s14 }
  0x17   :  { %8373 = sst [smem:[#allocation39_spill]] %s7228_s19 }
  0x18   :  { %8374 = sst [smem:[#allocation40_spill]] %s7233_s24 }
  0x19   :  { %s7238_s30 = sld [smem:[%s8314_s0 + %s7127_s26]]  }
  0x1a   :  { %s7243_s6 = sld [smem:[%s8314_s0 + %s7128_s1]]  }
  0x1b   :  { %s7248_s12 = sld [smem:[%s8314_s0 + %s7129_s7]]   ;;  %s7133_s7 = smov 18  }
  0x1c   :  { %s7253_s20 = sld [smem:[%s8314_s0 + %s7130_s15]]   ;;  %s7134_s15 = smov 19  }
  0x1d   :  { %s7258_s27 = sld [smem:[%s8314_s0 + %s7131_s22]]   ;;  %s7135_s22 = smov 20  }
  0x1e   :  { %s7263_s4 = sld [smem:[%s8314_s0 + %s7132_s28]]   ;;  %s7136_s28 = smov 21  }
  0x1f   :  { %8375 = sst [smem:[#allocation41_spill]] %s7238_s30 }
  0x20   :  { %8376 = sst [smem:[#allocation42_spill]] %s7243_s6 }
  0x21   :  { %8377 = sst [smem:[#allocation43_spill]] %s7248_s12 }
  0x22   :  { %8378 = sst [smem:[#allocation44_spill]] %s7253_s20 }
  0x23   :  { %8379 = sst [smem:[#allocation45_spill]] %s7258_s27 }
  0x24   :  { %8380 = sst [smem:[#allocation46_spill]] %s7263_s4 }
  0x25   :  { %s7268_s12 = sld [smem:[%s8314_s0 + %s7133_s7]]   ;;  %s7137_s7 = smov 22  }
  0x26   :  { %s7273_s30 = sld [smem:[%s8314_s0 + %s7134_s15]]   ;;  %s7138_s15 = smov 23  }
  0x27   :  { %s7278_s27 = sld [smem:[%s8314_s0 + %s7135_s22]]   ;;  %s7139_s22 = smov 24  }
  0x28   :  { %s7283_s24 = sld [smem:[%s8314_s0 + %s7136_s28]]   ;;  %s7140_s28 = smov 25  }
  0x29   :  { %s7293_s19 = sld [smem:[%s8314_s0 + %s7138_s15]]   ;;  %s7142_s15 = smov 27  }
  0x2a   :  { %s7313_s8 = sld [smem:[%s8314_s0 + %s7142_s15]]   ;;  %s7146_s15 = smov 31  }
  0x2b   :  { %8381 = sst [smem:[#allocation47_spill]] %s7268_s12 }
  0x2c   :  { %8382 = sst [smem:[#allocation48_spill]] %s7273_s30 }
  0x2d   :  { %8383 = sst [smem:[#allocation49_spill]] %s7278_s27 }
  0x2e   :  { %8384 = sst [smem:[#allocation50_spill]] %s7283_s24 }
  0x2f   :  { %s7288_s12 = sld [smem:[%s8314_s0 + %s7137_s7]]   ;;  %s7141_s7 = smov 26  }
  0x30   :  { %8386 = sst [smem:[#allocation52_spill]] %s7293_s19 }
  0x31   :  { %s7298_s27 = sld [smem:[%s8314_s0 + %s7139_s22]]   ;;  %s7143_s22 = smov 28  }
  0x32   :  { %s7303_s24 = sld [smem:[%s8314_s0 + %s7140_s28]]   ;;  %s7144_s28 = smov 29  }
  0x33   :  { %8390 = sst [smem:[#allocation56_spill]] %s7313_s8 }
  0x34   :  { %s7333_s8 = sld [smem:[%s8314_s0 + %s7146_s15]]  }
  0x35   :  { %8385 = sst [smem:[#allocation51_spill]] %s7288_s12 }
  0x36   :  { %s7308_s12 = sld [smem:[%s8314_s0 + %s7141_s7]]   ;;  %s7145_s7 = smov 30  }
  0x37   :  { %8387 = sst [smem:[#allocation53_spill]] %s7298_s27 }
  0x38   :  { %8388 = sst [smem:[#allocation54_spill]] %s7303_s24 }
  0x39   :  { %s7318_s27 = sld [smem:[%s8314_s0 + %s7143_s22]]  }
  0x3a   :  { %s7323_s24 = sld [smem:[%s8314_s0 + %s7144_s28]]  }
  0x3b   :  { %8394 = sst [smem:[#allocation60_spill]] %s7333_s8 }
  0x3c   :  { %8389 = sst [smem:[#allocation55_spill]] %s7308_s12 }
  0x3d   :  { %s7328_s12 = sld [smem:[%s8314_s0 + %s7145_s7]]  }
  0x3f   :  { %8391 = sst [smem:[#allocation57_spill]] %s7318_s27 }
  0x40   :  { %8392 = sst [smem:[#allocation58_spill]] %s7323_s24 }
  0x43   :  { %8393 = sst [smem:[#allocation59_spill]] %s7328_s12 }
  0x44   :  { %69 = vsyncpa [#allocation4], 0 }
  0x45   :  { %70 = vsyncpa [#allocation7], 0 }
  0x46   :  { %71 = vsyncpa [#allocation10], 0 }
  0x47   :  { %73 = vsyncpa [#allocation10 + $0x1], 0 }
  0x48   :  { %74 = vsyncpa [#allocation13], 0 }
  0x49   :  { %76 = vsyncpa [#allocation13 + $0x1], 0 }
  0x4a   :  { %77 = vsyncpa [#allocation16], 0 }
  0x4b   :  { %79 = vsyncpa [#allocation16 + $0x1], 0 }
  0x4c   :  { %80 = vsyncpa [#allocation5], 0 }
  0x4d   :  { %81 = vsyncpa [#allocation20], 0 }
  0x4e   :  { %83 = vsyncpa [#allocation20 + $0x1], 0  ;;  %s7335_s22 = smov 0   ;;  %s7337_s23 = smov 0  }
  0x4f   :  { %s7339_s26 = smov 0   ;;  %s7341_s28 = smov 0  }
  0x50 LB: > { %s8395_s30 = sld [smem:[#allocation48_spill]]  ;;  %s8396_s20 = sld [smem:[#allocation44_spill]]  ;;  %s7102_s22 = sphi %s7335_s22, %s8514_s22   ;;  %s7114_s28 = sphi %s7341_s28, %s8513_s28   ;;  %s7110_s26 = sphi %s7339_s26, %s8516_s26   ;;  %s7106_s23 = sphi %s7337_s23, %s8515_s23  }
  0x51   : > { %s8397_s19 = sld [smem:[#allocation52_spill]]  ;;  %s8398_s13 = sld [smem:[#allocation31_spill]] }
  0x52   : > { %s8399_s6 = sld [smem:[#allocation42_spill]]  ;;  %s8400_s5 = sld [smem:[#allocation29_spill]] }
  0x53   : > { %s8401_s4 = sld [smem:[#allocation46_spill]]  ;;  %8404 = sst [smem:[#allocation61_spill]] %s7106_s23 }
  0x54   : > { %s8402_s14 = sld [smem:[#allocation38_spill]]  ;;  %8406 = sst [smem:[#allocation63_spill]] %s7114_s28 }
  0x55   : > { %s8403_s9 = sld [smem:[#allocation30_spill]]  ;;  %s7354_s0 = sadd.s32 4294967295, %s7114_s28  }
  0x56   : > { %8405 = sst [smem:[#allocation62_spill]] %s7110_s26  ;;  %s8316_s1 = sadd.s32 4294967294, %s7114_s28  }
  0x57   : > { %8407 = sst [smem:[#allocation64_spill]] %s7354_s0  ;;  %s7358_s2 = sadd.s32 1, %s7114_s28  }
  0x58   : > { %8408 = sst [smem:[#allocation65_spill]] %s7358_s2  ;;  %s315_s7 = sadd.s32 1, %s7110_s26 }
  0x59   : > { %s312_s10 = ssub.s32 %s7114_s28, %s7358_s2  ;;  %p322_p0 = scmp.ne.s32.totalorder %s7110_s26, %s7106_s23 }
  0x5a   : > { %p313_p1 = scmp.eq.s32.totalorder %s312_s10, 0  ;;  %p323_p2 = scmp.eq.s32.totalorder %s7114_s28, 0 }
  0x5b   : > { %p328_p3 = scmp.ne.s32.totalorder %s7106_s23, %s7102_s22  ;;  %p8315_p4 = scmp.eq.s32.totalorder %s7354_s0, 0 }
  0x5c   : > { %s7369_s11 = scalar_select %p313_p1, %s7110_s26, %s315_s7  }
  0x5d   : > { %p7371_p5 = por %p323_p2, %p322_p0  ;;  %p7377_p6 = por %p8315_p4, %p328_p3 }
  0x5e   : > { %8409 = sst [smem:[#allocation66_spill]] %s7369_s11  ;;  %p8317_p7 = scmp.eq.s32.totalorder %s7354_s0, 1 }
  0x5f   : > { %s8411_s16 = scalar_select %p7377_p6, 1, 0 }
  0x60   : > { %p873_p8 = scmp.eq.s32.totalorder %s8316_s1, 1  ;;  %p5834_p9 = scmp.ge.s32.totalorder %s7114_s28, 1 }
  0x61   : > { %p906_p10 = scmp.lt.s32.totalorder %s7114_s28, 3  ;;  %p7388_p11 = por %p8317_p7, %p322_p0 }
  0x62   : > { %p7392_p12 = por %p873_p8, %p328_p3  ;;  %s7147_s10 = smov [#allocation6]  }
  0x63   : > { %s8412_s18 = scalar_select %p7388_p11, 1, 0 }
  0x64   : > { %s8414_s22 = scalar_select %p7392_p12, 1, 0 }
  0x65   : > { %8413 = sst [smem:[#allocation67_spill]] %s8412_s18  ;;  %p7396_p13 = pnand %p5834_p9, %p906_p10 }
  0x66   : > { %8415 = sst [smem:[#allocation68_spill]] %s8414_s22  ;;  %s932_s1 = sshll.u32 %s7147_s10, 4  ;;  %s933_s1 = int_to_ptr.vmem [resolvable:$true] %s932_s1 }
  0x67   : > { %s8416_s7 = scalar_select %p7396_p13, 1, 0 }
  0x68   : > { %p6510_p4 = pneg %p7396_p13  ;;  %p6549_p0 = scmp.lt.s32.totalorder %s7114_s28, 2 }
  0x69   : > { %p8417_p7 = scmp.eq.s32.totalorder %s7354_s0, 0  ;;  %s7418_s22 = sand.u32 1, %s7114_s28  }
  0x6a   : > { %p7413_p3 = pnand %p6549_p0, %p7371_p5  ;;  %s6710_s24 = scalar_lea.hbm %s8403_s9, 128 }
  0x6b   : > { %p7407_p11 = pnand %p6510_p4, %p8417_p7  ;;  %p6711_p8 = scmp.ne.s32.totalorder %s8403_s9, %s6710_s24 }
  0x6c   : > { %s8419_s2 = scalar_select %p7413_p3, 1, 0 }
  0x6d   : > { %s8418_s11 = scalar_select %p7407_p11, 1, 0 }
  0x6e   : > { %p7424_p9 = pneg %p7407_p11  ;;  %p6717_p10 = scmp.lt.u32.totalorder %s6710_s24, %s8403_s9 }
  0x70   : > { %s8420_s10 = scalar_select %p7424_p9, 1, 0 }
  0x71   : > { %p6713_p4 = pnand %p7424_p9, %p6711_p8 }
  0x73   : > { %p6714_p7 = pneg %p6713_p4 }
  0x75   : > { %p6719_p2 = pnand %p6717_p10, %p6714_p7 }
  0x77   : > { %6722 = shalt.err (!%p6719_p2)
}
  0x78   : > { %s6723_s15 = scalar_lea.vmem %s933_s1, 128  ;;  %p6731_p12 = scmp.lt.s32.totalorder %s933_s1, %s933_s1 }
  0x79   : > { %p6724_p5 = scmp.ne.s32.totalorder %s933_s1, %s6723_s15  ;;  %p6732_p6 = scmp.lt.s32.totalorder %s6723_s15, %s6723_s15 }
  0x7b   : > { %p6726_p0 = pnand %p6724_p5, %p7424_p9  ;;  %p6733_p13 = por %p6732_p6, %p6731_p12 }
  0x7d   : > { %p6727_p1 = pneg %p6726_p0 }
  0x7f   : > { %p6734_p3 = pnand %p6733_p13, %p6727_p1 }
  0x81   : > { %6737 = shalt.err (!%p6734_p3)
}
  0x82   : > { %6516 = dma.hbm_to_vmem [thread:$0]  (!%p7407_p11), %s8403_s9, 128, %s933_s1, [#allocation7]  }
  0x83   : > { %s1000_s24 = sand.u32 1, %s7110_s26   ;;  %s7438_s8 = sshll.u32 %s7114_s28, 9 }
  0x84   : > { %s7440_s15 = sshll.u32 %s1000_s24, 5  ;;  %s7444_s18 = scalar_lea.hbm %s8402_s14, %s7438_s8 }
  0x85   : > { %s1002_s12 = scalar_lea.vmem [#allocation9], %s7440_s15  ;;  %s7451_s1 = scalar_lea.hbm %s8396_s20, %s7438_s8 }
  0x86   : > { %s1009_s27 = sshll.u32 %s1002_s12, 4  ;;  %s6738_s26 = scalar_lea.hbm %s7444_s18, 512  ;;  %s7447_s27 = int_to_ptr.vmem [resolvable:$true] %s1009_s27 }
  0x87   : > { %p6739_p6 = scmp.ne.s32.totalorder %s7444_s18, %s6738_s26  ;;  %p8421_p12 = scmp.ne.s32.totalorder %s8419_s2, 0 }
  0x88   : > { %s6743_s28 = scalar_lea.hbm %s8402_s14, 1024  ;;  %p6744_p3 = scmp.lt.u32.totalorder %s7444_s18, %s8402_s14 }
  0x89   : > { %p7458_p13 = pneg %p8421_p12  ;;  %p6745_p8 = scmp.lt.u32.totalorder %s6743_s28, %s6738_s26 }
  0x8a   : > { %p6747_p7 = scmp.lt.u32.totalorder %s6738_s26, %s7444_s18 }
  0x8b   : > { %s8422_s24 = scalar_select %p7458_p13, 1, 0 }
  0x8c   : > { %p6741_p1 = pnand %p7458_p13, %p6739_p6  ;;  %p6746_p4 = por %p6745_p8, %p6744_p3 }
  0x8e   : > { %p6742_p2 = pneg %p6741_p1  ;;  %p6748_p10 = por %p6747_p7, %p6746_p4 }
  0x90   : > { %p6749_p5 = pnand %p6748_p10, %p6742_p2 }
  0x92   : > { %6752 = shalt.err (!%p6749_p5)
}
  0x93   : > { %s6753_s12 = scalar_lea.vmem %s7447_s27, 512  ;;  %s7148_s9 = smov [#allocation9]  }
  0x94   : > { %p6754_p0 = scmp.ne.s32.totalorder %s7447_s27, %s6753_s12  ;;  %s6758_s3 = sshll.u32 %s7148_s9, 4  ;;  %s6759_s3 = int_to_ptr.vmem [resolvable:$false] %s6758_s3 }
  0x95   : > { %s6760_s29 = scalar_lea.vmem %s6759_s3, 1024  ;;  %p6761_p6 = scmp.lt.s32.totalorder %s7447_s27, %s6759_s3 }
  0x96   : > { %p6756_p11 = pnand %p6754_p0, %p7458_p13  ;;  %p6762_p1 = scmp.lt.s32.totalorder %s6760_s29, %s6753_s12 }
  0x98   : > { %p6757_p9 = pneg %p6756_p11  ;;  %p6763_p3 = por %p6762_p1, %p6761_p6 }
  0x9a   : > { %p6764_p8 = pnand %p6763_p3, %p6757_p9 }
  0x9c   : > { %6767 = shalt.err (!%p6764_p8)
}
  0x9d   : > { %s7149_s26 = smov 128   ;;  %s7150_s9 = smov 8  }
  0x9e   : > { %s8423_s29 = scalar_lea.sflag [#allocation10], %s7418_s22  ;;  %s1068_s3 = scalar_lea.vmem [#allocation12], %s7440_s15 }
  0x9f   : > { %6523 = dma.hbm_to_vmem [thread:$0]  (!%p8421_p12), %s7444_s18, 512, %s7447_s27, %s8423_s29, %s7149_s26, %s7149_s26, %s7150_s9  }
  0xa0   : > { %s1075_s28 = sshll.u32 %s1068_s3, 4  ;;  %s8339_s12 = scalar_lea.sflag [#allocation13], %s7418_s22  ;;  %s7483_s28 = int_to_ptr.vmem [resolvable:$true] %s1075_s28 }
  0xa1   : > { %s6768_s14 = scalar_lea.hbm %s7451_s1, 512  ;;  %s6773_s25 = scalar_lea.hbm %s8396_s20, 1024 }
  0xa2   : > { %p6769_p11 = scmp.ne.s32.totalorder %s7451_s1, %s6768_s14  ;;  %p6774_p4 = scmp.lt.u32.totalorder %s7451_s1, %s8396_s20 }
  0xa3   : > { %p6775_p7 = scmp.lt.u32.totalorder %s6773_s25, %s6768_s14  ;;  %p6777_p5 = scmp.lt.u32.totalorder %s6768_s14, %s7451_s1 }
  0xa4   : > { %p6771_p9 = pnand %p6769_p11, %p7458_p13 }
  0xa5   : > { %p6776_p10 = por %p6775_p7, %p6774_p4 }
  0xa6   : > { %p6772_p2 = pneg %p6771_p9 }
  0xa7   : > { %p6778_p0 = por %p6777_p5, %p6776_p10 }
  0xa9   : > { %p6779_p6 = pnand %p6778_p0, %p6772_p2 }
  0xab   : > { %6782 = shalt.err (!%p6779_p6)
}
  0xac   : > { %s6783_s27 = scalar_lea.vmem %s7483_s28, 512  ;;  %s7151_s18 = smov [#allocation12]  }
  0xad   : > { %p6784_p1 = scmp.ne.s32.totalorder %s7483_s28, %s6783_s27  ;;  %s6788_s29 = sshll.u32 %s7151_s18, 4  ;;  %s6789_s29 = int_to_ptr.vmem [resolvable:$false] %s6788_s29 }
  0xae   : > { %s6790_s3 = scalar_lea.vmem %s6789_s29, 1024  ;;  %p6791_p11 = scmp.lt.s32.totalorder %s7483_s28, %s6789_s29 }
  0xaf   : > { %p6786_p3 = pnand %p6784_p1, %p7458_p13  ;;  %p6792_p9 = scmp.lt.s32.totalorder %s6790_s3, %s6783_s27 }
  0xb1   : > { %p6787_p8 = pneg %p6786_p3  ;;  %p6793_p4 = por %p6792_p9, %p6791_p11 }
  0xb3   : > { %p6794_p7 = pnand %p6793_p4, %p6787_p8 }
  0xb5   : > { %6797 = shalt.err (!%p6794_p7)
}
  0xb6   : > { %6529 = dma.hbm_to_vmem [thread:$0]  (!%p8421_p12), %s7451_s1, 512, %s7483_s28, %s8339_s12, %s7149_s26, %s7149_s26, %s7150_s9  }
  0xb7   : > { %s7510_s25 = scalar_lea.hbm %s8395_s30, %s7438_s8  ;;  %s1122_s14 = scalar_lea.vmem [#allocation15], %s7440_s15 }
  0xb8   : > { %s1129_s27 = sshll.u32 %s1122_s14, 4  ;;  %s1119_s18 = scalar_lea.sflag [#allocation16], %s7418_s22  ;;  %s7513_s27 = int_to_ptr.vmem [resolvable:$true] %s1129_s27 }
  0xb9   : > { %s6798_s29 = scalar_lea.hbm %s7510_s25, 512  ;;  %s6803_s3 = scalar_lea.hbm %s8395_s30, 1024 }
  0xba   : > { %p6799_p2 = scmp.ne.s32.totalorder %s7510_s25, %s6798_s29  ;;  %p6804_p0 = scmp.lt.u32.totalorder %s7510_s25, %s8395_s30 }
  0xbb   : > { %p6805_p6 = scmp.lt.u32.totalorder %s6803_s3, %s6798_s29  ;;  %p6807_p3 = scmp.lt.u32.totalorder %s6798_s29, %s7510_s25 }
  0xbc   : > { %p6801_p10 = pnand %p6799_p2, %p7458_p13 }
  0xbd   : > { %p6806_p1 = por %p6805_p6, %p6804_p0 }
  0xbe   : > { %p6802_p5 = pneg %p6801_p10 }
  0xbf   : > { %p6808_p8 = por %p6807_p3, %p6806_p1 }
  0xc1   : > { %p6809_p11 = pnand %p6808_p8, %p6802_p5 }
  0xc3   : > { %6812 = shalt.err (!%p6809_p11)
}
  0xc4   : > { %s6813_s1 = scalar_lea.vmem %s7513_s27, 512  ;;  %s7152_s28 = smov [#allocation15]  }
  0xc5   : > { %p6814_p9 = scmp.ne.s32.totalorder %s7513_s27, %s6813_s1  ;;  %s6818_s14 = sshll.u32 %s7152_s28, 4  ;;  %s6819_s14 = int_to_ptr.vmem [resolvable:$false] %s6818_s14 }
  0xc6   : > { %s6820_s12 = scalar_lea.vmem %s6819_s14, 1024  ;;  %p6821_p2 = scmp.lt.s32.totalorder %s7513_s27, %s6819_s14 }
  0xc7   : > { %p6816_p4 = pnand %p6814_p9, %p7458_p13  ;;  %p6822_p10 = scmp.lt.s32.totalorder %s6820_s12, %s6813_s1 }
  0xc9   : > { %p6817_p7 = pneg %p6816_p4  ;;  %p6823_p0 = por %p6822_p10, %p6821_p2 }
  0xcb   : > { %p6824_p6 = pnand %p6823_p0, %p6817_p7 }
  0xcd   : > { %6827 = shalt.err (!%p6824_p6)
}
  0xce   : > { %6535 = dma.hbm_to_vmem [thread:$0]  (!%p8421_p12), %s7510_s25, 512, %s7513_s27, %s1119_s18, %s7149_s26, %s7149_s26, %s7150_s9  }
  0xcf   : > { %s7153_s29 = smov [#allocation3]   ;;  %s7154_s12 = smov [#allocation8]  }
  0xd0   : > { %s918_s3 = sshll.u32 %s7153_s29, 4  ;;  %s942_s1 = sshll.u32 %s7154_s12, 4  ;;  %s919_s3 = int_to_ptr.vmem [resolvable:$true] %s918_s3  ;;  %s943_s1 = int_to_ptr.vmem [resolvable:$true] %s942_s1 }
  0xd1   : > { %s6828_s28 = scalar_lea.hbm %s8400_s5, 256  ;;  %p8424_p1 = scmp.ne.s32.totalorder %s8420_s10, 0 }
  0xd2   : > { %p6829_p5 = scmp.ne.s32.totalorder %s8400_s5, %s6828_s28  ;;  %p6835_p11 = scmp.lt.u32.totalorder %s6828_s28, %s8400_s5 }
  0xd4   : > { %p6831_p3 = pnand %p6829_p5, %p8424_p1 }
  0xd6   : > { %p6832_p8 = pneg %p6831_p3 }
  0xd8   : > { %p6837_p9 = pnand %p6835_p11, %p6832_p8 }
  0xda   : > { %6840 = shalt.err (!%p6837_p9)
}
  0xdb   : > { %s6841_s14 = scalar_lea.vmem %s919_s3, 256  ;;  %p6849_p10 = scmp.lt.s32.totalorder %s919_s3, %s919_s3 }
  0xdc   : > { %p6842_p4 = scmp.ne.s32.totalorder %s919_s3, %s6841_s14  ;;  %p6850_p0 = scmp.lt.s32.totalorder %s6841_s14, %s6841_s14 }
  0xde   : > { %p6844_p7 = pnand %p6842_p4, %p8424_p1  ;;  %p6851_p6 = por %p6850_p0, %p6849_p10 }
  0xe0   : > { %p6845_p2 = pneg %p6844_p7 }
  0xe2   : > { %p6852_p12 = pnand %p6851_p6, %p6845_p2 }
  0xe4   : > { %6855 = shalt.err (!%p6852_p12)
}
  0xe5   : > { %p8425_p13 = scmp.ne.s32.totalorder %s8418_s11, 0  ;;  %s6856_s25 = scalar_lea.hbm %s8398_s13, 256 }
  0xe6   : > { %p6857_p5 = scmp.ne.s32.totalorder %s8398_s13, %s6856_s25  ;;  %p6863_p11 = scmp.lt.u32.totalorder %s6856_s25, %s8398_s13 }
  0xe7   : > { %6513 = dma.hbm_to_vmem [thread:$0]  (!%p8425_p13), %s8400_s5, 256, %s919_s3, [#allocation4], %s7149_s26, %s7149_s26, %s7150_s9  }
  0xe8   : > { %p6859_p3 = pnand %p6857_p5, %p8424_p1 }
  0xea   : > { %p6860_p8 = pneg %p6859_p3 }
  0xec   : > { %p6865_p9 = pnand %p6863_p11, %p6860_p8 }
  0xee   : > { %6868 = shalt.err (!%p6865_p9)
}
  0xef   : > { %s6869_s27 = scalar_lea.vmem %s943_s1, 256  ;;  %p6877_p2 = scmp.lt.s32.totalorder %s943_s1, %s943_s1 }
  0xf0   : > { %p6870_p12 = scmp.ne.s32.totalorder %s943_s1, %s6869_s27  ;;  %p6878_p10 = scmp.lt.s32.totalorder %s6869_s27, %s6869_s27 }
  0xf2   : > { %p6872_p4 = pnand %p6870_p12, %p8424_p1  ;;  %p6879_p0 = por %p6878_p10, %p6877_p2 }
  0xf4   : > { %p6873_p7 = pneg %p6872_p4 }
  0xf6   : > { %p6880_p6 = pnand %p6879_p0, %p6873_p7 }
  0xf8   : > { %6883 = shalt.err (!%p6880_p6)
}
  0xf9   : > { %6519 = dma.hbm_to_vmem [thread:$0]  (!%p8425_p13), %s8398_s13, 256, %s943_s1, [#allocation7], %s7149_s26, %s7149_s26, %s7150_s9  }
  0xfa   : > { %s7566_s10 = scalar_lea.hbm %s8399_s6, %s7438_s8  ;;  %s1041_s29 = scalar_lea.vmem [#allocation11], %s7440_s15 }
  0xfb   : > { %s1048_s3 = sshll.u32 %s1041_s29, 4  ;;  %s6884_s11 = scalar_lea.hbm %s7566_s10, 512  ;;  %s7569_s3 = int_to_ptr.vmem [resolvable:$true] %s1048_s3 }
  0xfc   : > { %p6885_p1 = scmp.ne.s32.totalorder %s7566_s10, %s6884_s11  ;;  %p8426_p5 = scmp.ne.s32.totalorder %s8422_s24, 0 }
  0xfd   : > { %s6889_s12 = scalar_lea.hbm %s8399_s6, 1024  ;;  %p6890_p11 = scmp.lt.u32.totalorder %s7566_s10, %s8399_s6 }
  0xfe   : > { %p6887_p3 = pnand %p6885_p1, %p8426_p5  ;;  %p6891_p9 = scmp.lt.u32.totalorder %s6889_s12, %s6884_s11 }
  0xff   : > { %p6893_p13 = scmp.lt.u32.totalorder %s6884_s11, %s7566_s10 }
 0x100   : > { %p6888_p8 = pneg %p6887_p3  ;;  %p6892_p12 = por %p6891_p9, %p6890_p11 }
 0x102   : > { %p6894_p4 = por %p6893_p13, %p6892_p12 }
 0x104   : > { %p6895_p7 = pnand %p6894_p4, %p6888_p8 }
 0x106   : > { %6898 = shalt.err (!%p6895_p7)
}
 0x107   : > { %s6899_s1 = scalar_lea.vmem %s7569_s3, 512  ;;  %s7155_s28 = smov [#allocation11]  }
 0x108   : > { %p6900_p2 = scmp.ne.s32.totalorder %s7569_s3, %s6899_s1  ;;  %s6904_s14 = sshll.u32 %s7155_s28, 4  ;;  %s6905_s14 = int_to_ptr.vmem [resolvable:$false] %s6904_s14 }
 0x109   : > { %s6906_s25 = scalar_lea.vmem %s6905_s14, 1024  ;;  %p6907_p6 = scmp.lt.s32.totalorder %s7569_s3, %s6905_s14 }
 0x10a   : > { %p6902_p10 = pnand %p6900_p2, %p8426_p5  ;;  %p6908_p1 = scmp.lt.s32.totalorder %s6906_s25, %s6899_s1 }
 0x10c   : > { %p6903_p0 = pneg %p6902_p10  ;;  %p6909_p3 = por %p6908_p1, %p6907_p6 }
 0x10e   : > { %p6910_p11 = pnand %p6909_p3, %p6903_p0 }
 0x110   : > { %6913 = shalt.err (!%p6910_p11)
}
 0x111   : > { %p8427_p8 = scmp.ne.s32.totalorder %s8419_s2, 0  ;;  %s8428_s27 = scalar_lea.sflag [#allocation10], %s7418_s22 }
 0x112   : > { %s7595_s29 = scalar_lea.hbm %s8401_s4, %s7438_s8  ;;  %s1095_s11 = scalar_lea.vmem [#allocation14], %s7440_s15 }
 0x113   : > { %6526 = dma.hbm_to_vmem [thread:$0]  (!%p8427_p8), %s7566_s10, 512, %s7569_s3, %s8428_s27, %s7149_s26, %s7149_s26, %s7150_s9  }
 0x114   : > { %s1102_s12 = sshll.u32 %s1095_s11, 4  ;;  %s6914_s1 = scalar_lea.hbm %s7595_s29, 512  ;;  %s7598_s12 = int_to_ptr.vmem [resolvable:$true] %s1102_s12 }
 0x115   : > { %p6915_p9 = scmp.ne.s32.totalorder %s7595_s29, %s6914_s1  ;;  %s6919_s28 = scalar_lea.hbm %s8401_s4, 1024 }
 0x116   : > { %p6920_p4 = scmp.lt.u32.totalorder %s7595_s29, %s8401_s4  ;;  %p6921_p7 = scmp.lt.u32.totalorder %s6919_s28, %s6914_s1 }
 0x117   : > { %p6917_p12 = pnand %p6915_p9, %p8426_p5  ;;  %p6923_p10 = scmp.lt.u32.totalorder %s6914_s1, %s7595_s29 }
 0x118   : > { %p6922_p2 = por %p6921_p7, %p6920_p4 }
 0x119   : > { %p6918_p13 = pneg %p6917_p12 }
 0x11a   : > { %p6924_p0 = por %p6923_p10, %p6922_p2 }
 0x11c   : > { %p6925_p6 = pnand %p6924_p0, %p6918_p13 }
 0x11e   : > { %6928 = shalt.err (!%p6925_p6)
}
 0x11f   : > { %s6929_s10 = scalar_lea.vmem %s7598_s12, 512  ;;  %s7156_s3 = smov [#allocation14]  }
 0x120   : > { %p6930_p1 = scmp.ne.s32.totalorder %s7598_s12, %s6929_s10  ;;  %s6934_s14 = sshll.u32 %s7156_s3, 4  ;;  %s6935_s14 = int_to_ptr.vmem [resolvable:$false] %s6934_s14 }
 0x121   : > { %s6936_s25 = scalar_lea.vmem %s6935_s14, 1024  ;;  %p6937_p9 = scmp.lt.s32.totalorder %s7598_s12, %s6935_s14 }
 0x122   : > { %p6932_p3 = pnand %p6930_p1, %p8426_p5  ;;  %p6938_p12 = scmp.lt.s32.totalorder %s6936_s25, %s6929_s10 }
 0x124   : > { %p6933_p11 = pneg %p6932_p3  ;;  %p6939_p4 = por %p6938_p12, %p6937_p9 }
 0x126   : > { %p6940_p7 = pnand %p6939_p4, %p6933_p11 }
 0x128   : > { %6943 = shalt.err (!%p6940_p7)
}
 0x129   : > { %s8429_s27 = scalar_lea.sflag [#allocation13], %s7418_s22  ;;  %s7624_s11 = scalar_lea.hbm %s8397_s19, %s7438_s8 }
 0x12a   : > { %6532 = dma.hbm_to_vmem [thread:$0]  (!%p8427_p8), %s7595_s29, 512, %s7598_s12, %s8429_s27, %s7149_s26, %s7149_s26, %s7150_s9  }
 0x12b   : > { %s1161_s1 = scalar_lea.vmem [#allocation17], %s7440_s15  ;;  %s6944_s10 = scalar_lea.hbm %s7624_s11, 512 }
 0x12c   : > { %s1168_s28 = sshll.u32 %s1161_s1, 4  ;;  %p6945_p13 = scmp.ne.s32.totalorder %s7624_s11, %s6944_s10  ;;  %s7627_s28 = int_to_ptr.vmem [resolvable:$true] %s1168_s28 }
 0x12d   : > { %s6949_s3 = scalar_lea.hbm %s8397_s19, 1024  ;;  %p6950_p0 = scmp.lt.u32.totalorder %s7624_s11, %s8397_s19 }
 0x12e   : > { %p6947_p2 = pnand %p6945_p13, %p8426_p5  ;;  %p6951_p6 = scmp.lt.u32.totalorder %s6949_s3, %s6944_s10 }
 0x12f   : > { %p6953_p3 = scmp.lt.u32.totalorder %s6944_s10, %s7624_s11 }
 0x130   : > { %p6948_p10 = pneg %p6947_p2  ;;  %p6952_p1 = por %p6951_p6, %p6950_p0 }
 0x132   : > { %p6954_p11 = por %p6953_p3, %p6952_p1 }
 0x134   : > { %p6955_p9 = pnand %p6954_p11, %p6948_p10 }
 0x136   : > { %6958 = shalt.err (!%p6955_p9)
}
 0x137   : > { %s6959_s8 = scalar_lea.vmem %s7627_s28, 512  ;;  %s7157_s15 = smov [#allocation17]  }
 0x138   : > { %p6960_p12 = scmp.ne.s32.totalorder %s7627_s28, %s6959_s8  ;;  %s6964_s29 = sshll.u32 %s7157_s15, 4  ;;  %s6965_s29 = int_to_ptr.vmem [resolvable:$false] %s6964_s29 }
 0x139   : > { %s6966_s12 = scalar_lea.vmem %s6965_s29, 1024  ;;  %p6967_p13 = scmp.lt.s32.totalorder %s7627_s28, %s6965_s29 }
 0x13a   : > { %p6962_p4 = pnand %p6960_p12, %p8426_p5  ;;  %p6968_p2 = scmp.lt.s32.totalorder %s6966_s12, %s6959_s8 }
 0x13c   : > { %p6963_p7 = pneg %p6962_p4  ;;  %p6969_p0 = por %p6968_p2, %p6967_p13 }
 0x13e   : > { %p6970_p6 = pnand %p6969_p0, %p6963_p7 }
 0x140   : > { %6973 = shalt.err (!%p6970_p6)
}
 0x141   : > { %6538 = dma.hbm_to_vmem [thread:$0]  (!%p8427_p8), %s7624_s11, 512, %s7627_s28, %s1119_s18, %s7149_s26, %s7149_s26, %s7150_s9  }
 0x142   : > { %p8430_p5 = scmp.ne.s32.totalorder %s8416_s7, 0 }
 0x144   : > { %1212 = sbr.rel (%p8430_p5) target bundleno = 4668 (0x123c), region = 136 }
 0x14b   : > { %p8431_p10 = scmp.eq.s32.totalorder %s7354_s0, 0 }
 0x14d   : > { %7073 = dma.done.wait (%p8431_p10), [#allocation4], 256   ;;  %p8432_p1 = pmov %p8431_p10 }
 0x14f   : > { %7075 = vsyncadd (%p8432_p1), [#allocation4], 4294967040  ;;  %p8433_p3 = pmov %p8432_p1 }
 0x150   : > { %p8434_p11 = pmov %p8432_p1 }
 0x151   : > { %7077 = dma.done.wait (%p8433_p3), [#allocation7], 384  }
 0x152   : > { %7079 = vsyncadd (%p8434_p11), [#allocation7], 4294966912  ;;  %s7662_s2 = sand.u32 1, %s7354_s0   ;;  %s1228_s22 = sand.u32 1, %s7106_s23  }
 0x153   : > { %8435 = sst [smem:[#allocation69_spill]] %s7662_s2  ;;  %s7665_s7 = sshll.u32 %s1228_s22, 5 }
 0x154   : > { %s1227_s24 = scalar_lea.sflag [#allocation10], %s7662_s2  ;;  %s7669_s26 = scalar_lea.vmem [#allocation9], %s7665_s7 }
 0x155   : > { %8436 = sst [smem:[#allocation70_spill]] %s7669_s26  ;;  %p8437_p8 = scmp.ne.s32.totalorder %s8411_s16, 0 }
 0x157   : > { %7081 = dma.done.wait (%p8437_p8), %s1227_s24, 1024  }
 0x158   : > { %7083 = vsyncadd (%p8437_p8), %s1227_s24, 4294966272  ;;  %s7676_s9 = scalar_lea.vmem [#allocation11], %s7665_s7  ;;  %s1245_s18 = scalar_lea.sflag [#allocation13], %s7662_s2 }
 0x159   : > { %8438 = sst [smem:[#allocation71_spill]] %s7676_s9  ;;  %s7680_s14 = scalar_lea.vmem [#allocation12], %s7665_s7 }
 0x15a   : > { %8439 = sst [smem:[#allocation72_spill]] %s7680_s14 }
 0x15b   : > { %7085 = dma.done.wait (%p8437_p8), %s1245_s18, 1024  }
 0x15c   : > { %7087 = vsyncadd (%p8437_p8), %s1245_s18, 4294966272  ;;  %s7687_s25 = scalar_lea.vmem [#allocation14], %s7665_s7  ;;  %s1263_s27 = scalar_lea.sflag [#allocation16], %s7662_s2 }
 0x15d   : > { %8440 = sst [smem:[#allocation73_spill]] %s7687_s25  ;;  %s7691_s11 = scalar_lea.vmem [#allocation15], %s7665_s7 }
 0x15e   : > { %8441 = sst [smem:[#allocation74_spill]] %s7691_s11 }
 0x15f   : > { %7089 = dma.done.wait (%p8437_p8), %s1263_s27, 1024  }
 0x160   : > { %7091 = vsyncadd (%p8437_p8), %s1263_s27, 4294966272  ;;  %s8443_s17 = sld [smem:[#allocation32_spill]]  ;;  %s8444_s1 = sld [smem:[#allocation34_spill]] }
 0x161   : > { %s8446_s10 = sld [smem:[#allocation36_spill]]  ;;  %s8450_s29 = sld [smem:[#allocation41_spill]] }
 0x162   : > { %s8451_s12 = sld [smem:[#allocation43_spill]]  ;;  %s8452_s24 = sld [smem:[#allocation45_spill]] }
 0x163   : > { %s8453_s18 = sld [smem:[#allocation47_spill]]  ;;  %s5867_s4 = sshll.u32 %s1228_s22, 6 }
 0x164   : > { %s8454_s5 = sld [smem:[#allocation49_spill]]  ;;  %p1452_p9 = scmp.lt.s32.totalorder %s7354_s0, 1 }
 0x165   : > { %s8455_s6 = sld [smem:[#allocation50_spill]]  ;;  %s8456_s27 = sld [smem:[#allocation51_spill]] }
 0x166   : > { %s7699_s16 = scalar_select %p1452_p9, %s7354_s0, 1 }
 0x167   : > { %s8457_s19 = sld [smem:[#allocation53_spill]]  ;;  %s8460_s23 = sld [smem:[#allocation54_spill]] }
 0x168   : > { %s5978_s22 = sshll.u32 %s7699_s16, 5  ;;  %s8461_s11 = sld [smem:[#allocation55_spill]] }
 0x169   : > { %s7705_s20 = scalar_lea.vmem %s8443_s17, %s5978_s22  ;;  %s7708_s30 = scalar_lea.vmem %s8444_s1, %s5978_s22 }
 0x16a   : > { %8458 = sst [smem:[#allocation75_spill]] %s7705_s20  ;;  %s7713_s25 = scalar_lea.vmem %s8446_s10, %s5978_s22 }
 0x16b   : > { %8459 = sst [smem:[#allocation76_spill]] %s7708_s30  ;;  %s8463_s14 = sld [smem:[#allocation56_spill]] }
 0x16c   : > { %8462 = sst [smem:[#allocation77_spill]] %s7713_s25  ;;  %s8464_s26 = sld [smem:[#allocation57_spill]] }
 0x16d   : > { %s1484_s21 = scalar_lea.vmem %s8450_s29, %s7699_s16  ;;  %s1487_s17 = scalar_lea.vmem %s8451_s12, %s7699_s16 }
 0x16e   : > { %s1490_s20 = scalar_lea.vmem %s8452_s24, %s7699_s16  ;;  %s1493_s1 = scalar_lea.vmem %s8453_s18, %s7699_s16 }
 0x16f   : > { %s1496_s30 = scalar_lea.vmem %s8454_s5, %s7699_s16  ;;  %s1499_s2 = scalar_lea.vmem %s8455_s6, %s7699_s16 }
 0x170   : > { %s1502_s28 = scalar_lea.vmem %s8456_s27, %s7699_s16  ;;  %s1505_s10 = scalar_lea.vmem %s8457_s19, %s7699_s16 }
 0x171   : > { %s5981_s22 = sshll.u32 %s7699_s16, 6  ;;  %s1513_s3 = scalar_lea.vmem %s8461_s11, %s7699_s16 }
 0x172   : > { %s7739_s25 = scalar_lea.vmem %s8460_s23, %s5981_s22  ;;  %s1516_s9 = scalar_lea.vmem %s8463_s14, %s7699_s16 }
 0x173   : > { %s1519_s0 = scalar_lea.vmem %s8464_s26, %s7699_s16  ;;  %s7748_s8 = scalar_lea.vmem [#allocation17], %s7665_s7 }
 0x174   : > { %s7750_s13 = scalar_lea.vmem [#allocation19], %s5867_s4  ;;  %s7752_s15 = scalar_lea.vmem [#allocation21], %s5867_s4 }
 0x175   : > { %s8465_s29 = sld [smem:[#allocation64_spill]] }
 0x17b   : > { %p8466_p12 = scmp.ne.s32.totalorder %s8465_s29, 0 }
 0x17c   : > { %v1524_v0 = vld [vmem:[#allocation3] sm:$0xff] (!%p8466_p12)  ;;  %v1528_v1 = vld [vmem:[#allocation6] sm:$0xff] (!%p8466_p12)  ;;  %v1525_v2 = vld [vmem:[#allocation3 + $0x8] sm:$0xff] (!%p8466_p12)  ;;  %vm1531_vm0 = vcmask (!%p8466_p12), 261120  }
 0x17d   : > { %1523 = sbr.rel (%p8466_p12) target bundleno = 388 (0x184), region = 176  ;;  %v1526_v3 = vmul.f32 (!%p8466_p12), 5.656854, %v1524_v0  ;;  %v1527_v4 = vmul.f32 (!%p8466_p12), 5.656854, %v1525_v2 }
 0x17f   : > { %v1529_v5 = vadd.f32 (!%p8466_p12), %v1528_v1, %v1526_v3  ;;  %v1530_v6 = vadd.f32 (!%p8466_p12), %v1528_v1, %v1527_v4 }
 0x181   : > { %1532 = vst.msk [vmem:[#allocation2] sm:$0xff] (!%p8466_p12), %vm1531_vm0, %v1529_v5  ;;  %1533 = vst.msk [vmem:[#allocation2 + $0x8] sm:$0xff] (!%p8466_p12), %vm1531_vm0, %v1530_v6 }
 0x184 PF: > { %s8467_s5 = sld [smem:[#allocation75_spill]]  ;;  %s8468_s19 = sld [smem:[#allocation76_spill]]  ;;  %vm1549_vm1 = vcmask 261120   ;;  %v7158_v21 = vmov 0.0   ;;  %vm7159_vm2 = vmmov 0   ;;  %vm1851_vm3 = vcmask 64512  }
 0x185   : > { %s8469_s6 = sld [smem:[#allocation77_spill]]  ;;  %s8470_s4 = sld [smem:[#allocation33_spill]]  ;;  %vm3150_vm4 = vcmask 130048   ;;  %vm3153_vm5 = vcmask 195584   ;;  %vm5162_vm6 = vcmask 523264  }
 0x186   : > { %s8471_s23 = sld [smem:[#allocation35_spill]]  ;;  %s7160_s26 = smov 104  }
 0x187   : > { %s7161_s14 = smov 120   ;;  %s7162_s12 = smov 112  }
 0x188   : > { %v7760_v12 = vld [vmem:[#allocation2] sm:$0xff]  ;;  %v7770_v19 = vld [vmem:[#allocation2 + $0x8] sm:$0xff]  ;;  %s8474_s24 = sld [smem:[#allocation37_spill]]  ;;  %s8476_s27 = sld [smem:[#allocation70_spill]] }
 0x189   : > { %6120 = vmatprep.mubr.msk.f32.mxu1 %vm1549_vm1, %v7760_v12  ;;  %6142 = vmatprep.mubr.msk.f32.mxu0 %vm1549_vm1, %v7760_v12  ;;  %s7163_s22 = smov 8   ;;  %s7164_s29 = smov 16  }
 0x18a   : > { %v1538_v7 = vld [vmem:[%s8467_s5] sm:$0xff]  ;;  %v1539_v8 = vld [vmem:[%s8467_s5 + $0x8] sm:$0xff]  ;;  %v1540_v9 = vld [vmem:[%s8467_s5 + $0x10] sm:$0xff] }
 0x18b   : > { %v6390_v10 = vpack.c.bf16 %v1539_v8, %v1538_v7  ;;  %v1541_v11 = vld [vmem:[%s8467_s5 + $0x18] sm:$0xff]  ;;  %v1645_v14 = vld [vmem:[%s8468_s19] sm:$0xff]  ;;  %v1646_v15 = vld [vmem:[%s8468_s19 + $0x8] sm:$0xff]  ;;  %s8472_s7 = scalar_lea.vmem %s8470_s4, %s7699_s16  ;;  %s7165_s5 = smov 24  }
 0x18c   : > { %v6394_v13 = vpack.c.bf16 %v1541_v11, %v1540_v9  ;;  %v6398_v16 = vpack.c.bf16 %v1646_v15, %v1645_v14  ;;  %v1647_v17 = vld [vmem:[%s8468_s19 + $0x10] sm:$0xff]  ;;  %v1648_v18 = vld [vmem:[%s8468_s19 + $0x18] sm:$0xff]  ;;  %v1745_v22 = vld [vmem:[%s8469_s6] sm:$0xff]  ;;  %s8473_s11 = scalar_lea.vmem %s8471_s23, %s7699_s16  ;;  %s8477_s19 = sld [smem:[#allocation39_spill]] }
 0x18d   : > { %6391 = vmatprep.subr.bf16.mxu1 %v6390_v10  ;;  %v6402_v20 = vpack.c.bf16 %v1648_v18, %v1647_v17  ;;  %v1746_v23 = vld [vmem:[%s8469_s6 + $0x8] sm:$0xff]  ;;  %v1747_v24 = vld [vmem:[%s8469_s6 + $0x10] sm:$0xff]  ;;  %v1748_v26 = vld [vmem:[%s8469_s6 + $0x18] sm:$0xff]  ;;  %s8479_s4 = sld [smem:[#allocation72_spill]]  ;;  %s8480_s23 = sld [smem:[#allocation71_spill]] }
 0x18e   : > { %6393 = vmatpush3.bf16.msra.mxu1 %v6390_v10  ;;  %v6406_v25 = vpack.c.bf16 %v1746_v23, %v1745_v22  ;;  %v6410_v27 = vpack.c.bf16 %v1748_v26, %v1747_v24  ;;  %v5878_v28 = vld [vmem:[%s8472_s7] ss:$0 sm:$0xff]  ;;  %s8475_s18 = scalar_lea.vmem %s8474_s24, %s7699_s16  ;;  %s8481_s7 = sld [smem:[#allocation40_spill]] }
 0x18f   : > { %6395 = vmatprep.subr.bf16.mxu1 %v6394_v13  ;;  %v5881_v32 = vld [vmem:[%s8473_s11] ss:$0 sm:$0xff] }
 0x190   : > { %6407 = vmatprep.subr.bf16.mxu0 %v6406_v25  ;;  %v5884_v38 = vld [vmem:[%s8475_s18] ss:$0 sm:$0xff] }
 0x191   : > { %6409 = vmatpush3.bf16.msra.mxu0 %v6406_v25 }
 0x192   : > { %6397 = vmatpush3.bf16.msra.mxu1 %v6394_v13  ;;  %6411 = vmatprep.subr.bf16.mxu0 %v6410_v27  ;;  %s8478_s6 = scalar_lea.vmem %s8477_s19, %s7699_s16 }
 0x193   : > { %6399 = vmatprep.subr.bf16.mxu1 %v6398_v16 }
 0x194   : > { %s8484_s18 = scalar_lea.vmem %s8481_s7, %s7699_s16 }
 0x195   : > { %6121 = vmatmul.mubr.msk.f32.vlgmr.msra.gmra.mrb[0].mxu1 %vm1549_vm1, %v7770_v19  ;;  %6413 = vmatpush3.bf16.msra.mxu0 %v6410_v27 }
 0x196   : > { %6401 = vmatpush3.bf16.msra.mxu1 %v6398_v16  ;;  %6131 = vmatprep.mubr.msk.f32.mxu1 %vm1549_vm1, %v7760_v12 }
 0x197   : > { %6403 = vmatprep.subr.bf16.mxu1 %v6402_v20  ;;  %6155 = vmatprep.subr.mxu0 %v7158_v21 }
 0x198   : > { %6143 = vmatmul.mubr.msk.f32.vlgmr.msra.gmra.mrb[0].mxu0 %vm1549_vm1, %v7770_v19 }
 0x199   : > { %6157 = vmatprep.mubr.msk.f32.mxu0 %vm7159_vm2, %v7158_v21 }
 0x19a   : > { %6405 = vmatpush3.bf16.msra.mxu1 %v6402_v20 }
 0x19b   : > { %6145 = vmatprep.subr.mxu1 %v7158_v21 }
 0x19d   : > { %6132 = vmatmul.mubr.msk.f32.vlgmr.msra.gmra.mrb[2].mxu1 %vm1549_vm1, %v7770_v19 }
 0x19e   : > { %6147 = vmatprep.mubr.msk.f32.mxu1 %vm7159_vm2, %v7158_v21 }
 0x268   : > { %v6122_v29 = vpop.f32.mrb[0].mxu1 }
 0x269   : > { %v1622_v30 = vpop.f32.mrb[1].mxu1  ;;  %v1628_v36 = vadd.f32 %v6122_v29, %v5878_v28 }
 0x26a   : > { %v1623_v31 = vadd.f32 %v5878_v28, %v1622_v30 }
 0x26b   : > { %v6144_v41 = vpop.f32.mrb[0].mxu0 }
 0x26c   : > { %1641 = vrot.lane.b32.xlu1 %v1623_v31, %s7160_s26  ;;  %1633 = vrot.lane.b32.xlu0 %v1623_v31, %s7161_s14  ;;  %v7816_v42 = vadd.f32 %v6144_v41, %v5884_v38  ;;  %v1822_v43 = vpop.f32.mrb[1].mxu0 }
 0x26d   : > { %v1823_v52 = vadd.f32 %v5884_v38, %v1822_v43 }
 0x270   : > { %v6133_v33 = vpop.f32.mrb[2].mxu1 }
 0x271   : > { %v1722_v34 = vpop.f32.mrb[3].mxu1  ;;  %v1728_v37 = vadd.f32 %v6133_v33, %v5881_v32 }
 0x272   : > { %v1723_v35 = vadd.f32 %v5881_v32, %v1722_v34 }
 0x274   : > { %6146 = vmatpush3.xpose.msk.msra.mxu1 %vm1851_vm3, %v1723_v35  ;;  %1737 = vrot.lane.b32.xlu1 %v1723_v35, %s7162_s12 }
 0x275   : > { %1733 = vrot.lane.b32.xlu0 %v1723_v35, %s7161_s14  ;;  %6150 = vmatprep.subr.mxu1 %v7158_v21 }
 0x277   : > { %6148 = vmatmul.mubr.msk.f32.vlgmr.msra.gmra.mrb[4].mxu1 %vm1851_vm3, %v1623_v31 }
 0x278   : > { %1741 = vrot.lane.b32.xlu1 %v1723_v35, %s7160_s26  ;;  %6152 = vmatprep.mubr.msk.f32.mxu1 %vm7159_vm2, %v7158_v21 }
 0x279   : > { %1637 = vrot.lane.b32.xlu0 %v1623_v31, %s7162_s12 }
 0x27c   : > { %1635 = vrot.lane.b32.xlu1 %v1628_v36, %s7161_s14 }
 0x27d   : > { %1735 = vrot.lane.b32.xlu0 %v1728_v37, %s7161_s14 }
 0x280   : > { %1743 = vrot.lane.b32.xlu1 %v1728_v37, %s7160_s26 }
 0x281   : > { %1739 = vrot.lane.b32.xlu0 %v1728_v37, %s7162_s12 }
 0x284   : > { %1643 = vrot.lane.b32.xlu1 %v1628_v36, %s7160_s26 }
 0x285   : > { %1639 = vrot.lane.b32.xlu0 %v1628_v36, %s7162_s12 }
 0x2de   : > { %v1642_v39 = vpop.permute.xlu1 %1641  ;;  %v1634_v40 = vpop.permute.xlu0 %1633 }
 0x2e6   : > { %v1738_v44 = vpop.permute.xlu1 %1737 }
 0x2e7   : > { %v1734_v45 = vpop.permute.xlu0 %1733  ;;  %6156 = vmatpush3.xpose.msk.msra.mxu0 %vm1851_vm3, %v1738_v44 }
 0x2e8   : > { %6151 = vmatpush3.xpose.msk.msra.mxu1 %vm1851_vm3, %v1734_v45  ;;  %6165 = vmatprep.subr.mxu0 %v7158_v21 }
 0x2e9   : > { %6160 = vmatprep.subr.mxu1 %v7158_v21 }
 0x2ea   : > { %v1742_v46 = vpop.permute.xlu1 %1741 }
 0x2eb   : > { %v1638_v47 = vpop.permute.xlu0 %1637  ;;  %6153 = vmatmul.mubr.msk.f32.vlgmr.msra.gmra.mrb[6].mxu1 %vm1851_vm3, %v1634_v40 }
 0x2ec   : > { %6158 = vmatmul.mubr.msk.f32.vlgmr.msra.gmra.mrb[2].mxu0 %vm1851_vm3, %v1638_v47  ;;  %6161 = vmatpush3.xpose.msk.msra.mxu1 %vm1851_vm3, %v1742_v46 }
 0x2ed   : > { %6166 = vmatpush3.xpose.msk.msra.mxu0 %vm1851_vm3, %v1728_v37  ;;  %6162 = vmatprep.mubr.msk.f32.mxu1 %vm7159_vm2, %v7158_v21 }
 0x2ee   : > { %v1636_v48 = vpop.permute.xlu1 %1635  ;;  %6167 = vmatprep.mubr.msk.f32.mxu0 %vm7159_vm2, %v7158_v21  ;;  %6170 = vmatprep.subr.mxu1 %v7158_v21 }
 0x2ef   : > { %v1736_v49 = vpop.permute.xlu0 %1735  ;;  %6163 = vmatmul.mubr.msk.f32.vlgmr.msra.gmra.mrb[8].mxu1 %vm1851_vm3, %v1642_v39  ;;  %6175 = vmatprep.subr.mxu0 %v7158_v21 }
 0x2f0   : > { %6168 = vmatmul.mubr.msk.f32.vlgmr.msra.gmra.mrb[4].mxu0 %vm1851_vm3, %v1628_v36  ;;  %6171 = vmatpush3.xpose.msk.msra.mxu1 %vm1851_vm3, %v1736_v49 }
 0x2f1   : > { %6172 = vmatprep.mubr.msk.f32.mxu1 %vm7159_vm2, %v7158_v21  ;;  %6180 = vmatprep.subr.mxu1 %v7158_v21 }
 0x2f2   : > { %v1744_v50 = vpop.permute.xlu1 %1743  ;;  %6177 = vmatprep.mubr.msk.f32.mxu0 %vm7159_vm2, %v7158_v21 }
 0x2f3   : > { %v1740_v51 = vpop.permute.xlu0 %1739  ;;  %6173 = vmatmul.mubr.msk.f32.vlgmr.msra.gmra.mrb[10].mxu1 %vm1851_vm3, %v1636_v48 }
 0x2f4   : > { %6176 = vmatpush3.xpose.msk.msra.mxu0 %vm1851_vm3, %v1740_v51  ;;  %6181 = vmatpush3.xpose.msk.msra.mxu1 %vm1851_vm3, %v1744_v50 }
 0x2f5   : > { %6182 = vmatprep.mubr.msk.f32.mxu1 %vm7159_vm2, %v7158_v21  ;;  %6185 = vmatprep.subr.mxu0 %v7158_v21 }
 0x2f6   : > { %v1644_v53 = vpop.permute.xlu1 %1643  ;;  %6190 = vmatprep.subr.mxu1 %v7158_v21 }
 0x2f7   : > { %v1640_v54 = vpop.permute.xlu0 %1639  ;;  %6183 = vmatmul.mubr.msk.f32.vlgmr.msra.gmra.mrb[12].mxu1 %vm1851_vm3, %v1644_v53 }
 0x2f8   : > { %6178 = vmatmul.mubr.msk.f32.vlgmr.msra.gmra.mrb[6].mxu0 %vm1851_vm3, %v1640_v54  ;;  %6192 = vmatprep.mubr.msk.f32.mxu1 %vm7159_vm2, %v7158_v21 }
 0x2f9   : > { %6186 = vmatpush3.msra.mxu0 %v1823_v52  ;;  %6187 = vmatprep.mubr.msk.f32.mxu0 %vm7159_vm2, %v7158_v21 }
 0x2fa   : > { %6195 = vmatprep.subr.mxu0 %v7158_v21 }
 0x34a   : > { %v1922_v55 = vpop.f32.mrb[4].mxu1 }
 0x34b   : > { %v2444_v56 = vmul.f32 0.35355338, %v1922_v55  ;;  %v6149_v57 = vpop.f32.mrb[5].mxu1 }
 0x34d   : > { %v2452_v58 = vsel %vm1851_vm3, %v2444_v56, -inf }
 0x34e   : > { %2453 = vmax.xlane.f32.xlu0 %v2452_v58 }
 0x3be   : > { %v1996_v59 = vpop.f32.mrb[6].mxu1 }
 0x3bf   : > { %v2445_v60 = vmul.f32 0.35355338, %v1996_v59  ;;  %v6154_v61 = vpop.f32.mrb[7].mxu1  ;;  %v2070_v62 = vpop.f32.mrb[2].mxu0 }
 0x3c0   : > { %v2446_v63 = vmul.f32 0.35355338, %v2070_v62  ;;  %v6159_v0 = vpop.f32.mrb[3].mxu0 }
 0x3c1   : > { %v2455_v1 = vsel %vm1851_vm3, %v2445_v60, -inf }
 0x3c2   : > { %2456 = vmax.xlane.f32.xlu1 %v2455_v1  ;;  %v2144_v2 = vpop.f32.mrb[8].mxu1  ;;  %v2458_v3 = vsel %vm1851_vm3, %v2446_v63, -inf }
 0x3c3   : > { %v2447_v4 = vmul.f32 0.35355338, %v2144_v2  ;;  %v2218_v5 = vpop.f32.mrb[4].mxu0  ;;  %2459 = vmax.xlane.f32.xlu0 %v2458_v3  ;;  %v6164_v6 = vpop.f32.mrb[9].mxu1 }
 0x3c4   : > { %v2448_v7 = vmul.f32 0.35355338, %v2218_v5  ;;  %v6169_v8 = vpop.f32.mrb[5].mxu0 }
 0x3c5   : > { %v2461_v9 = vsel %vm1851_vm3, %v2447_v4, -inf }
 0x3c6   : > { %v2292_v10 = vpop.f32.mrb[10].mxu1  ;;  %v2464_v11 = vsel %vm1851_vm3, %v2448_v7, -inf }
 0x3c7   : > { %v2449_v13 = vmul.f32 0.35355338, %v2292_v10  ;;  %2465 = vmax.xlane.f32.xlu1 %v2464_v11  ;;  %2462 = vmax.xlane.f32.xlu0 %v2461_v9  ;;  %v6174_v14 = vpop.f32.mrb[11].mxu1 }
 0x3c9   : > { %v2467_v15 = vsel %vm1851_vm3, %v2449_v13, -inf }
 0x3ca   : > { %v2440_v16 = vpop.f32.mrb[12].mxu1 }
 0x3cb   : > { %v2366_v17 = vpop.f32.mrb[6].mxu0  ;;  %2468 = vmax.xlane.f32.xlu0 %v2467_v15  ;;  %v2451_v18 = vmul.f32 0.35355338, %v2440_v16  ;;  %v6184_v20 = vpop.f32.mrb[13].mxu1 }
 0x3cc   : > { %v2450_v22 = vmul.f32 0.35355338, %v2366_v17  ;;  %v6179_v23 = vpop.f32.mrb[7].mxu0 }
 0x3cd   : > { %v2473_v24 = vsel %vm1851_vm3, %v2451_v18, -inf }
 0x3ce   : > { %v2470_v25 = vsel %vm1851_vm3, %v2450_v22, -inf }
 0x3cf   : > { %2471 = vmax.xlane.f32.xlu1 %v2470_v25  ;;  %2474 = vmax.xlane.f32.xlu0 %v2473_v24 }
 0x3db   : > { %v2454_v26 = vpop.xlane.xlu0 %2453 }
 0x3dc   : > { %v2476_v27 = vsub.f32 %v2444_v56, %v2454_v26 }
 0x3de   : > { %v2484_v28 = vmul.f32 1.442695, %v2476_v27 }
 0x3e0   : > { %1833 = vrot.lane.b32.xlu1 %v1823_v52, %s7161_s14  ;;  %6634 = vpow2.f32 %v2484_v28 }
 0x3e4   : > { %1845 = vrot.lane.b32.xlu1 %v1823_v52, %s7160_s26 }
 0x3e5   : > { %1839 = vrot.lane.b32.xlu0 %v1823_v52, %s7162_s12 }
 0x3e8   : > { %1835 = vrot.lane.b32.xlu1 %v7816_v42, %s7161_s14 }
 0x3ea   : > { %v6635_v29 = vpop.eup %6634 }
 0x3eb   : > { %v2500_v30 = vsel %vm1851_vm3, %v6635_v29, 0.0 }
 0x40c   : > { %2501 = vadd.xlane.f32.xlu1 %v2500_v30 }
 0x44f   : > { %v2457_v31 = vpop.xlane.xlu1 %2456 }
 0x450   : > { %v2477_v32 = vsub.f32 %v2445_v60, %v2457_v31  ;;  %v2460_v33 = vpop.xlane.xlu0 %2459 }
 0x451   : > { %v2478_v34 = vsub.f32 %v2446_v63, %v2460_v33 }
 0x452   : > { %v2486_v35 = vmul.f32 1.442695, %v2477_v32 }
 0x453   : > { %v2488_v36 = vmul.f32 1.442695, %v2478_v34 }
 0x454   : > { %6636 = vpow2.f32 %v2486_v35  ;;  %v2466_v37 = vpop.xlane.xlu1 %2465  ;;  %v2463_v38 = vpop.xlane.xlu0 %2462 }
 0x455   : > { %6638 = vpow2.f32 %v2488_v36  ;;  %v2480_v39 = vsub.f32 %v2448_v7, %v2466_v37  ;;  %v2479_v40 = vsub.f32 %v2447_v4, %v2463_v38  ;;  %v3156_v37 = vld [vmem:[%s8476_s27] sm:$0xff]  ;;  %v3157_v38 = vld [vmem:[%s8476_s27 + $0x8] sm:$0xff] }
 0x457   : > { %v2492_v41 = vmul.f32 1.442695, %v2480_v39  ;;  %v2490_v43 = vmul.f32 1.442695, %v2479_v40  ;;  %v6414_v39 = vpack.c.bf16 %v3157_v38, %v3156_v37  ;;  %v3298_v37 = vld [vmem:[%s8480_s23 + $0x18] sm:$0xff] }
 0x458   : > { %v2469_v44 = vpop.xlane.xlu0 %2468 }
 0x459   : > { %6640 = vpow2.f32 %v2492_v41  ;;  %v2481_v45 = vsub.f32 %v2449_v13, %v2469_v44  ;;  %v3158_v44 = vld [vmem:[%s8476_s27 + $0x10] sm:$0xff] }
 0x45a   : > { %6642 = vpow2.f32 %v2490_v43 }
 0x45b   : > { %v2494_v46 = vmul.f32 1.442695, %v2481_v45  ;;  %v3159_v45 = vld [vmem:[%s8476_s27 + $0x18] sm:$0xff]  ;;  %s8485_s27 = sld [smem:[#allocation73_spill]] }
 0x45c   : > { %v2472_v47 = vpop.xlane.xlu1 %2471  ;;  %v2475_v48 = vpop.xlane.xlu0 %2474 }
 0x45d   : > { %6644 = vpow2.f32 %v2494_v46  ;;  %v2482_v49 = vsub.f32 %v2450_v22, %v2472_v47  ;;  %v2483_v50 = vsub.f32 %v2451_v18, %v2475_v48  ;;  %v6418_v47 = vpack.c.bf16 %v3159_v45, %v3158_v44 }
 0x45e   : > { %v6637_v51 = vpop.eup %6636 }
 0x45f   : > { %v6639_v52 = vpop.eup %6638  ;;  %v2496_v53 = vmul.f32 1.442695, %v2482_v49  ;;  %v2498_v54 = vmul.f32 1.442695, %v2483_v50  ;;  %v2503_v55 = vsel %vm1851_vm3, %v6637_v51, 0.0 }
 0x460   : > { %v1834_v56 = vpop.permute.xlu1 %1833  ;;  %2504 = vadd.xlane.f32.xlu0 %v2503_v55  ;;  %v2506_v57 = vsel %vm1851_vm3, %v6639_v52, 0.0  ;;  %v1840_v9 = vpop.permute.xlu0 %1839 }
 0x461   : > { %6646 = vpow2.f32 %v2496_v53  ;;  %2507 = vadd.xlane.f32.xlu1 %v2506_v57  ;;  %6191 = vmatpush3.msra.mxu1 %v1834_v56 }
 0x462   : > { %6648 = vpow2.f32 %v2498_v54  ;;  %6200 = vmatprep.subr.mxu1 %v7158_v21 }
 0x463   : > { %v6641_v58 = vpop.eup %6640 }
 0x464   : > { %v6643_v59 = vpop.eup %6642  ;;  %v2512_v60 = vsel %vm1851_vm3, %v6641_v58, 0.0  ;;  %v1846_v4 = vpop.permute.xlu1 %1845 }
 0x465   : > { %2513 = vadd.xlane.f32.xlu1 %v2512_v60  ;;  %v2509_v61 = vsel %vm1851_vm3, %v6643_v59, 0.0 }
 0x466   : > { %2510 = vadd.xlane.f32.xlu0 %v2509_v61 }
 0x467   : > { %v7873_v62 = vpop.eup %6644 }
 0x468   : > { %v2515_v63 = vsel %vm1851_vm3, %v7873_v62, 0.0  ;;  %v1836_v5 = vpop.permute.xlu1 %1835 }
 0x46a   : > { %2516 = vadd.xlane.f32.xlu0 %v2515_v63 }
 0x46b   : > { %v7877_v0 = vpop.eup %6646 }
 0x46c   : > { %v7879_v1 = vpop.eup %6648  ;;  %v2518_v2 = vsel %vm1851_vm3, %v7877_v0, 0.0 }
 0x46d   : > { %2519 = vadd.xlane.f32.xlu1 %v2518_v2  ;;  %v2521_v3 = vsel %vm1851_vm3, %v7879_v1, 0.0 }
 0x46e   : > { %2522 = vadd.xlane.f32.xlu0 %v2521_v3 }
 0x47e   : > { %1847 = vrot.lane.b32.xlu1 %v7816_v42, %s7160_s26 }
 0x484   : > { %1841 = vrot.lane.b32.xlu0 %v7816_v42, %s7162_s12 }
 0x499   : > { %v2502_v6 = vpop.xlane.xlu1 %2501 }
 0x49a   : > { %6650 = vrcp.f32 %v2502_v6  ;;  %v5911_v6 = vld [vmem:[%s8478_s6] ss:$0 sm:$0xff]  ;;  %s7166_s6 = smov [#allocation19]  }
 0x4a4   : > { %v6651_v7 = vpop.eup %6650 }
 0x4a5   : > { %v2532_v8 = vmul.f32 %v6651_v7, %v6635_v29 }
 0x4a7   : > { %5294 = vst.msk [vmem:[%s7750_s13] sm:$0xff] %vm1851_vm3, %v2532_v8  ;;  %6188 = vmatmul.mubr.msk.f32.vlgmr.msra.gmra.mrb[8].mxu0 %vm1851_vm3, %v2532_v8 }
 0x4a8   : > { %6196 = vmatpush3.msra.mxu0 %v1840_v9  ;;  %6197 = vmatprep.mubr.msk.f32.mxu0 %vm7159_vm2, %v7158_v21 }
 0x4a9   : > { %6205 = vmatprep.subr.mxu0 %v7158_v21 }
 0x4ed   : > { %v2505_v10 = vpop.xlane.xlu0 %2504 }
 0x4ee   : > { %6652 = vrcp.f32 %v2505_v10  ;;  %v2508_v11 = vpop.xlane.xlu1 %2507 }
 0x4ef   : > { %6654 = vrcp.f32 %v2508_v11 }
 0x4f2   : > { %v2514_v13 = vpop.xlane.xlu1 %2513 }
 0x4f3   : > { %6656 = vrcp.f32 %v2514_v13  ;;  %v2511_v14 = vpop.xlane.xlu0 %2510 }
 0x4f4   : > { %6658 = vrcp.f32 %v2511_v14 }
 0x4f7   : > { %v2517_v15 = vpop.xlane.xlu0 %2516 }
 0x4f8   : > { %v6653_v16 = vpop.eup %6652  ;;  %6660 = vrcp.f32 %v2517_v15 }
 0x4f9   : > { %v6655_v17 = vpop.eup %6654  ;;  %v2533_v18 = vmul.f32 %v6653_v16, %v6637_v51 }
 0x4fa   : > { %v2534_v20 = vmul.f32 %v6655_v17, %v6639_v52  ;;  %v2520_v22 = vpop.xlane.xlu1 %2519 }
 0x4fb   : > { %5295 = vst.msk [vmem:[%s7750_s13 + $0x8] sm:$0xff] %vm1851_vm3, %v2533_v18  ;;  %6662 = vrcp.f32 %v2520_v22  ;;  %v2523_v23 = vpop.xlane.xlu0 %2522  ;;  %6193 = vmatmul.mubr.msk.f32.vlgmr.msra.gmra.mrb[14].mxu1 %vm1851_vm3, %v2533_v18 }
 0x4fc   : > { %5296 = vst.msk [vmem:[%s7750_s13 + $0x10] sm:$0xff] %vm1851_vm3, %v2534_v20  ;;  %6664 = vrcp.f32 %v2523_v23  ;;  %6201 = vmatpush3.msra.mxu1 %v1846_v4  ;;  %6198 = vmatmul.mubr.msk.f32.vlgmr.msra.gmra.mrb[10].mxu0 %vm1851_vm3, %v2534_v20 }
 0x4fd   : > { %v6657_v24 = vpop.eup %6656  ;;  %6206 = vmatpush3.msra.mxu0 %v7816_v42  ;;  %6202 = vmatprep.mubr.msk.f32.mxu1 %vm7159_vm2, %v7158_v21 }
 0x4fe   : > { %v6659_v25 = vpop.eup %6658  ;;  %v2536_v26 = vmul.f32 %v6657_v24, %v6641_v58  ;;  %6207 = vmatprep.mubr.msk.f32.mxu0 %vm7159_vm2, %v7158_v21  ;;  %6210 = vmatprep.subr.mxu1 %v7158_v21  ;;  %v1848_v31 = vpop.permute.xlu1 %1847 }
 0x4ff   : > { %v2535_v27 = vmul.f32 %v6659_v25, %v6643_v59  ;;  %v1842_v28 = vpop.permute.xlu0 %1841  ;;  %6215 = vmatprep.subr.mxu0 %v7158_v21 }
 0x500   : > { %5298 = vst.msk [vmem:[%s7750_s13 + $0x20] sm:$0xff] %vm1851_vm3, %v2536_v26  ;;  %6208 = vmatmul.mubr.msk.f32.vlgmr.msra.gmra.mrb[12].mxu0 %vm1851_vm3, %v2536_v26  ;;  %v3401_v26 = vld [vmem:[%s8479_s4] sm:$0xff] }
 0x501   : > { %5297 = vst.msk [vmem:[%s7750_s13 + $0x18] sm:$0xff] %vm1851_vm3, %v2535_v27  ;;  %6203 = vmatmul.mubr.msk.f32.vlgmr.msra.gmra.mrb[16].mxu1 %vm1851_vm3, %v2535_v27  ;;  %6216 = vmatpush3.msra.mxu0 %v1842_v28  ;;  %v3402_v27 = vld [vmem:[%s8479_s4 + $0x8] sm:$0xff] }
 0x502   : > { %v6661_v42 = vpop.eup %6660  ;;  %6211 = vmatpush3.msra.mxu1 %v1836_v5  ;;  %6212 = vmatprep.mubr.msk.f32.mxu1 %vm7159_vm2, %v7158_v21  ;;  %v6430_v28 = vpack.c.bf16 %v3402_v27, %v3401_v26 }
 0x503   : > { %v2537_v29 = vmul.f32 %v6661_v42, %v7873_v62  ;;  %6220 = vmatprep.subr.mxu1 %v7158_v21  ;;  %6217 = vmatprep.mubr.msk.f32.mxu0 %vm7159_vm2, %v7158_v21  ;;  %v3403_v42 = vld [vmem:[%s8479_s4 + $0x10] sm:$0xff] }
 0x504   : > { %6415 = vmatprep.subr.bf16.mxu0 %v6414_v39 }
 0x505   : > { %v6663_v30 = vpop.eup %6662  ;;  %5299 = vst.msk [vmem:[%s7750_s13 + $0x28] sm:$0xff] %vm1851_vm3, %v2537_v29  ;;  %6213 = vmatmul.mubr.msk.f32.vlgmr.msra.gmra.mrb[18].mxu1 %vm1851_vm3, %v2537_v29  ;;  %v3404_v29 = vld [vmem:[%s8479_s4 + $0x18] sm:$0xff]  ;;  %s6978_s4 = sshll.u32 %s7166_s6, 4  ;;  %s6979_s4 = int_to_ptr.vmem [resolvable:$false] %s6978_s4 }
 0x506   : > { %v6665_v32 = vpop.eup %6664  ;;  %v2538_v33 = vmul.f32 %v6663_v30, %v7877_v0  ;;  %6221 = vmatpush3.msra.mxu1 %v1848_v31  ;;  %6222 = vmatprep.mubr.msk.f32.mxu1 %vm7159_vm2, %v7158_v21  ;;  %v6434_v30 = vpack.c.bf16 %v3404_v29, %v3403_v42  ;;  %v1536_v31 = vld [vmem:[#allocation8] sm:$0xff] }
 0x507   : > { %v2539_v34 = vmul.f32 %v6665_v32, %v7879_v1  ;;  %v1537_v32 = vld [vmem:[#allocation8 + $0x8] sm:$0xff] }
 0x508   : > { %5300 = vst.msk [vmem:[%s7750_s13 + $0x30] sm:$0xff] %vm1851_vm3, %v2538_v33  ;;  %6218 = vmatmul.mubr.msk.f32.vlgmr.msra.gmra.mrb[14].mxu0 %vm1851_vm3, %v2538_v33  ;;  %v3295_v33 = vld [vmem:[%s8480_s23] sm:$0xff] }
 0x509   : > { %5301 = vst.msk [vmem:[%s7750_s13 + $0x38] sm:$0xff] %vm1851_vm3, %v2539_v34  ;;  %6223 = vmatmul.mubr.msk.f32.vlgmr.msra.gmra.mrb[20].mxu1 %vm1851_vm3, %v2539_v34  ;;  %6417 = vmatpush3.bf16.msra.mxu0 %v6414_v39  ;;  %v3296_v34 = vld [vmem:[%s8480_s23 + $0x8] sm:$0xff] }
 0x50a   : > { %6419 = vmatprep.subr.bf16.mxu0 %v6418_v47 }
 0x50d   : > { %6421 = vmatpush3.bf16.msra.mxu0 %v6418_v47  ;;  %v5914_v47 = vld [vmem:[%s8484_s18] ss:$0 sm:$0xff] }
 0x50e   : > { %6431 = vmatprep.subr.bf16.mxu0 %v6430_v28 }
 0x57a   : > { %v2609_v35 = vpop.f32.mrb[8].mxu0 }
 0x57b   : > { %v6189_v36 = vpop.f32.mrb[9].mxu0 }
 0x57c   : > { %v3297_v36 = vld [vmem:[%s8480_s23 + $0x10] sm:$0xff]  ;;  %s6980_s23 = scalar_lea.vmem %s6979_s4, 2048 }
 0x57d   : > { %v6426_v38 = vpack.c.bf16 %v3298_v37, %v3297_v36 }
 0x5ce   : > { %v2682_v40 = vpop.f32.mrb[14].mxu1 }
 0x5cf   : > { %v2755_v41 = vpop.f32.mrb[10].mxu0  ;;  %3126 = vrot.lane.b32.xlu0 %v2682_v40, %s7163_s22  ;;  %v6194_v43 = vpop.f32.mrb[15].mxu1 }
 0x5d0   : > { %v6199_v46 = vpop.f32.mrb[11].mxu0 }
 0x5d3   : > { %v2901_v48 = vpop.f32.mrb[12].mxu0  ;;  %3134 = vrot.lane.b32.xlu0 %v2755_v41, %s7164_s29 }
 0x5d4   : > { %v2828_v49 = vpop.f32.mrb[16].mxu1  ;;  %v6209_v50 = vpop.f32.mrb[13].mxu0 }
 0x5d5   : > { %v6204_v51 = vpop.f32.mrb[17].mxu1 }
 0x5d7   : > { %3142 = vrot.lane.b32.xlu0 %v2828_v49, %s7165_s5  ;;  %v5915_v49 = vld [vmem:[%s1484_s21] ss:$0 sm:$0xff] }
 0x5d8   : > { %v2974_v52 = vpop.f32.mrb[18].mxu1 }
 0x5d9   : > { %3128 = vrot.lane.b32.xlu1 %v2974_v52, %s7163_s22  ;;  %v6214_v53 = vpop.f32.mrb[19].mxu1 }
 0x5db   : > { %v3047_v54 = vpop.f32.mrb[14].mxu0 }
 0x5dc   : > { %v3120_v55 = vpop.f32.mrb[20].mxu1  ;;  %v6219_v56 = vpop.f32.mrb[15].mxu0 }
 0x5dd   : > { %3136 = vrot.lane.b32.xlu1 %v3047_v54, %s7164_s29  ;;  %v6224_v57 = vpop.f32.mrb[21].mxu1  ;;  %v5919_v56 = vld [vmem:[%s1490_s20] ss:$0 sm:$0xff] }
 0x5e1   : > { %3144 = vrot.lane.b32.xlu1 %v3120_v55, %s7165_s5 }
 0x641   : > { %v3127_v58 = vpop.permute.xlu0 %3126 }
 0x642   : > { %v3148_v60 = vsel %vm1851_vm3, %v2609_v35, %v3127_v58  ;;  %v6422_v35 = vpack.c.bf16 %v3296_v34, %v3295_v33 }
 0x644   : > { %6423 = vmatprep.subr.bf16.mxu1 %v6422_v35 }
 0x645   : > { %v3135_v59 = vpop.permute.xlu0 %3134  ;;  %6425 = vmatpush3.bf16.msra.mxu1 %v6422_v35 }
 0x646   : > { %v3151_v61 = vsel %vm3150_vm4, %v3148_v60, %v3135_v59  ;;  %6427 = vmatprep.subr.bf16.mxu1 %v6426_v38 }
 0x649   : > { %v3143_v62 = vpop.permute.xlu0 %3142  ;;  %6429 = vmatpush3.bf16.msra.mxu1 %v6426_v38 }
 0x64a   : > { %v3154_v63 = vsel %vm3153_vm5, %v3151_v61, %v3143_v62  ;;  %v3507_v61 = vld [vmem:[%s8485_s27] sm:$0xff]  ;;  %v3508_v62 = vld [vmem:[%s8485_s27 + $0x8] sm:$0xff] }
 0x64b   : > { %v3129_v0 = vpop.permute.xlu1 %3128  ;;  %6233 = vmatprep.mubr.msk.f32.mxu0 %vm1549_vm1, %v3154_v63  ;;  %v3509_v63 = vld [vmem:[%s8485_s27 + $0x10] sm:$0xff] }
 0x64c   : > { %v3149_v2 = vsel %vm1851_vm3, %v2901_v48, %v3129_v0  ;;  %v6438_v0 = vpack.c.bf16 %v3508_v62, %v3507_v61 }
 0x64e   : > { %6439 = vmatprep.subr.bf16.mxu1 %v6438_v0 }
 0x64f   : > { %v3137_v1 = vpop.permute.xlu1 %3136 }
 0x650   : > { %v3152_v3 = vsel %vm3150_vm4, %v3149_v2, %v3137_v1  ;;  %v3510_v1 = vld [vmem:[%s8485_s27 + $0x18] sm:$0xff] }
 0x651   : > { %v6442_v2 = vpack.c.bf16 %v3510_v1, %v3509_v63 }
 0x653   : > { %v3145_v4 = vpop.permute.xlu1 %3144 }
 0x654   : > { %v3155_v5 = vsel %vm3153_vm5, %v3152_v3, %v3145_v4  ;;  %v5916_v4 = vld [vmem:[%s1487_s17] ss:$0 sm:$0xff]  ;;  %s8488_s17 = sld [smem:[#allocation74_spill]] }
 0x655   : > { %6234 = vmatmul.mubr.msk.f32.vlgmr.msra.gmra.mrb[16].mxu0 %vm1549_vm1, %v3155_v5 }
 0x656   : > { %6433 = vmatpush3.bf16.msra.mxu0 %v6430_v28  ;;  %6255 = vmatprep.mubr.msk.f32.mxu0 %vm1549_vm1, %v1536_v31 }
 0x657   : > { %6435 = vmatprep.subr.bf16.mxu0 %v6434_v30 }
 0x65a   : > { %6437 = vmatpush3.bf16.msra.mxu0 %v6434_v30 }
 0x65b   : > { %6269 = vmatprep.subr.mxu0 %v7158_v21 }
 0x65d   : > { %6256 = vmatmul.mubr.msk.f32.vlgmr.msra.gmra.mrb[18].mxu0 %vm1549_vm1, %v1537_v32 }
 0x65e   : > { %6271 = vmatprep.mubr.msk.f32.mxu0 %vm7159_vm2, %v7158_v21 }
 0x728   : > { %v6235_v7 = vpop.f32.mrb[16].mxu0 }
 0x729   : > { %v3245_v8 = vadd.f32 %v6235_v7, %v5911_v6  ;;  %v3239_v9 = vpop.f32.mrb[17].mxu0 }
 0x72a   : > { %v3240_v10 = vadd.f32 %v5911_v6, %v3239_v9 }
 0x72b   : > { %v3249_v11 = vadd.f32 %v3245_v8, %v7770_v19 }
 0x72c   : > { %v3248_v13 = vadd.f32 %v3240_v10, %v7760_v12  ;;  %v5922_v10 = vld [vmem:[%s1493_s1] ss:$0 sm:$0xff] }
 0x72d   : > { %v3255_v14 = vsel %vm1549_vm1, %v3249_v11, 0.0 }
 0x72e   : > { %3256 = vadd.xlane.f32.xlu1 %v3255_v14  ;;  %v3252_v15 = vsel %vm1549_vm1, %v3248_v13, 0.0 }
 0x72f   : > { %3253 = vadd.xlane.f32.xlu0 %v3252_v15 }
 0x730   : > { %v6257_v57 = vpop.f32.mrb[18].mxu0 }
 0x731   : > { %v3490_v58 = vadd.f32 %v6257_v57, %v5919_v56  ;;  %v3484_v59 = vpop.f32.mrb[19].mxu0 }
 0x732   : > { %v3485_v60 = vadd.f32 %v5919_v56, %v3484_v59 }
 0x734   : > { %6270 = vmatpush3.xpose.msk.msra.mxu0 %vm1851_vm3, %v3485_v60 }
 0x735   : > { %6279 = vmatprep.subr.mxu0 %v7158_v21 }
 0x73f   : > { %3495 = vrot.lane.b32.xlu1 %v3485_v60, %s7161_s14 }
 0x743   : > { %3499 = vrot.lane.b32.xlu1 %v3485_v60, %s7162_s12 }
 0x747   : > { %3503 = vrot.lane.b32.xlu1 %v3485_v60, %s7160_s26 }
 0x7bb   : > { %v3257_v16 = vpop.xlane.xlu1 %3256 }
 0x7bc   : > { %v3260_v17 = vmul.f32 0.03125, %v3257_v16  ;;  %v3254_v18 = vpop.xlane.xlu0 %3253 }
 0x7bd   : > { %v3259_v20 = vmul.f32 0.03125, %v3254_v18 }
 0x7be   : > { %v3262_v22 = vsub.f32 %v3249_v11, %v3260_v17 }
 0x7bf   : > { %v3261_v23 = vsub.f32 %v3248_v13, %v3259_v20  ;;  %v3496_v3 = vpop.permute.xlu1 %3495 }
 0x7c0   : > { %v3264_v12 = vmul.f32 %v3262_v22, %v3262_v22 }
 0x7c1   : > { %v3263_v24 = vmul.f32 %v3261_v23, %v3261_v23 }
 0x7c2   : > { %v3268_v25 = vsel %vm1549_vm1, %v3264_v12, 0.0 }
 0x7c3   : > { %v3265_v19 = vsel %vm1549_vm1, %v3263_v24, 0.0  ;;  %v3500_v9 = vpop.permute.xlu1 %3499 }
 0x7c4   : > { %3266 = vadd.xlane.f32.xlu0 %v3265_v19 }
 0x7c7   : > { %v3504_v15 = vpop.permute.xlu1 %3503 }
 0x7c8   : > { %3269 = vadd.xlane.f32.xlu0 %v3268_v25 }
 0x7de   : > { %3497 = vrot.lane.b32.xlu0 %v3490_v58, %s7161_s14 }
 0x851   : > { %v3267_v39 = vpop.xlane.xlu0 %3266 }
 0x852   : > { %v3271_v40 = vmul.f32 0.03125, %v3267_v39 }
 0x854   : > { %v3273_v41 = vadd.f32 1e-05, %v3271_v40 }
 0x855   : > { %v3270_v43 = vpop.xlane.xlu0 %3269 }
 0x856   : > { %6666 = vrsqrt.f32 %v3273_v41  ;;  %v3272_v44 = vmul.f32 0.03125, %v3270_v43 }
 0x858   : > { %v3274_v45 = vadd.f32 1e-05, %v3272_v44 }
 0x859   : > { %v3498_v16 = vpop.permute.xlu0 %3497 }
 0x85a   : > { %6668 = vrsqrt.f32 %v3274_v45 }
 0x860   : > { %v6667_v46 = vpop.eup %6666 }
 0x861   : > { %v3277_v48 = vmul.f32 %v6667_v46, %v3261_v23 }
 0x863   : > { %v3285_v50 = vmul.f32 %v5914_v47, %v3277_v48 }
 0x864   : > { %v6669_v51 = vpop.eup %6668 }
 0x865   : > { %v3278_v52 = vmul.f32 %v6669_v51, %v3262_v22  ;;  %v7979_v53 = vadd.f32 %v5915_v49, %v3285_v50 }
 0x867   : > { %v3286_v54 = vmul.f32 %v5914_v47, %v3278_v52  ;;  %6244 = vmatprep.mubr.msk.f32.mxu1 %vm1549_vm1, %v7979_v53 }
 0x869   : > { %v7983_v55 = vadd.f32 %v5915_v49, %v3286_v54 }
 0x86b   : > { %6245 = vmatmul.mubr.msk.f32.vlgmr.msra.gmra.mrb[22].mxu1 %vm1549_vm1, %v7983_v55 }
 0x86c   : > { %6266 = vmatprep.mubr.msk.f32.mxu1 %vm1549_vm1, %v1536_v31  ;;  %6441 = vmatpush3.bf16.msra.mxu1 %v6438_v0 }
 0x86d   : > { %6443 = vmatprep.subr.bf16.mxu1 %v6442_v2 }
 0x870   : > { %6445 = vmatpush3.bf16.msra.mxu1 %v6442_v2 }
 0x871   : > { %6274 = vmatprep.subr.mxu1 %v7158_v21 }
 0x873   : > { %6267 = vmatmul.mubr.msk.f32.vlgmr.msra.gmra.mrb[24].mxu1 %vm1549_vm1, %v1537_v32 }
 0x874   : > { %6276 = vmatprep.mubr.msk.f32.mxu1 %vm7159_vm2, %v7158_v21 }
 0x879   : > { %6275 = vmatpush3.xpose.msk.msra.mxu1 %vm1851_vm3, %v3496_v3 }
 0x87a   : > { %6284 = vmatprep.subr.mxu1 %v7158_v21 }
 0x93e   : > { %v6246_v5 = vpop.f32.mrb[22].mxu1 }
 0x93f   : > { %v3384_v6 = vadd.f32 %v6246_v5, %v5916_v4  ;;  %v3378_v7 = vpop.f32.mrb[23].mxu1 }
 0x940   : > { %v3379_v8 = vadd.f32 %v5916_v4, %v3378_v7 }
 0x941   : > { %3391 = vrot.lane.b32.xlu1 %v3384_v6, %s7161_s14 }
 0x942   : > { %3389 = vrot.lane.b32.xlu0 %v3379_v8, %s7161_s14  ;;  %6272 = vmatmul.mubr.msk.f32.vlgmr.msra.gmra.mrb[20].mxu0 %vm1851_vm3, %v3379_v8 }
 0x943   : > { %6280 = vmatpush3.xpose.msk.msra.mxu0 %vm1851_vm3, %v3500_v9  ;;  %6281 = vmatprep.mubr.msk.f32.mxu0 %vm7159_vm2, %v7158_v21 }
 0x944   : > { %6289 = vmatprep.subr.mxu0 %v7158_v21 }
 0x945   : > { %3397 = vrot.lane.b32.xlu1 %v3379_v8, %s7160_s26 }
 0x946   : > { %3393 = vrot.lane.b32.xlu0 %v3379_v8, %s7162_s12  ;;  %v6268_v11 = vpop.f32.mrb[24].mxu1 }
 0x947   : > { %v8026_v13 = vadd.f32 %v6268_v11, %v5922_v10  ;;  %v3584_v14 = vpop.f32.mrb[25].mxu1 }
 0x948   : > { %v3585_v19 = vadd.f32 %v5922_v10, %v3584_v14 }
 0x949   : > { %3505 = vrot.lane.b32.xlu1 %v3490_v58, %s7160_s26 }
 0x94a   : > { %3501 = vrot.lane.b32.xlu0 %v3490_v58, %s7162_s12 }
 0x94d   : > { %3399 = vrot.lane.b32.xlu1 %v3384_v6, %s7160_s26 }
 0x94e   : > { %3395 = vrot.lane.b32.xlu0 %v3384_v6, %s7162_s12 }
 0x9b3   : > { %v3392_v17 = vpop.permute.xlu1 %3391 }
 0x9b4   : > { %v3390_v18 = vpop.permute.xlu0 %3389 }
 0x9b5   : > { %6277 = vmatmul.mubr.msk.f32.vlgmr.msra.gmra.mrb[26].mxu1 %vm1851_vm3, %v3390_v18 }
 0x9b6   : > { %6285 = vmatpush3.xpose.msk.msra.mxu1 %vm1851_vm3, %v3504_v15  ;;  %6286 = vmatprep.mubr.msk.f32.mxu1 %vm7159_vm2, %v7158_v21 }
 0x9b7   : > { %v3398_v20 = vpop.permute.xlu1 %3397  ;;  %6294 = vmatprep.subr.mxu1 %v7158_v21 }
 0x9b8   : > { %v3394_v22 = vpop.permute.xlu0 %3393 }
 0x9b9   : > { %6282 = vmatmul.mubr.msk.f32.vlgmr.msra.gmra.mrb[22].mxu0 %vm1851_vm3, %v3394_v22  ;;  %6287 = vmatmul.mubr.msk.f32.vlgmr.msra.gmra.mrb[28].mxu1 %vm1851_vm3, %v3398_v20 }
 0x9ba   : > { %6290 = vmatpush3.xpose.msk.msra.mxu0 %vm1851_vm3, %v3490_v58  ;;  %6295 = vmatpush3.xpose.msk.msra.mxu1 %vm1851_vm3, %v3498_v16 }
 0x9bb   : > { %v3506_v23 = vpop.permute.xlu1 %3505  ;;  %6296 = vmatprep.mubr.msk.f32.mxu1 %vm7159_vm2, %v7158_v21  ;;  %6304 = vmatprep.subr.mxu1 %v7158_v21 }
 0x9bc   : > { %v3502_v24 = vpop.permute.xlu0 %3501  ;;  %6291 = vmatprep.mubr.msk.f32.mxu0 %vm7159_vm2, %v7158_v21  ;;  %6299 = vmatprep.subr.mxu0 %v7158_v21 }
 0x9bd   : > { %6292 = vmatmul.mubr.msk.f32.vlgmr.msra.gmra.mrb[24].mxu0 %vm1851_vm3, %v3384_v6  ;;  %6297 = vmatmul.mubr.msk.f32.vlgmr.msra.gmra.mrb[30].mxu1 %vm1851_vm3, %v3392_v17 }
 0x9be   : > { %6300 = vmatpush3.xpose.msk.msra.mxu0 %vm1851_vm3, %v3502_v24  ;;  %6305 = vmatpush3.xpose.msk.msra.mxu1 %vm1851_vm3, %v3506_v23 }
 0x9bf   : > { %v3400_v12 = vpop.permute.xlu1 %3399  ;;  %6306 = vmatprep.mubr.msk.f32.mxu1 %vm7159_vm2, %v7158_v21  ;;  %6301 = vmatprep.mubr.msk.f32.mxu0 %vm7159_vm2, %v7158_v21 }
 0x9c0   : > { %v3396_v25 = vpop.permute.xlu0 %3395  ;;  %6309 = vmatprep.subr.mxu0 %v7158_v21  ;;  %6314 = vmatprep.subr.mxu1 %v7158_v21 }
 0x9c1   : > { %6302 = vmatmul.mubr.msk.f32.vlgmr.msra.gmra.mrb[26].mxu0 %vm1851_vm3, %v3396_v25  ;;  %6307 = vmatmul.mubr.msk.f32.vlgmr.msra.gmra.mrb[32].mxu1 %vm1851_vm3, %v3400_v12 }
 0x9c2   : > { %6310 = vmatpush3.msra.mxu0 %v3585_v19  ;;  %6311 = vmatprep.mubr.msk.f32.mxu0 %vm7159_vm2, %v7158_v21 }
 0x9c3   : > { %6319 = vmatprep.subr.mxu0 %v7158_v21  ;;  %6316 = vmatprep.mubr.msk.f32.mxu1 %vm7159_vm2, %v7158_v21 }
 0xa15   : > { %v3683_v26 = vpop.f32.mrb[20].mxu0 }
 0xa16   : > { %v4205_v27 = vmul.f32 0.35355338, %v3683_v26  ;;  %v6273_v28 = vpop.f32.mrb[21].mxu0 }
 0xa18   : > { %v4213_v42 = vsel %vm1851_vm3, %v4205_v27, -inf }
 0xa19   : > { %4214 = vmax.xlane.f32.xlu0 %v4213_v42 }
 0xa88   : > { %v3757_v29 = vpop.f32.mrb[26].mxu1 }
 0xa89   : > { %v4206_v30 = vmul.f32 0.35355338, %v3757_v29  ;;  %v6278_v31 = vpop.f32.mrb[27].mxu1 }
 0xa8b   : > { %v4216_v32 = vsel %vm1851_vm3, %v4206_v30, -inf }
 0xa8c   : > { %4217 = vmax.xlane.f32.xlu1 %v4216_v32  ;;  %v3831_v33 = vpop.f32.mrb[22].mxu0  ;;  %v3905_v34 = vpop.f32.mrb[28].mxu1 }
 0xa8d   : > { %v4207_v35 = vmul.f32 0.35355338, %v3831_v33  ;;  %v6283_v36 = vpop.f32.mrb[23].mxu0  ;;  %v6288_v37 = vpop.f32.mrb[29].mxu1  ;;  %v4208_v38 = vmul.f32 0.35355338, %v3905_v34 }
 0xa8f   : > { %v4219_v39 = vsel %vm1851_vm3, %v4207_v35, -inf  ;;  %v4222_v47 = vsel %vm1851_vm3, %v4208_v38, -inf }
 0xa90   : > { %v4053_v40 = vpop.f32.mrb[30].mxu1  ;;  %4220 = vmax.xlane.f32.xlu0 %v4219_v39  ;;  %v3979_v41 = vpop.f32.mrb[24].mxu0 }
 0xa91   : > { %v4209_v43 = vmul.f32 0.35355338, %v3979_v41  ;;  %v6293_v44 = vpop.f32.mrb[25].mxu0  ;;  %v6298_v45 = vpop.f32.mrb[31].mxu1  ;;  %v4210_v46 = vmul.f32 0.35355338, %v4053_v40 }
 0xa93   : > { %v4225_v48 = vsel %vm1851_vm3, %v4209_v43, -inf  ;;  %v4228_v57 = vsel %vm1851_vm3, %v4210_v46, -inf }
 0xa94   : > { %v4201_v49 = vpop.f32.mrb[32].mxu1  ;;  %4223 = vmax.xlane.f32.xlu0 %v4222_v47  ;;  %4226 = vmax.xlane.f32.xlu1 %v4225_v48  ;;  %v4127_v50 = vpop.f32.mrb[26].mxu0 }
 0xa95   : > { %v4211_v51 = vmul.f32 0.35355338, %v4127_v50  ;;  %v6303_v52 = vpop.f32.mrb[27].mxu0  ;;  %v6308_v54 = vpop.f32.mrb[33].mxu1  ;;  %v4212_v56 = vmul.f32 0.35355338, %v4201_v49 }
 0xa97   : > { %v4231_v58 = vsel %vm1851_vm3, %v4211_v51, -inf  ;;  %v4234_v59 = vsel %vm1851_vm3, %v4212_v56, -inf }
 0xa98   : > { %4229 = vmax.xlane.f32.xlu0 %v4228_v57  ;;  %4232 = vmax.xlane.f32.xlu1 %v4231_v58 }
 0xa9c   : > { %4235 = vmax.xlane.f32.xlu0 %v4234_v59 }
 0xaa6   : > { %v4215_v60 = vpop.xlane.xlu0 %4214 }
 0xaa7   : > { %v4237_v61 = vsub.f32 %v4205_v27, %v4215_v60 }
 0xaa9   : > { %3595 = vrot.lane.b32.xlu1 %v3585_v19, %s7161_s14  ;;  %v4245_v62 = vmul.f32 1.442695, %v4237_v61 }
 0xaab   : > { %6670 = vpow2.f32 %v4245_v62 }
 0xaad   : > { %3607 = vrot.lane.b32.xlu1 %v3585_v19, %s7160_s26 }
 0xab1   : > { %3597 = vrot.lane.b32.xlu1 %v8026_v13, %s7161_s14 }
 0xab2   : > { %3601 = vrot.lane.b32.xlu0 %v3585_v19, %s7162_s12 }
 0xab5   : > { %v6671_v63 = vpop.eup %6670 }
 0xab6   : > { %v4261_v0 = vsel %vm1851_vm3, %v6671_v63, 0.0 }
 0xad5   : > { %4262 = vadd.xlane.f32.xlu1 %v4261_v0 }
 0xb19   : > { %v4218_v1 = vpop.xlane.xlu1 %4217 }
 0xb1a   : > { %v4238_v2 = vsub.f32 %v4206_v30, %v4218_v1 }
 0xb1c   : > { %v4247_v3 = vmul.f32 1.442695, %v4238_v2 }
 0xb1d   : > { %v4221_v4 = vpop.xlane.xlu0 %4220 }
 0xb1e   : > { %6672 = vpow2.f32 %v4247_v3  ;;  %v4239_v5 = vsub.f32 %v4207_v35, %v4221_v4 }
 0xb20   : > { %v4249_v6 = vmul.f32 1.442695, %v4239_v5 }
 0xb21   : > { %v4224_v7 = vpop.xlane.xlu0 %4223  ;;  %v4227_v8 = vpop.xlane.xlu1 %4226 }
 0xb22   : > { %6674 = vpow2.f32 %v4249_v6  ;;  %v4240_v9 = vsub.f32 %v4208_v38, %v4224_v7  ;;  %v4241_v10 = vsub.f32 %v4209_v43, %v4227_v8  ;;  %v4915_v8 = vld [vmem:[%s8488_s17] sm:$0xff] }
 0xb24   : > { %v4251_v11 = vmul.f32 1.442695, %v4240_v9  ;;  %v4253_v14 = vmul.f32 1.442695, %v4241_v10  ;;  %v4916_v9 = vld [vmem:[%s8488_s17 + $0x8] sm:$0xff] }
 0xb25   : > { %v4230_v15 = vpop.xlane.xlu0 %4229  ;;  %v4233_v16 = vpop.xlane.xlu1 %4232 }
 0xb26   : > { %6676 = vpow2.f32 %v4251_v11  ;;  %v4242_v17 = vsub.f32 %v4210_v46, %v4230_v15  ;;  %v4243_v18 = vsub.f32 %v4211_v51, %v4233_v16  ;;  %v6446_v11 = vpack.c.bf16 %v4916_v9, %v4915_v8  ;;  %v4917_v15 = vld [vmem:[%s8488_s17 + $0x10] sm:$0xff]  ;;  %v4918_v16 = vld [vmem:[%s8488_s17 + $0x18] sm:$0xff] }
 0xb27   : > { %6678 = vpow2.f32 %v4253_v14 }
 0xb28   : > { %v6673_v20 = vpop.eup %6672  ;;  %v4255_v22 = vmul.f32 1.442695, %v4242_v17  ;;  %v4257_v23 = vmul.f32 1.442695, %v4243_v18  ;;  %v6450_v17 = vpack.c.bf16 %v4918_v16, %v4917_v15 }
 0xb29   : > { %v4236_v24 = vpop.xlane.xlu0 %4235  ;;  %v3596_v19 = vpop.permute.xlu1 %3595  ;;  %v4264_v12 = vsel %vm1851_vm3, %v6673_v20, 0.0 }
 0xb2a   : > { %6680 = vpow2.f32 %v4255_v22  ;;  %v4244_v25 = vsub.f32 %v4212_v56, %v4236_v24  ;;  %4265 = vadd.xlane.f32.xlu0 %v4264_v12  ;;  %6315 = vmatpush3.msra.mxu1 %v3596_v19 }
 0xb2b   : > { %6682 = vpow2.f32 %v4257_v23  ;;  %6324 = vmatprep.subr.mxu1 %v7158_v21 }
 0xb2c   : > { %v6675_v26 = vpop.eup %6674  ;;  %v4259_v27 = vmul.f32 1.442695, %v4244_v25 }
 0xb2d   : > { %v4267_v28 = vsel %vm1851_vm3, %v6675_v26, 0.0  ;;  %v3608_v38 = vpop.permute.xlu1 %3607  ;;  %v3602_v44 = vpop.permute.xlu0 %3601 }
 0xb2e   : > { %6684 = vpow2.f32 %v4259_v27  ;;  %4268 = vadd.xlane.f32.xlu1 %v4267_v28 }
 0xb30   : > { %v6677_v42 = vpop.eup %6676 }
 0xb31   : > { %v6679_v29 = vpop.eup %6678  ;;  %v4270_v30 = vsel %vm1851_vm3, %v6677_v42, 0.0  ;;  %v3598_v39 = vpop.permute.xlu1 %3597 }
 0xb32   : > { %4271 = vadd.xlane.f32.xlu0 %v4270_v30  ;;  %v4273_v31 = vsel %vm1851_vm3, %v6679_v29, 0.0 }
 0xb33   : > { %4274 = vadd.xlane.f32.xlu1 %v4273_v31 }
 0xb34   : > { %v8079_v32 = vpop.eup %6680 }
 0xb35   : > { %v8081_v33 = vpop.eup %6682  ;;  %v4276_v34 = vsel %vm1851_vm3, %v8079_v32, 0.0 }
 0xb36   : > { %4277 = vadd.xlane.f32.xlu0 %v4276_v34  ;;  %v4279_v35 = vsel %vm1851_vm3, %v8081_v33, 0.0 }
 0xb37   : > { %4280 = vadd.xlane.f32.xlu1 %v4279_v35 }
 0xb38   : > { %v8087_v36 = vpop.eup %6684 }
 0xb39   : > { %v4282_v37 = vsel %vm1851_vm3, %v8087_v36, 0.0 }
 0xb3a   : > { %4283 = vadd.xlane.f32.xlu0 %v4282_v37 }
 0xb48   : > { %3609 = vrot.lane.b32.xlu1 %v8026_v13, %s7160_s26 }
 0xb50   : > { %3603 = vrot.lane.b32.xlu0 %v8026_v13, %s7162_s12  ;;  %s5342_s12 = sshll.u32 %s7750_s13, 4  ;;  %s8211_s12 = int_to_ptr.vmem [resolvable:$true] %s5342_s12 }
 0xb51   : > { %s6974_s19 = scalar_lea.vmem %s8211_s12, 1024  ;;  %p6981_p0 = scmp.lt.s32.totalorder %s8211_s12, %s6979_s4 }
 0xb52   : > { %p6975_p4 = scmp.ne.s32.totalorder %s8211_s12, %s6974_s19  ;;  %p6982_p6 = scmp.lt.s32.totalorder %s6980_s23, %s6974_s19 }
 0xb54   : > { %p6983_p5 = por %p6982_p6, %p6981_p0 }
 0xb62   : > { %v4263_v40 = vpop.xlane.xlu1 %4262 }
 0xb63   : > { %6686 = vrcp.f32 %v4263_v40 }
 0xb6d   : > { %v6687_v41 = vpop.eup %6686 }
 0xb6e   : > { %v4293_v43 = vmul.f32 %v6687_v41, %v6671_v63 }
 0xb70   : > { %5302 = vst.msk [vmem:[%s7752_s15] sm:$0xff] %vm1851_vm3, %v4293_v43  ;;  %6312 = vmatmul.mubr.msk.f32.vlgmr.msra.gmra.mrb[28].mxu0 %vm1851_vm3, %v4293_v43 }
 0xb71   : > { %6320 = vmatpush3.msra.mxu0 %v3602_v44  ;;  %6321 = vmatprep.mubr.msk.f32.mxu0 %vm7159_vm2, %v7158_v21 }
 0xb72   : > { %6329 = vmatprep.subr.mxu0 %v7158_v21 }
 0xbb7   : > { %v4266_v45 = vpop.xlane.xlu0 %4265 }
 0xbb8   : > { %6688 = vrcp.f32 %v4266_v45 }
 0xbbb   : > { %v4269_v46 = vpop.xlane.xlu1 %4268 }
 0xbbc   : > { %6690 = vrcp.f32 %v4269_v46 }
 0xbbf   : > { %v4272_v47 = vpop.xlane.xlu0 %4271 }
 0xbc0   : > { %6692 = vrcp.f32 %v4272_v47  ;;  %v4275_v48 = vpop.xlane.xlu1 %4274 }
 0xbc1   : > { %6694 = vrcp.f32 %v4275_v48 }
 0xbc2   : > { %v6689_v49 = vpop.eup %6688 }
 0xbc3   : > { %v4294_v50 = vmul.f32 %v6689_v49, %v6673_v20  ;;  %v4278_v51 = vpop.xlane.xlu0 %4277 }
 0xbc4   : > { %6696 = vrcp.f32 %v4278_v51  ;;  %v4281_v52 = vpop.xlane.xlu1 %4280 }
 0xbc5   : > { %5303 = vst.msk [vmem:[%s7752_s15 + $0x8] sm:$0xff] %vm1851_vm3, %v4294_v50  ;;  %6698 = vrcp.f32 %v4281_v52  ;;  %6317 = vmatmul.mubr.msk.f32.vlgmr.msra.gmra.mrb[34].mxu1 %vm1851_vm3, %v4294_v50 }
 0xbc6   : > { %v6691_v54 = vpop.eup %6690  ;;  %6325 = vmatpush3.msra.mxu1 %v3608_v38  ;;  %6326 = vmatprep.mubr.msk.f32.mxu1 %vm7159_vm2, %v7158_v21 }
 0xbc7   : > { %v4295_v56 = vmul.f32 %v6691_v54, %v6675_v26  ;;  %v4284_v57 = vpop.xlane.xlu0 %4283  ;;  %6334 = vmatprep.subr.mxu1 %v7158_v21 }
 0xbc8   : > { %6700 = vrcp.f32 %v4284_v57  ;;  %v3610_v2 = vpop.permute.xlu1 %3609 }
 0xbc9   : > { %5304 = vst.msk [vmem:[%s7752_s15 + $0x10] sm:$0xff] %vm1851_vm3, %v4295_v56  ;;  %6322 = vmatmul.mubr.msk.f32.vlgmr.msra.gmra.mrb[30].mxu0 %vm1851_vm3, %v4295_v56 }
 0xbca   : > { %v6693_v58 = vpop.eup %6692  ;;  %6330 = vmatpush3.msra.mxu0 %v8026_v13  ;;  %6331 = vmatprep.mubr.msk.f32.mxu0 %vm7159_vm2, %v7158_v21 }
 0xbcb   : > { %v6695_v59 = vpop.eup %6694  ;;  %v4296_v60 = vmul.f32 %v6693_v58, %v6677_v42  ;;  %6339 = vmatprep.subr.mxu0 %v7158_v21  ;;  %v3604_v62 = vpop.permute.xlu0 %3603 }
 0xbcc   : > { %v4297_v61 = vmul.f32 %v6695_v59, %v6679_v29  ;;  %v5053_v59 = vld [vmem:[%s7748_s8] sm:$0xff] }
 0xbcd   : > { %5305 = vst.msk [vmem:[%s7752_s15 + $0x18] sm:$0xff] %vm1851_vm3, %v4296_v60  ;;  %6327 = vmatmul.mubr.msk.f32.vlgmr.msra.gmra.mrb[36].mxu1 %vm1851_vm3, %v4296_v60  ;;  %v5054_v60 = vld [vmem:[%s7748_s8 + $0x8] sm:$0xff] }
 0xbce   : > { %v6697_v63 = vpop.eup %6696  ;;  %5306 = vst.msk [vmem:[%s7752_s15 + $0x20] sm:$0xff] %vm1851_vm3, %v4297_v61  ;;  %6332 = vmatmul.mubr.msk.f32.vlgmr.msra.gmra.mrb[32].mxu0 %vm1851_vm3, %v4297_v61  ;;  %6335 = vmatpush3.msra.mxu1 %v3598_v39  ;;  %v5949_v39 = vld [vmem:[%s1496_s30] ss:$0 sm:$0xff]  ;;  %v6454_v61 = vpack.c.bf16 %v5054_v60, %v5053_v59 }
 0xbcf   : > { %v6699_v13 = vpop.eup %6698  ;;  %v4298_v0 = vmul.f32 %v6697_v63, %v8079_v32  ;;  %6340 = vmatpush3.msra.mxu0 %v3604_v62  ;;  %6336 = vmatprep.mubr.msk.f32.mxu1 %vm7159_vm2, %v7158_v21  ;;  %v5055_v62 = vld [vmem:[%s7748_s8 + $0x10] sm:$0xff]  ;;  %v5056_v63 = vld [vmem:[%s7748_s8 + $0x18] sm:$0xff] }
 0xbd0   : > { %v4299_v1 = vmul.f32 %v6699_v13, %v8081_v33  ;;  %6341 = vmatprep.mubr.msk.f32.mxu0 %vm7159_vm2, %v7158_v21  ;;  %6344 = vmatprep.subr.mxu1 %v7158_v21  ;;  %v6458_v13 = vpack.c.bf16 %v5056_v63, %v5055_v62 }
 0xbd1   : > { %5307 = vst.msk [vmem:[%s7752_s15 + $0x28] sm:$0xff] %vm1851_vm3, %v4298_v0  ;;  %6337 = vmatmul.mubr.msk.f32.vlgmr.msra.gmra.mrb[38].mxu1 %vm1851_vm3, %v4298_v0  ;;  %6447 = vmatprep.subr.bf16.mxu0 %v6446_v11  ;;  %v5147_v0 = vld [vmem:[%s7739_s25] sm:$0xff] }
 0xbd2   : > { %v6701_v3 = vpop.eup %6700  ;;  %5308 = vst.msk [vmem:[%s7752_s15 + $0x30] sm:$0xff] %vm1851_vm3, %v4299_v1  ;;  %6342 = vmatmul.mubr.msk.f32.vlgmr.msra.gmra.mrb[34].mxu0 %vm1851_vm3, %v4299_v1  ;;  %6345 = vmatpush3.msra.mxu1 %v3610_v2  ;;  %v5148_v1 = vld [vmem:[%s7739_s25 + $0x8] sm:$0xff]  ;;  %v5149_v2 = vld [vmem:[%s7739_s25 + $0x10] sm:$0xff] }
 0xbd3   : > { %v4300_v4 = vmul.f32 %v6701_v3, %v8087_v36  ;;  %6346 = vmatprep.mubr.msk.f32.mxu1 %vm7159_vm2, %v7158_v21  ;;  %6449 = vmatpush3.bf16.msra.mxu0 %v6446_v11  ;;  %v6462_v3 = vpack.c.bf16 %v5148_v1, %v5147_v0 }
 0xbd4   : > { %6451 = vmatprep.subr.bf16.mxu0 %v6450_v17  ;;  %6455 = vmatprep.subr.bf16.mxu1 %v6454_v61 }
 0xbd5   : > { %5309 = vst.msk [vmem:[%s7752_s15 + $0x38] sm:$0xff] %vm1851_vm3, %v4300_v4  ;;  %6347 = vmatmul.mubr.msk.f32.vlgmr.msra.gmra.mrb[40].mxu1 %vm1851_vm3, %v4300_v4  ;;  %v5150_v4 = vld [vmem:[%s7739_s25 + $0x18] sm:$0xff] }
 0xbd6   : > { %6457 = vmatpush3.bf16.msra.mxu1 %v6454_v61 }
 0xbd7   : > { %6453 = vmatpush3.bf16.msra.mxu0 %v6450_v17  ;;  %6459 = vmatprep.subr.bf16.mxu1 %v6458_v13  ;;  %v5952_v17 = vld [vmem:[%s1499_s2] ss:$0 sm:$0xff]  ;;  %s8494_s2 = sld [smem:[#allocation64_spill]] }
 0xbd8   : > { %6463 = vmatprep.subr.bf16.mxu0 %v6462_v3 }
 0xbda   : > { %6461 = vmatpush3.bf16.msra.mxu1 %v6458_v13 }
 0xc43   : > { %v4370_v5 = vpop.f32.mrb[28].mxu0 }
 0xc44   : > { %v6313_v6 = vpop.f32.mrb[29].mxu0 }
 0xc45   : > { %v5151_v6 = vld [vmem:[%s7739_s25 + $0x20] sm:$0xff] }
 0xc98   : > { %v4443_v7 = vpop.f32.mrb[34].mxu1 }
 0xc99   : > { %4887 = vrot.lane.b32.xlu0 %v4443_v7, %s7163_s22  ;;  %v6318_v10 = vpop.f32.mrb[35].mxu1  ;;  %v5152_v7 = vld [vmem:[%s7739_s25 + $0x28] sm:$0xff] }
 0xc9a   : > { %v6470_v8 = vpack.c.bf16 %v5152_v7, %v5151_v6 }
 0xc9c   : > { %v4516_v14 = vpop.f32.mrb[30].mxu0 }
 0xc9d   : > { %4895 = vrot.lane.b32.xlu0 %v4516_v14, %s7164_s29  ;;  %v6323_v21 = vpop.f32.mrb[31].mxu0 }
 0xca0   : > { %v4589_v18 = vpop.f32.mrb[36].mxu1 }
 0xca1   : > { %v4662_v20 = vpop.f32.mrb[32].mxu0  ;;  %v6328_v22 = vpop.f32.mrb[37].mxu1  ;;  %4903 = vrot.lane.b32.xlu0 %v4589_v18, %s7165_s5 }
 0xca2   : > { %v6333_v23 = vpop.f32.mrb[33].mxu0 }
 0xca4   : > { %v4735_v24 = vpop.f32.mrb[38].mxu1 }
 0xca5   : > { %v4808_v19 = vpop.f32.mrb[34].mxu0  ;;  %4889 = vrot.lane.b32.xlu1 %v4735_v24, %s7163_s22  ;;  %v6338_v12 = vpop.f32.mrb[39].mxu1 }
 0xca6   : > { %v6343_v25 = vpop.f32.mrb[35].mxu0 }
 0xca8   : > { %v4881_v26 = vpop.f32.mrb[40].mxu1 }
 0xca9   : > { %v6348_v27 = vpop.f32.mrb[41].mxu1  ;;  %4897 = vrot.lane.b32.xlu1 %v4808_v19, %s7164_s29 }
 0xcaa   : > { %v5154_v27 = vld [vmem:[%s7739_s25 + $0x38] sm:$0xff] }
 0xcad   : > { %4905 = vrot.lane.b32.xlu1 %v4881_v26, %s7165_s5  ;;  %v5153_v26 = vld [vmem:[%s7739_s25 + $0x30] sm:$0xff]  ;;  %s8495_s25 = sld [smem:[#allocation59_spill]] }
 0xd0b   : > { %v4888_v28 = vpop.permute.xlu0 %4887 }
 0xd0c   : > { %v4909_v29 = vsel %vm1851_vm3, %v4370_v5, %v4888_v28  ;;  %v6466_v5 = vpack.c.bf16 %v5150_v4, %v5149_v2  ;;  %v6474_v28 = vpack.c.bf16 %v5154_v27, %v5153_v26 }
 0xd0f   : > { %v4896_v42 = vpop.permute.xlu0 %4895 }
 0xd10   : > { %v4911_v30 = vsel %vm3150_vm4, %v4909_v29, %v4896_v42  ;;  %v5954_v42 = vld [vmem:[%s1505_s10] ss:$0 sm:$0xff]  ;;  %s8497_s10 = sld [smem:[#allocation67_spill]] }
 0xd13   : > { %v4904_v31 = vpop.permute.xlu0 %4903 }
 0xd14   : > { %v4913_v32 = vsel %vm3153_vm5, %v4911_v30, %v4904_v31 }
 0xd15   : > { %6357 = vmatprep.mubr.msk.f32.mxu0 %vm1549_vm1, %v4913_v32 }
 0xd16   : > { %p8498_p7 = scmp.ne.s32.totalorder %s8497_s10, 0 }
 0xd17   : > { %v4890_v33 = vpop.permute.xlu1 %4889 }
 0xd18   : > { %v4910_v35 = vsel %vm1851_vm3, %v4662_v20, %v4890_v33  ;;  %v5953_v20 = vld [vmem:[%s1502_s28] ss:$0 sm:$0xff]  ;;  %s8496_s28 = sld [smem:[#allocation69_spill]]  ;;  %p6976_p13 = pnand %p6975_p4, %p8498_p7 }
 0xd1a   : > { %p6977_p2 = pneg %p6976_p13 }
 0xd1b   : > { %v4898_v34 = vpop.permute.xlu1 %4897 }
 0xd1c   : > { %v4912_v36 = vsel %vm3150_vm4, %v4910_v35, %v4898_v34  ;;  %v5957_v35 = vld [vmem:[%s1513_s3] ss:$0 sm:$0xff]  ;;  %s5982_s3 = sshll.u32 %s8494_s2, 10  ;;  %p6984_p10 = pnand %p6983_p5, %p6977_p2 }
 0xd1d   : > { %s8209_s29 = scalar_lea.hbm %s8495_s25, %s5982_s3 }
 0xd1e   : > { %s5311_s5 = scalar_lea.sflag [#allocation20], %s8496_s28 }
 0xd1f   : > { %v4906_v37 = vpop.permute.xlu1 %4905 }
 0xd20   : > { %v4914_v38 = vsel %vm3153_vm5, %v4912_v36, %v4906_v37 }
 0xd21   : > { %6358 = vmatmul.mubr.msk.f32.vlgmr.msra.gmra.mrb[36].mxu0 %vm1549_vm1, %v4914_v38 }
 0xd22   : > { %6465 = vmatpush3.bf16.msra.mxu0 %v6462_v3 }
 0xd23   : > { %6467 = vmatprep.subr.bf16.mxu0 %v6466_v5 }
 0xd26   : > { %6469 = vmatpush3.bf16.msra.mxu0 %v6466_v5 }
 0xd27   : > { %6471 = vmatprep.subr.bf16.mxu0 %v6470_v8 }
 0xd2a   : > { %6473 = vmatpush3.bf16.msra.mxu0 %v6470_v8 }
 0xd2b   : > { %6475 = vmatprep.subr.bf16.mxu0 %v6474_v28 }
 0xd2e   : > { %6477 = vmatpush3.bf16.msra.mxu0 %v6474_v28 }
 0xdf4   : > { %v6359_v40 = vpop.f32.mrb[36].mxu0 }
 0xdf5   : > { %v5004_v41 = vadd.f32 %v6359_v40, %v5949_v39  ;;  %v4998_v43 = vpop.f32.mrb[37].mxu0 }
 0xdf6   : > { %v4999_v44 = vadd.f32 %v5949_v39, %v4998_v43 }
 0xdf7   : > { %v5008_v45 = vadd.f32 %v5004_v41, %v7983_v55 }
 0xdf8   : > { %v5007_v46 = vadd.f32 %v4999_v44, %v7979_v53 }
 0xdf9   : > { %v5014_v47 = vsel %vm1549_vm1, %v5008_v45, 0.0 }
 0xdfa   : > { %5015 = vadd.xlane.f32.xlu1 %v5014_v47  ;;  %v5011_v48 = vsel %vm1549_vm1, %v5007_v46, 0.0 }
 0xdfb   : > { %5012 = vadd.xlane.f32.xlu0 %v5011_v48 }
 0xe87   : > { %v5016_v49 = vpop.xlane.xlu1 %5015 }
 0xe88   : > { %v5018_v50 = vmul.f32 0.03125, %v5016_v49  ;;  %v5013_v51 = vpop.xlane.xlu0 %5012 }
 0xe89   : > { %v5017_v52 = vmul.f32 0.03125, %v5013_v51 }
 0xe8a   : > { %v5020_v54 = vsub.f32 %v5008_v45, %v5018_v50 }
 0xe8b   : > { %v5019_v56 = vsub.f32 %v5007_v46, %v5017_v52 }
 0xe8c   : > { %v5022_v55 = vmul.f32 %v5020_v54, %v5020_v54 }
 0xe8d   : > { %v5021_v57 = vmul.f32 %v5019_v56, %v5019_v56 }
 0xe8e   : > { %v5026_v58 = vsel %vm1549_vm1, %v5022_v55, 0.0 }
 0xe8f   : > { %v5023_v53 = vsel %vm1549_vm1, %v5021_v57, 0.0 }
 0xe90   : > { %5024 = vadd.xlane.f32.xlu0 %v5023_v53 }
 0xe94   : > { %5027 = vadd.xlane.f32.xlu0 %v5026_v58 }
 0xf1d   : > { %v5025_v9 = vpop.xlane.xlu0 %5024 }
 0xf1e   : > { %v5029_v10 = vmul.f32 0.03125, %v5025_v9 }
 0xf20   : > { %v5031_v11 = vadd.f32 1e-05, %v5029_v10 }
 0xf21   : > { %v5028_v14 = vpop.xlane.xlu0 %5027 }
 0xf22   : > { %6702 = vrsqrt.f32 %v5031_v11  ;;  %v5030_v15 = vmul.f32 0.03125, %v5028_v14 }
 0xf24   : > { %v5032_v16 = vadd.f32 1e-05, %v5030_v15 }
 0xf26   : > { %6704 = vrsqrt.f32 %v5032_v16 }
 0xf2c   : > { %v6703_v21 = vpop.eup %6702 }
 0xf2d   : > { %v5035_v18 = vmul.f32 %v6703_v21, %v5019_v56 }
 0xf2f   : > { %v5043_v22 = vmul.f32 %v5952_v17, %v5035_v18 }
 0xf30   : > { %v6705_v23 = vpop.eup %6704 }
 0xf31   : > { %v5036_v24 = vmul.f32 %v6705_v23, %v5020_v54  ;;  %v5051_v19 = vadd.f32 %v5953_v20, %v5043_v22 }
 0xf33   : > { %v5044_v12 = vmul.f32 %v5952_v17, %v5036_v24  ;;  %6368 = vmatprep.mubr.msk.f32.mxu1 %vm1549_vm1, %v5051_v19 }
 0xf35   : > { %v5052_v25 = vadd.f32 %v5953_v20, %v5044_v12 }
 0xf37   : > { %6369 = vmatmul.mubr.msk.f32.vlgmr.msra.gmra.mrb[42].mxu1 %vm1549_vm1, %v5052_v25 }
0x100a   : > { %v6370_v29 = vpop.f32.mrb[42].mxu1 }
0x100b   : > { %v5142_v30 = vadd.f32 %v6370_v29, %v5954_v42  ;;  %v5136_v31 = vpop.f32.mrb[43].mxu1 }
0x100c   : > { %v5137_v32 = vadd.f32 %v5954_v42, %v5136_v31 }
0x100d   : > { %v5146_v34 = vmax.f32 %v5142_v30, 0.0 }
0x100e   : > { %v5145_v33 = vmax.f32 %v5137_v32, 0.0 }
0x1010   : > { %6387 = vmatprep.mubr.msk.f32.mxu0 %vm5162_vm6, %v5145_v33 }
0x1011   : > { %6388 = vmatmul.mubr.msk.f32.vlgmr.msra.gmra.mrb[38].mxu0 %vm5162_vm6, %v5146_v34 }
0x10e4   : > { %v6389_v36 = vpop.f32.mrb[38].mxu0 }
0x10e5   : > { %v5241_v37 = vadd.f32 %v6389_v36, %v5957_v35  ;;  %v5235_v38 = vpop.f32.mrb[39].mxu0 }
0x10e6   : > { %v5236_v39 = vadd.f32 %v5957_v35, %v5235_v38 }
0x10e7   : > { %v5245_v40 = vadd.f32 %v5241_v37, %v5052_v25 }
0x10e8   : > { %v5244_v41 = vadd.f32 %v5236_v39, %v5051_v19 }
0x10e9   : > { %v5251_v43 = vsel %vm1549_vm1, %v5245_v40, 0.0 }
0x10ea   : > { %5252 = vadd.xlane.f32.xlu0 %v5251_v43  ;;  %v5248_v44 = vsel %vm1549_vm1, %v5244_v41, 0.0 }
0x10eb   : > { %5249 = vadd.xlane.f32.xlu1 %v5248_v44 }
0x1177   : > { %v5253_v45 = vpop.xlane.xlu0 %5252 }
0x1178   : > { %v5255_v46 = vmul.f32 0.03125, %v5253_v45  ;;  %v5250_v47 = vpop.xlane.xlu1 %5249 }
0x1179   : > { %v5254_v48 = vmul.f32 0.03125, %v5250_v47 }
0x117a   : > { %v8194_v49 = vsub.f32 %v5245_v40, %v5255_v46 }
0x117b   : > { %v8196_v50 = vsub.f32 %v5244_v41, %v5254_v48 }
0x117c   : > { %v5259_v51 = vmul.f32 %v8194_v49, %v8194_v49 }
0x117d   : > { %v5258_v52 = vmul.f32 %v8196_v50, %v8196_v50 }
0x117e   : > { %v5263_v54 = vsel %vm1549_vm1, %v5259_v51, 0.0 }
0x117f   : > { %5264 = vadd.xlane.f32.xlu0 %v5263_v54  ;;  %v5260_v56 = vsel %vm1549_vm1, %v5258_v52, 0.0 }
0x1180   : > { %5261 = vadd.xlane.f32.xlu1 %v5260_v56 }
0x1181   : > { %6987 = shalt.err (!%p6984_p10)
}
0x1182   : > { %s6988_s13 = scalar_lea.hbm %s8209_s29, 1024  ;;  %s6992_s7 = scalar_lea.hbm %s8495_s25, 2048 }
0x1183   : > { %p6989_p1 = scmp.ne.s32.totalorder %s8209_s29, %s6988_s13  ;;  %p6993_p8 = scmp.lt.u32.totalorder %s8209_s29, %s8495_s25 }
0x1184   : > { %p6994_p9 = scmp.lt.u32.totalorder %s6992_s7, %s6988_s13  ;;  %p6996_p4 = scmp.lt.u32.totalorder %s6988_s13, %s8209_s29 }
0x1185   : > { %p6990_p3 = pnand %p6989_p1, %p8498_p7 }
0x1186   : > { %p6995_p12 = por %p6994_p9, %p6993_p8 }
0x1187   : > { %p6991_p11 = pneg %p6990_p3 }
0x1188   : > { %p6997_p13 = por %p6996_p4, %p6995_p12 }
0x118a   : > { %p6998_p2 = pnand %p6997_p13, %p6991_p11 }
0x118c   : > { %7001 = shalt.err (!%p6998_p2)
}
0x118d   : > { %s7167_s11 = smov 128   ;;  %s8499_s24 = sld [smem:[#allocation60_spill]] }
0x118e   : > { %6504 = dma.vmem_to_hbm [thread:$0]  (%p8498_p7), %s8211_s12, 1024, %s8209_s29, %s5311_s5, %s7167_s11, %s7167_s11, %s7163_s22  }
0x118f   : > { %s5358_s27 = sshll.u32 %s7752_s15, 4  ;;  %s7168_s20 = smov [#allocation21]   ;;  %s8242_s27 = int_to_ptr.vmem [resolvable:$true] %s5358_s27 }
0x1190   : > { %s7002_s21 = scalar_lea.vmem %s8242_s27, 1024  ;;  %s7006_s17 = sshll.u32 %s7168_s20, 4  ;;  %s7007_s17 = int_to_ptr.vmem [resolvable:$false] %s7006_s17 }
0x1191   : > { %p7003_p0 = scmp.ne.s32.totalorder %s8242_s27, %s7002_s21  ;;  %s7008_s1 = scalar_lea.vmem %s7007_s17, 2048 }
0x1192   : > { %p7009_p10 = scmp.lt.s32.totalorder %s8242_s27, %s7007_s17  ;;  %p7010_p1 = scmp.lt.s32.totalorder %s7008_s1, %s7002_s21 }
0x1193   : > { %s8239_s18 = scalar_lea.hbm %s8499_s24, %s5982_s3  ;;  %p7004_p6 = pnand %p7003_p0, %p8498_p7 }
0x1194   : > { %p7011_p3 = por %p7010_p1, %p7009_p10 }
0x1195   : > { %p7005_p5 = pneg %p7004_p6 }
0x1197   : > { %p7012_p11 = pnand %p7011_p3, %p7005_p5 }
0x1199   : > { %7015 = shalt.err (!%p7012_p11)
}
0x119a   : > { %s7016_s15 = scalar_lea.hbm %s8239_s18, 1024  ;;  %s7020_s30 = scalar_lea.hbm %s8499_s24, 2048 }
0x119b   : > { %p7017_p8 = scmp.ne.s32.totalorder %s8239_s18, %s7016_s15  ;;  %p7021_p4 = scmp.lt.u32.totalorder %s8239_s18, %s8499_s24 }
0x119c   : > { %p7022_p13 = scmp.lt.u32.totalorder %s7020_s30, %s7016_s15  ;;  %p7024_p0 = scmp.lt.u32.totalorder %s7016_s15, %s8239_s18 }
0x119d   : > { %p7018_p9 = pnand %p7017_p8, %p8498_p7 }
0x119e   : > { %p7023_p2 = por %p7022_p13, %p7021_p4 }
0x119f   : > { %p7019_p12 = pneg %p7018_p9 }
0x11a0   : > { %p7025_p6 = por %p7024_p0, %p7023_p2 }
0x11a2   : > { %p7026_p5 = pnand %p7025_p6, %p7019_p12 }
0x11a4   : > { %7029 = shalt.err (!%p7026_p5)
}
0x11a5   : > { %6505 = dma.vmem_to_hbm [thread:$0]  (%p8498_p7), %s8242_s27, 1024, %s8239_s18, %s5311_s5, %s7167_s11, %s7167_s11, %s7163_s22  }
0x11a6   : > { %v5960_v62 = vld [vmem:[%s1516_s9] ss:$0 sm:$0xff]  ;;  %s7169_s14 = smov [#allocation18]   ;;  %p8502_p10 = scmp.eq.s32.totalorder %s8494_s2, 1 }
0x11a7   : > { %v5961_v0 = vld [vmem:[%s1519_s0] ss:$0 sm:$0xff]  ;;  %s5326_s28 = sshll.u32 %s7169_s14, 4  ;;  %s5327_s28 = int_to_ptr.vmem [resolvable:$true] %s5326_s28 }
0x11a8   : > { %s7030_s9 = scalar_lea.vmem %s5327_s28, 256  ;;  %p7037_p11 = scmp.lt.s32.totalorder %s5327_s28, %s5327_s28 }
0x11a9   : > { %p7031_p7 = scmp.ne.s32.totalorder %s5327_s28, %s7030_s9  ;;  %p7038_p8 = scmp.lt.s32.totalorder %s7030_s9, %s7030_s9 }
0x11ab   : > { %p7032_p1 = pnand %p7031_p7, %p8502_p10  ;;  %p7039_p9 = por %p7038_p8, %p7037_p11 }
0x11ad   : > { %p7033_p3 = pneg %p7032_p1 }
0x11af   : > { %p7040_p12 = pnand %p7039_p9, %p7033_p3 }
0x120c   : > { %v5265_v57 = vpop.xlane.xlu0 %5264 }
0x120d   : > { %v5267_v53 = vmul.f32 0.03125, %v5265_v57  ;;  %v5262_v55 = vpop.xlane.xlu1 %5261 }
0x120e   : > { %v5266_v58 = vmul.f32 0.03125, %v5262_v55 }
0x120f   : > { %v5269_v59 = vadd.f32 1e-05, %v5267_v53 }
0x1210   : > { %v5268_v60 = vadd.f32 1e-05, %v5266_v58 }
0x1211   : > { %6706 = vrsqrt.f32 %v5269_v59 }
0x1212   : > { %6708 = vrsqrt.f32 %v5268_v60 }
0x121b   : > { %v6707_v61 = vpop.eup %6706 }
0x121c   : > { %v6709_v63 = vpop.eup %6708  ;;  %v5273_v13 = vmul.f32 %v6707_v61, %v8194_v49 }
0x121d   : > { %v5272_v1 = vmul.f32 %v6709_v63, %v8196_v50 }
0x121e   : > { %v5281_v2 = vmul.f32 %v5960_v62, %v5273_v13 }
0x121f   : > { %v5280_v3 = vmul.f32 %v5960_v62, %v5272_v1 }
0x1220   : > { %v5289_v4 = vadd.f32 %v5961_v0, %v5281_v2 }
0x1221   : > { %v5288_v5 = vadd.f32 %v5961_v0, %v5280_v3 }
0x1222   : > { %5291 = vst.msk [vmem:[#allocation2 + $0x8] sm:$0xff] %vm1549_vm1, %v5289_v4  ;;  %5293 = vst.msk [vmem:[#allocation18 + $0x8] sm:$0xff] %vm1549_vm1, %v5289_v4 }
0x1223   : > { %5290 = vst.msk [vmem:[#allocation2] sm:$0xff] %vm1549_vm1, %v5288_v5  ;;  %5292 = vst.msk [vmem:[#allocation18] sm:$0xff] %vm1549_vm1, %v5288_v5 }
0x1224   : > { %7043 = shalt.err (!%p7040_p12)
}
0x1225   : > { %s8503_s0 = sld [smem:[#allocation58_spill]]  ;;  %p8504_p13 = pmov %p8502_p10 }
0x122b   : > { %s7044_s16 = scalar_lea.hbm %s8503_s0, 256 }
0x122c   : > { %p7045_p4 = scmp.ne.s32.totalorder %s8503_s0, %s7044_s16  ;;  %p7050_p6 = scmp.lt.u32.totalorder %s7044_s16, %s8503_s0 }
0x122e   : > { %p7046_p2 = pnand %p7045_p4, %p8504_p13 }
0x1230   : > { %p7047_p0 = pneg %p7046_p2 }
0x1232   : > { %p7052_p5 = pnand %p7050_p6, %p7047_p0 }
0x1234   : > { %7055 = shalt.err (!%p7052_p5)
}
0x1235   : > { %p8505_p7 = pmov %p8502_p10 }
0x1237   : > { %6503 = dma.vmem_to_hbm [thread:$0]  (%p8505_p7), %s5327_s28, 256, %s8503_s0, [#allocation5], %s7167_s11, %s7167_s11, %s7163_s22  }
0x1238   : > { %p8506_p10 = pmov %p8505_p7 }
0x1239   : > { %p8507_p1 = pmov %p8505_p7 }
0x123a   : > { %7093 = dma.done.wait (%p8506_p10), [#allocation5], 256  }
0x123b   : > { %7095 = vsyncadd (%p8507_p1), [#allocation5], 4294967040 }
0x123c PF: > { %s8508_s10 = sld [smem:[#allocation63_spill]]  ;;  %s8510_s12 = sld [smem:[#allocation68_spill]] }
0x1242   : > { %s8509_s3 = sadd.s32 4294967294, %s8508_s10   ;;  %p8511_p3 = scmp.ne.s32.totalorder %s8510_s12, 0 }
0x1243   : > { %s5377_s29 = sand.u32 1, %s8509_s3   ;;  %p8512_p11 = scmp.ge.s32.totalorder %s8508_s10, 2 }
0x1244   : > { %s5378_s5 = scalar_lea.sflag [#allocation20], %s5377_s29 }
0x1245   : > { %p6540_p8 = pnand %p8512_p11, %p8511_p3 }
0x1247   : > { %7097 = dma.done.wait (!%p6540_p8), %s5378_s5, 2048  }
0x1248   : > { %7099 = vsyncadd (!%p6540_p8), %s5378_s5, 4294965248  ;;  %s8513_s28 = sld [smem:[#allocation65_spill]]  ;;  %s8514_s22 = sld [smem:[#allocation61_spill]] }
0x1249   : > { %s8515_s23 = sld [smem:[#allocation62_spill]]  ;;  %s8516_s26 = sld [smem:[#allocation66_spill]] }
0x124e   : > { %p86_p9 = scmp.ge.s32.totalorder %s8513_s28, 4  }
0x1250   :  { %88 = sbr.rel (!%p86_p9) target bundleno = 80 (0x50), region = 372 }
0x1257   :  { %5392 = vsyncpa [#allocation4], 1 }
0x1258   :  { %5394 = vsyncpa [#allocation4 + $0x1], 1 }
0x1259   :  { %5395 = vsyncpa [#allocation7], 1 }
0x125a   :  { %5396 = vsyncpa [#allocation10], 1 }
0x125b   :  { %5398 = vsyncpa [#allocation10 + $0x1], 1 }
0x125c   :  { %5399 = vsyncpa [#allocation13], 1 }
0x125d   :  { %5401 = vsyncpa [#allocation13 + $0x1], 1 }
0x125e   :  { %5402 = vsyncpa [#allocation16], 1 }
0x125f   :  { %5404 = vsyncpa [#allocation16 + $0x1], 1 }
0x1260   :  { %5405 = vsyncpa [#allocation5], 1 }
0x1261   :  { %5407 = vsyncpa [#allocation5 + $0x1], 1 }
0x1262   :  { %5408 = vsyncpa [#allocation20], 1 }
0x1263   :  { %5410 = vsyncpa [#allocation20 + $0x1], 1 }

</bundles_post_ra>
